<compile_context>
chip_gen: v6e
topology: v6e:2x2x1
jax: 0.10.0
libtpu: 0.0.40
codegen_flags: <defaults>
</compile_context>

<pallas_src>
import numpy as np
import jax
import jax.numpy as jnp
from jax import lax
from jax.experimental import pallas as pl
from jax.experimental.pallas import tpu as pltpu

# ---------------- static configuration (small test shapes) ----------------
B = 2
IN_CH = 4            # in_channels
OUT_CH = 16          # out_channels == dmodel == attention dim
IMG = 16             # image_size (H = W), patch_size = 1
PROB_CH = 3          # channels of x2 (softmaxed into a probability map)
WIN = 8              # win_size
HEADS = 2
DIM_HEAD = 8
INNER = HEADS * DIM_HEAD
N_TOK = IMG * IMG
N_WIN_TOK = WIN * WIN
SCALE = DIM_HEAD ** -0.5
LN_EPS = 1e-5
IOU_THR = 0.2
KEEP_NUM = min(int(0.7 * (IMG // WIN) ** 2), 96)   # = 2 at these shapes
M_ROWS = KEEP_NUM * N_WIN_TOK                      # all kept-window tokens of one batch


# ---------------- static tables (numpy, built once) ----------------
def shifted_windows(height, width, win_size):
    shift_y = np.arange(0, height - win_size + 1, win_size // 2)
    shift_x = np.arange(0, width - win_size + 1, win_size // 2)
    sx, sy = np.meshgrid(shift_x, shift_y)
    win = np.stack((sx.ravel(), sy.ravel(), sx.ravel(), sy.ravel()), axis=1).astype(np.float32)
    win[:, 2] = win[:, 0] + win_size - 1
    win[:, 3] = win[:, 1] + win_size - 1
    return win                                                     # (M, 4) [x1, y1, x2, y2]


def bilinear_matrix(ws):
    # torchvision roi_align (aligned=False, sampling_ratio=-1, spatial_scale=1) samples
    # offsets inside a box [s, s + ws - 1]; separable bilinear weight matrix.
    p = np.arange(ws)
    off = (p + 0.5) * (ws - 1) / ws
    low = np.floor(off).astype(np.int64)
    frac = (off - low).astype(np.float32)
    Bm = np.zeros((ws, ws), np.float32)
    Bm[p, low] += 1.0 - frac
    Bm[p, np.minimum(low + 1, ws - 1)] += frac
    return Bm


WINDOW_BOXES = jnp.asarray(shifted_windows(IMG, IMG, WIN))
# Block-diagonal kron(BIL, BIL): applies the separable roi_align bilinear resample to
# every gathered window with a single (M_ROWS, M_ROWS) @ (M_ROWS, D) MXU matmul.
_BIL = bilinear_matrix(WIN)
BB_BLOCK = jnp.asarray(np.kron(np.eye(KEEP_NUM, dtype=np.float32), np.kron(_BIL, _BIL)))


# ---------------- fused Pallas kernel (one grid step per batch element) ----------------
def _block_kernel(starts_ref, valid_ref,                        # SMEM scalar prefetch: (b, KEEP) int32
                  x_ref, invc_ref,                              # per-batch blocked inputs
                  we_ref, posb_ref, ln_ref, bb_ref,
                  wqkv_ref, wo_ref, bo_ref,                     # shared weights
                  o_ref,                                        # (1, N, D) output tokens
                  xn_ref, gat_ref, qkv_ref, att_ref, acc_ref):  # VMEM scratch
    i = pl.program_id(0)

    # ---- fused patch embedding + (bias + positional embedding) + LayerNorm ----
    x = x_ref[0]                                                      # (N, Cin)
    y = jnp.dot(x, we_ref[...], preferred_element_type=jnp.float32) + posb_ref[...]
    mu = jnp.mean(y, axis=-1, keepdims=True)
    var = jnp.mean(jnp.square(y - mu), axis=-1, keepdims=True)
    xn_ref[...] = (y - mu) * lax.rsqrt(var + LN_EPS) * ln_ref[0:1, :] + ln_ref[1:2, :]
    acc_ref[...] = jnp.zeros_like(acc_ref)

    # ---- roi_align gather: crop every kept window into the (M_ROWS, D) scratch ----
    for k in range(KEEP_NUM):
        start = starts_ref[i, k]
        for r in range(WIN):
            dst = k * N_WIN_TOK + r * WIN
            gat_ref[dst:dst + WIN, :] = xn_ref[pl.ds(start + r * IMG, WIN), :]

    # separable bilinear resample of all windows at once (block-diag kron(BIL, BIL))
    xw = jnp.dot(bb_ref[...], gat_ref[...], preferred_element_type=jnp.float32)    # (M_ROWS, D)

    # ---- fused QKV projection over every kept-window token of this batch ----
    # (q-scale is pre-folded into the Q columns of wqkv on the host)
    qkv_ref[...] = jnp.dot(xw, wqkv_ref[...], preferred_element_type=jnp.float32)  # (M_ROWS, 3*INNER)

    # ---- softmax attention, unrolled over (window, head) ----
    # KEEP_NUM*HEADS is tiny here, so the unrolled loop lowers to the same matmul
    # sequence a batched dot_general would, while avoiding in-kernel 2D->3D reshapes.
    for k in range(KEEP_NUM):
        r0 = k * N_WIN_TOK
        for h in range(HEADS):
            c0 = h * DIM_HEAD
            q = qkv_ref[r0:r0 + N_WIN_TOK, c0:c0 + DIM_HEAD]
            kmat = qkv_ref[r0:r0 + N_WIN_TOK, INNER + c0:INNER + c0 + DIM_HEAD]
            vmat = qkv_ref[r0:r0 + N_WIN_TOK, 2 * INNER + c0:2 * INNER + c0 + DIM_HEAD]
            dots = lax.dot_general(q, kmat, (((1,), (1,)), ((), ())),
                                   preferred_element_type=jnp.float32)             # (n, n)
            dots = dots - jnp.max(dots, axis=-1, keepdims=True)
            e = jnp.exp(dots)
            attn = e * pl.reciprocal(jnp.sum(e, axis=-1, keepdims=True), approx=True)
            att_ref[r0:r0 + N_WIN_TOK, c0:c0 + DIM_HEAD] = jnp.dot(
                attn, vmat, preferred_element_type=jnp.float32)

    # ---- fused output projection over every kept-window token ----
    proj = (jnp.dot(att_ref[...], wo_ref[...], preferred_element_type=jnp.float32)
            + bo_ref[...])                                                          # (M_ROWS, D)

    # ---- scatter-add the window outputs back onto the token grid (in VMEM) ----
    # Invalid NMS slots (padding) are skipped entirely via pl.when on the SMEM flag.
    for k in range(KEEP_NUM):
        start = starts_ref[i, k]
        patch = proj[k * N_WIN_TOK:(k + 1) * N_WIN_TOK, :]

        @pl.when(valid_ref[i, k] > 0)
        def _scatter():
            for r in range(WIN):
                rows = pl.ds(start + r * IMG, WIN)
                acc_ref[rows, :] = acc_ref[rows, :] + patch[r * WIN:(r + 1) * WIN, :]

    # ---- coverage-normalize and add the residual onto the *normalized* tokens ----
    o_ref[0] = (xn_ref[...] + acc_ref[...] * invc_ref[0]).astype(o_ref.dtype)


def transformer_block_pallas(starts, valid, x_tok, inv_cnt,
                             w_embed, posb, ln_par, bb, w_qkv, w_out, b_out):
    b = x_tok.shape[0]
    return pl.pallas_call(
        _block_kernel,
        out_shape=jax.ShapeDtypeStruct((b, N_TOK, OUT_CH), jnp.float32),
        grid_spec=pltpu.PrefetchScalarGridSpec(
            num_scalar_prefetch=2,
            grid=(b,),
            in_specs=[
                pl.BlockSpec((1, N_TOK, IN_CH), lambda i, st, vl: (i, 0, 0)),
                pl.BlockSpec((1, N_TOK, 1), lambda i, st, vl: (i, 0, 0)),
                pl.BlockSpec((IN_CH, OUT_CH), lambda i, st, vl: (0, 0)),
                pl.BlockSpec((N_TOK, OUT_CH), lambda i, st, vl: (0, 0)),
                pl.BlockSpec((2, OUT_CH), lambda i, st, vl: (0, 0)),
                pl.BlockSpec((M_ROWS, M_ROWS), lambda i, st, vl: (0, 0)),
                pl.BlockSpec((OUT_CH, 3 * INNER), lambda i, st, vl: (0, 0)),
                pl.BlockSpec((INNER, OUT_CH), lambda i, st, vl: (0, 0)),
                pl.BlockSpec((1, OUT_CH), lambda i, st, vl: (0, 0)),
            ],
            out_specs=pl.BlockSpec((1, N_TOK, OUT_CH), lambda i, st, vl: (i, 0, 0)),
            scratch_shapes=[
                pltpu.VMEM((N_TOK, OUT_CH), jnp.float32),      # xn: normalized tokens
                pltpu.VMEM((M_ROWS, OUT_CH), jnp.float32),     # gathered window crops
                pltpu.VMEM((M_ROWS, 3 * INNER), jnp.float32),  # fused qkv
                pltpu.VMEM((M_ROWS, INNER), jnp.float32),      # per-head attention outputs
                pltpu.VMEM((N_TOK, OUT_CH), jnp.float32),      # scatter accumulator
            ],
        ),
        compiler_params=pltpu.CompilerParams(dimension_semantics=("parallel",)),
    )(starts, valid, x_tok, inv_cnt, w_embed, posb, ln_par, bb, w_qkv, w_out, b_out)


# ---------------- JAX glue (data-dependent / tiny selection-side ops) ----------------
def box_iou_matrix(boxes):
    x1, y1, x2, y2 = boxes[:, 0], boxes[:, 1], boxes[:, 2], boxes[:, 3]
    area = (x2 - x1) * (y2 - y1)
    iw = jnp.clip(jnp.minimum(x2[:, None], x2[None, :]) - jnp.maximum(x1[:, None], x1[None, :]), 0.0)
    ih = jnp.clip(jnp.minimum(y2[:, None], y2[None, :]) - jnp.maximum(y1[:, None], y1[None, :]), 0.0)
    inter = iw * ih
    return inter / (area[:, None] + area[None, :] - inter)


def nms_topk(scores, iou_full, keep_num, iou_thr):
    # TODO(synk): greedy NMS is inherently sequential/data-dependent; done in plain JAX, not Pallas.
    M = scores.shape[0]
    order = jnp.argsort(-scores)
    ious = iou_full[order][:, order]

    def body(t, suppressed):
        kept = jnp.logical_not(suppressed[t])
        sup_row = (ious[t] > iou_thr) & (jnp.arange(M) > t)
        return jnp.where(kept, suppressed | sup_row, suppressed)

    suppressed = lax.fori_loop(0, M, body, jnp.zeros((M,), jnp.bool_))
    kept = jnp.logical_not(suppressed)
    rank = jnp.cumsum(kept.astype(jnp.int32)) - 1
    slot = jnp.where(kept, rank, M + keep_num)
    sel = jnp.zeros((keep_num,), jnp.int32).at[slot].set(order.astype(jnp.int32), mode="drop")
    valid = jnp.arange(keep_num) < jnp.sum(kept.astype(jnp.int32))
    return sel, valid


def init_params(key):
    ks = jax.random.split(key, 6)
    return {
        "w_embed": 0.02 * jax.random.normal(ks[0], (IN_CH, OUT_CH), jnp.float32),
        "b_embed": 0.02 * jax.random.normal(ks[1], (OUT_CH,), jnp.float32),
        "pos": jax.random.normal(ks[2], (1, N_TOK, OUT_CH), jnp.float32),
        "ln_g": jnp.ones((OUT_CH,), jnp.float32),
        "ln_b": jnp.zeros((OUT_CH,), jnp.float32),
        "w_qkv": 0.02 * jax.random.normal(ks[3], (OUT_CH, 3 * INNER), jnp.float32),
        "w_out": 0.02 * jax.random.normal(ks[4], (INNER, OUT_CH), jnp.float32),
        "b_out": 0.02 * jax.random.normal(ks[5], (OUT_CH,), jnp.float32),
    }


def forward(x1, x2, params):
    b = x1.shape[0]

    # ---- to_patch_embedding input layout: 'b c h w -> b (h w) c' (patch_size = 1) ----
    x_tok = jnp.transpose(x1, (0, 2, 3, 1)).reshape(b, N_TOK, IN_CH)

    # ---- prob = softmax(x2, dim=1); channel entropy; FixCNN box filter scores ----
    prob = jax.nn.softmax(x2, axis=1)
    entropy = -jnp.sum(prob * jnp.log2(prob + 1e-10), axis=1)            # (b, h, w)
    k = WIN // 2
    s = k // 2
    win_score = lax.reduce_window(entropy, 0.0, lax.add, (1, k, k), (1, s, s), "VALID")
    win_score = win_score.reshape(b, -1) / float((WIN // 2) * (WIN // 2))

    # ---- greedy NMS window selection (per batch) ----
    iou_full = box_iou_matrix(WINDOW_BOXES)
    sel, valid = jax.vmap(lambda sc: nms_topk(sc, iou_full, KEEP_NUM, IOU_THR))(win_score)
    kw = WINDOW_BOXES[sel]                                               # (b, keep, 4)
    sx = kw[..., 0].astype(jnp.int32)
    sy = kw[..., 1].astype(jnp.int32)
    starts = (sy * IMG + sx).astype(jnp.int32)                           # flat token row of window corner
    valid_i32 = valid.astype(jnp.int32)                                  # (b, keep) NMS validity flags

    # ---- window coverage count (depends only on sy/sx/valid -> cheap in JAX) ----
    valid_f = valid.astype(jnp.float32)
    g = jnp.arange(IMG, dtype=jnp.int32)
    in_y = (g[None, None, :] >= sy[:, :, None]) & (g[None, None, :] < sy[:, :, None] + WIN)
    in_x = (g[None, None, :] >= sx[:, :, None]) & (g[None, None, :] < sx[:, :, None] + WIN)
    cov = in_y[:, :, :, None] & in_x[:, :, None, :]                      # (b, keep, H, W)
    cnt = jnp.sum(cov.astype(jnp.float32) * valid_f[:, :, None, None], axis=1)
    inv_cnt = (1.0 / (cnt + 1e-10)).reshape(b, N_TOK, 1)

    # ---- weight packing for the fused kernel (fewer operands / DMA descriptors) ----
    posb = params["pos"][0] + params["b_embed"][None, :]                 # pos + embed bias, (N, D)
    ln_par = jnp.stack([params["ln_g"], params["ln_b"]], axis=0)         # (2, D): gamma, beta
    w_qkv = params["w_qkv"].at[:, :INNER].multiply(SCALE)                # fold q-scale into W_q

    out_tok = transformer_block_pallas(
        starts, valid_i32, x_tok, inv_cnt, params["w_embed"], posb, ln_par,
        BB_BLOCK, w_qkv, params["w_out"], params["b_out"][None, :])

    # ---- recover_patch_embedding: 'b (h w) c -> b c h w' ----
    return out_tok.reshape(b, IMG, IMG, OUT_CH).transpose(0, 3, 1, 2)


if __name__ == "__main__":
    key = jax.random.PRNGKey(0)
    kp, kx1, kx2 = jax.random.split(key, 3)
    params = init_params(kp)
    x1 = jax.random.normal(kx1, (B, IN_CH, IMG, IMG), jnp.float32)
    x2 = jax.random.normal(kx2, (B, PROB_CH, IMG // 2, IMG // 2), jnp.float32)

    out = jax.jit(forward)(x1, x2, params)
    out = jax.block_until_ready(out)
    assert out.shape == (B, OUT_CH, IMG, IMG)
    assert bool(jnp.all(jnp.isfinite(out)))
    print("KERNEL_OK")
</pallas_src>

<mosaic_0001>
module attributes {stable_mosaic.version = 11 : i64} {
  func.func @_block_kernel(%arg0: i32, %arg1: memref<2x2xi32, #tpu.memory_space<smem>>, %arg2: memref<2x2xi32, #tpu.memory_space<smem>>, %arg3: memref<1x256x4xf32, #tpu.memory_space<vmem>>, %arg4: memref<1x256x1xf32, #tpu.memory_space<vmem>>, %arg5: memref<4x16xf32, #tpu.memory_space<vmem>>, %arg6: memref<256x16xf32, #tpu.memory_space<vmem>>, %arg7: memref<2x16xf32, #tpu.memory_space<vmem>>, %arg8: memref<128x128xf32, #tpu.memory_space<vmem>>, %arg9: memref<16x48xf32, #tpu.memory_space<vmem>>, %arg10: memref<16x16xf32, #tpu.memory_space<vmem>>, %arg11: memref<1x16xf32, #tpu.memory_space<vmem>>, %arg12: memref<1x256x16xf32, #tpu.memory_space<vmem>>, %arg13: memref<256x16xf32, #tpu.memory_space<vmem>>, %arg14: memref<128x16xf32, #tpu.memory_space<vmem>>, %arg15: memref<128x48xf32, #tpu.memory_space<vmem>>, %arg16: memref<128x16xf32, #tpu.memory_space<vmem>>, %arg17: memref<256x16xf32, #tpu.memory_space<vmem>>) attributes {dimension_semantics = [#tpu.dimension_semantics<parallel>], iteration_bounds = array<i64: 2>, scalar_prefetch = 2 : i64, scratch_operands = 5 : i64, tpu.core_type = #tpu.core_type<tc>, window_params = [{transform_indices = @transform_0, window_bounds = array<i64: 1, 256, 4>}, {transform_indices = @transform_1, window_bounds = array<i64: 1, 256, 1>}, {pipeline_mode = #tpu.pipeline_mode<synchronous>, transform_indices = @transform_2, window_bounds = array<i64: 4, 16>}, {pipeline_mode = #tpu.pipeline_mode<synchronous>, transform_indices = @transform_3, window_bounds = array<i64: 256, 16>}, {pipeline_mode = #tpu.pipeline_mode<synchronous>, transform_indices = @transform_4, window_bounds = array<i64: 2, 16>}, {pipeline_mode = #tpu.pipeline_mode<synchronous>, transform_indices = @transform_5, window_bounds = array<i64: 128, 128>}, {pipeline_mode = #tpu.pipeline_mode<synchronous>, transform_indices = @transform_6, window_bounds = array<i64: 16, 48>}, {pipeline_mode = #tpu.pipeline_mode<synchronous>, transform_indices = @transform_7, window_bounds = array<i64: 16, 16>}, {pipeline_mode = #tpu.pipeline_mode<synchronous>, transform_indices = @transform_8, window_bounds = array<i64: 1, 16>}, {transform_indices = @transform_9, window_bounds = array<i64: 1, 256, 16>}]} {
    %c0 = arith.constant 0 : index
    %c0_0 = arith.constant 0 : index
    %c0_1 = arith.constant 0 : index
    %0 = vector.load %arg3[%c0, %c0_0, %c0_1] : memref<1x256x4xf32, #tpu.memory_space<vmem>>, vector<1x256x4xf32>
    %1 = vector.shape_cast %0 : vector<1x256x4xf32> to vector<256x4xf32>
    %c0_2 = arith.constant 0 : index
    %c0_3 = arith.constant 0 : index
    %2 = vector.load %arg5[%c0_2, %c0_3] : memref<4x16xf32, #tpu.memory_space<vmem>>, vector<4x16xf32>
    %cst = arith.constant dense<0.000000e+00> : vector<256x16xf32>
    %3 = tpu.matmul %1, %2, %cst {dimension_numbers = #tpu.dot_dimension_numbers<[1], [0], [0], [1], [0, 0, 1, 1], [], []>} : vector<256x4xf32>, vector<4x16xf32>, vector<256x16xf32> -> vector<256x16xf32>
    %c0_4 = arith.constant 0 : index
    %c0_5 = arith.constant 0 : index
    %4 = vector.load %arg6[%c0_4, %c0_5] : memref<256x16xf32, #tpu.memory_space<vmem>>, vector<256x16xf32>
    %5 = arith.addf %3, %4 : vector<256x16xf32>
    %cst_6 = arith.constant dense<0.000000e+00> : vector<256xf32>
    %6 = vector.multi_reduction <add>, %5, %cst_6 [1] : vector<256x16xf32> to vector<256xf32>
    %7 = vector.shape_cast %6 : vector<256xf32> to vector<256x1xf32>
    %cst_7 = arith.constant 1.600000e+01 : f32
    %8 = vector.broadcast %cst_7 : f32 to vector<256x1xf32>
    %9 = arith.divf %7, %8 : vector<256x1xf32>
    %10 = vector.broadcast %9 : vector<256x1xf32> to vector<256x16xf32>
    %11 = arith.subf %5, %10 : vector<256x16xf32>
    %12 = arith.mulf %11, %11 : vector<256x16xf32>
    %cst_8 = arith.constant dense<0.000000e+00> : vector<256xf32>
    %13 = vector.multi_reduction <add>, %12, %cst_8 [1] : vector<256x16xf32> to vector<256xf32>
    %14 = vector.shape_cast %13 : vector<256xf32> to vector<256x1xf32>
    %cst_9 = arith.constant 1.600000e+01 : f32
    %15 = vector.broadcast %cst_9 : f32 to vector<256x1xf32>
    %16 = arith.divf %14, %15 : vector<256x1xf32>
    %17 = vector.broadcast %9 : vector<256x1xf32> to vector<256x16xf32>
    %18 = arith.subf %5, %17 : vector<256x16xf32>
    %cst_10 = arith.constant 9.99999974E-6 : f32
    %19 = vector.broadcast %cst_10 : f32 to vector<256x1xf32>
    %20 = arith.addf %16, %19 : vector<256x1xf32>
    %21 = math.rsqrt %20 : vector<256x1xf32>
    %22 = vector.broadcast %21 : vector<256x1xf32> to vector<256x16xf32>
    %23 = arith.mulf %18, %22 : vector<256x16xf32>
    %c0_11 = arith.constant 0 : index
    %c0_12 = arith.constant 0 : index
    %24 = vector.load %arg7[%c0_11, %c0_12] : memref<2x16xf32, #tpu.memory_space<vmem>>, vector<1x16xf32>
    %25 = vector.broadcast %24 : vector<1x16xf32> to vector<256x16xf32>
    %26 = arith.mulf %23, %25 : vector<256x16xf32>
    %c1 = arith.constant 1 : index
    %c0_13 = arith.constant 0 : index
    %27 = vector.load %arg7[%c1, %c0_13] : memref<2x16xf32, #tpu.memory_space<vmem>>, vector<1x16xf32>
    %28 = vector.broadcast %27 : vector<1x16xf32> to vector<256x16xf32>
    %29 = arith.addf %26, %28 : vector<256x16xf32>
    %c0_14 = arith.constant 0 : index
    %c0_15 = arith.constant 0 : index
    %30 = vector.load %arg13[%c0_14, %c0_15] : memref<256x16xf32, #tpu.memory_space<vmem>>, vector<256x16xf32>
    tpu.vector_store %arg13[%c0_14, %c0_15], %29 {strides = array<i32>} : memref<256x16xf32, #tpu.memory_space<vmem>>, vector<256x16xf32>,
    %cst_16 = arith.constant 0.000000e+00 : f32
    %31 = vector.broadcast %cst_16 : f32 to vector<256x16xf32>
    %c0_17 = arith.constant 0 : index
    %c0_18 = arith.constant 0 : index
    %32 = vector.load %arg17[%c0_17, %c0_18] : memref<256x16xf32, #tpu.memory_space<vmem>>, vector<256x16xf32>
    tpu.vector_store %arg17[%c0_17, %c0_18], %31 {strides = array<i32>} : memref<256x16xf32, #tpu.memory_space<vmem>>, vector<256x16xf32>,
    %33 = arith.index_cast %arg0 : i32 to index
    %c0_19 = arith.constant 0 : index
    %34 = memref.load %arg1[%33, %c0_19] : memref<2x2xi32, #tpu.memory_space<smem>>
    %c0_i32 = arith.constant 0 : i32
    %35 = arith.addi %34, %c0_i32 : i32
    %36 = arith.index_cast %35 : i32 to index
    %c0_20 = arith.constant 0 : index
    %37 = vector.load %arg13[%36, %c0_20] : memref<256x16xf32, #tpu.memory_space<vmem>>, vector<8x16xf32>
    %c0_21 = arith.constant 0 : index
    %c0_22 = arith.constant 0 : index
    %38 = vector.load %arg14[%c0_21, %c0_22] : memref<128x16xf32, #tpu.memory_space<vmem>>, vector<8x16xf32>
    tpu.vector_store %arg14[%c0_21, %c0_22], %37 {strides = array<i32>} : memref<128x16xf32, #tpu.memory_space<vmem>>, vector<8x16xf32>,
    %c16_i32 = arith.constant 16 : i32
    %39 = arith.addi %34, %c16_i32 : i32
    %40 = arith.index_cast %39 : i32 to index
    %c0_23 = arith.constant 0 : index
    %41 = vector.load %arg13[%40, %c0_23] : memref<256x16xf32, #tpu.memory_space<vmem>>, vector<8x16xf32>
    %c8 = arith.constant 8 : index
    %c0_24 = arith.constant 0 : index
    %42 = vector.load %arg14[%c8, %c0_24] : memref<128x16xf32, #tpu.memory_space<vmem>>, vector<8x16xf32>
    tpu.vector_store %arg14[%c8, %c0_24], %41 {strides = array<i32>} : memref<128x16xf32, #tpu.memory_space<vmem>>, vector<8x16xf32>,
    %c32_i32 = arith.constant 32 : i32
    %43 = arith.addi %34, %c32_i32 : i32
    %44 = arith.index_cast %43 : i32 to index
    %c0_25 = arith.constant 0 : index
    %45 = vector.load %arg13[%44, %c0_25] : memref<256x16xf32, #tpu.memory_space<vmem>>, vector<8x16xf32>
    %c16 = arith.constant 16 : index
    %c0_26 = arith.constant 0 : index
    %46 = vector.load %arg14[%c16, %c0_26] : memref<128x16xf32, #tpu.memory_space<vmem>>, vector<8x16xf32>
    tpu.vector_store %arg14[%c16, %c0_26], %45 {strides = array<i32>} : memref<128x16xf32, #tpu.memory_space<vmem>>, vector<8x16xf32>,
    %c48_i32 = arith.constant 48 : i32
    %47 = arith.addi %34, %c48_i32 : i32
    %48 = arith.index_cast %47 : i32 to index
    %c0_27 = arith.constant 0 : index
    %49 = vector.load %arg13[%48, %c0_27] : memref<256x16xf32, #tpu.memory_space<vmem>>, vector<8x16xf32>
    %c24 = arith.constant 24 : index
    %c0_28 = arith.constant 0 : index
    %50 = vector.load %arg14[%c24, %c0_28] : memref<128x16xf32, #tpu.memory_space<vmem>>, vector<8x16xf32>
    tpu.vector_store %arg14[%c24, %c0_28], %49 {strides = array<i32>} : memref<128x16xf32, #tpu.memory_space<vmem>>, vector<8x16xf32>,
    %c64_i32 = arith.constant 64 : i32
    %51 = arith.addi %34, %c64_i32 : i32
    %52 = arith.index_cast %51 : i32 to index
    %c0_29 = arith.constant 0 : index
    %53 = vector.load %arg13[%52, %c0_29] : memref<256x16xf32, #tpu.memory_space<vmem>>, vector<8x16xf32>
    %c32 = arith.constant 32 : index
    %c0_30 = arith.constant 0 : index
    %54 = vector.load %arg14[%c32, %c0_30] : memref<128x16xf32, #tpu.memory_space<vmem>>, vector<8x16xf32>
    tpu.vector_store %arg14[%c32, %c0_30], %53 {strides = array<i32>} : memref<128x16xf32, #tpu.memory_space<vmem>>, vector<8x16xf32>,
    %c80_i32 = arith.constant 80 : i32
    %55 = arith.addi %34, %c80_i32 : i32
    %56 = arith.index_cast %55 : i32 to index
    %c0_31 = arith.constant 0 : index
    %57 = vector.load %arg13[%56, %c0_31] : memref<256x16xf32, #tpu.memory_space<vmem>>, vector<8x16xf32>
    %c40 = arith.constant 40 : index
    %c0_32 = arith.constant 0 : index
    %58 = vector.load %arg14[%c40, %c0_32] : memref<128x16xf32, #tpu.memory_space<vmem>>, vector<8x16xf32>
    tpu.vector_store %arg14[%c40, %c0_32], %57 {strides = array<i32>} : memref<128x16xf32, #tpu.memory_space<vmem>>, vector<8x16xf32>,
    %c96_i32 = arith.constant 96 : i32
    %59 = arith.addi %34, %c96_i32 : i32
    %60 = arith.index_cast %59 : i32 to index
    %c0_33 = arith.constant 0 : index
    %61 = vector.load %arg13[%60, %c0_33] : memref<256x16xf32, #tpu.memory_space<vmem>>, vector<8x16xf32>
    %c48 = arith.constant 48 : index
    %c0_34 = arith.constant 0 : index
    %62 = vector.load %arg14[%c48, %c0_34] : memref<128x16xf32, #tpu.memory_space<vmem>>, vector<8x16xf32>
    tpu.vector_store %arg14[%c48, %c0_34], %61 {strides = array<i32>} : memref<128x16xf32, #tpu.memory_space<vmem>>, vector<8x16xf32>,
    %c112_i32 = arith.constant 112 : i32
    %63 = arith.addi %34, %c112_i32 : i32
    %64 = arith.index_cast %63 : i32 to index
    %c0_35 = arith.constant 0 : index
    %65 = vector.load %arg13[%64, %c0_35] : memref<256x16xf32, #tpu.memory_space<vmem>>, vector<8x16xf32>
    %c56 = arith.constant 56 : index
    %c0_36 = arith.constant 0 : index
    %66 = vector.load %arg14[%c56, %c0_36] : memref<128x16xf32, #tpu.memory_space<vmem>>, vector<8x16xf32>
    tpu.vector_store %arg14[%c56, %c0_36], %65 {strides = array<i32>} : memref<128x16xf32, #tpu.memory_space<vmem>>, vector<8x16xf32>,
    %67 = arith.index_cast %arg0 : i32 to index
    %c1_37 = arith.constant 1 : index
    %68 = memref.load %arg1[%67, %c1_37] : memref<2x2xi32, #tpu.memory_space<smem>>
    %c0_i32_38 = arith.constant 0 : i32
    %69 = arith.addi %68, %c0_i32_38 : i32
    %70 = arith.index_cast %69 : i32 to index
    %c0_39 = arith.constant 0 : index
    %71 = vector.load %arg13[%70, %c0_39] : memref<256x16xf32, #tpu.memory_space<vmem>>, vector<8x16xf32>
    %c64 = arith.constant 64 : index
    %c0_40 = arith.constant 0 : index
    %72 = vector.load %arg14[%c64, %c0_40] : memref<128x16xf32, #tpu.memory_space<vmem>>, vector<8x16xf32>
    tpu.vector_store %arg14[%c64, %c0_40], %71 {strides = array<i32>} : memref<128x16xf32, #tpu.memory_space<vmem>>, vector<8x16xf32>,
    %c16_i32_41 = arith.constant 16 : i32
    %73 = arith.addi %68, %c16_i32_41 : i32
    %74 = arith.index_cast %73 : i32 to index
    %c0_42 = arith.constant 0 : index
    %75 = vector.load %arg13[%74, %c0_42] : memref<256x16xf32, #tpu.memory_space<vmem>>, vector<8x16xf32>
    %c72 = arith.constant 72 : index
    %c0_43 = arith.constant 0 : index
    %76 = vector.load %arg14[%c72, %c0_43] : memref<128x16xf32, #tpu.memory_space<vmem>>, vector<8x16xf32>
    tpu.vector_store %arg14[%c72, %c0_43], %75 {strides = array<i32>} : memref<128x16xf32, #tpu.memory_space<vmem>>, vector<8x16xf32>,
    %c32_i32_44 = arith.constant 32 : i32
    %77 = arith.addi %68, %c32_i32_44 : i32
    %78 = arith.index_cast %77 : i32 to index
    %c0_45 = arith.constant 0 : index
    %79 = vector.load %arg13[%78, %c0_45] : memref<256x16xf32, #tpu.memory_space<vmem>>, vector<8x16xf32>
    %c80 = arith.constant 80 : index
    %c0_46 = arith.constant 0 : index
    %80 = vector.load %arg14[%c80, %c0_46] : memref<128x16xf32, #tpu.memory_space<vmem>>, vector<8x16xf32>
    tpu.vector_store %arg14[%c80, %c0_46], %79 {strides = array<i32>} : memref<128x16xf32, #tpu.memory_space<vmem>>, vector<8x16xf32>,
    %c48_i32_47 = arith.constant 48 : i32
    %81 = arith.addi %68, %c48_i32_47 : i32
    %82 = arith.index_cast %81 : i32 to index
    %c0_48 = arith.constant 0 : index
    %83 = vector.load %arg13[%82, %c0_48] : memref<256x16xf32, #tpu.memory_space<vmem>>, vector<8x16xf32>
    %c88 = arith.constant 88 : index
    %c0_49 = arith.constant 0 : index
    %84 = vector.load %arg14[%c88, %c0_49] : memref<128x16xf32, #tpu.memory_space<vmem>>, vector<8x16xf32>
    tpu.vector_store %arg14[%c88, %c0_49], %83 {strides = array<i32>} : memref<128x16xf32, #tpu.memory_space<vmem>>, vector<8x16xf32>,
    %c64_i32_50 = arith.constant 64 : i32
    %85 = arith.addi %68, %c64_i32_50 : i32
    %86 = arith.index_cast %85 : i32 to index
    %c0_51 = arith.constant 0 : index
    %87 = vector.load %arg13[%86, %c0_51] : memref<256x16xf32, #tpu.memory_space<vmem>>, vector<8x16xf32>
    %c96 = arith.constant 96 : index
    %c0_52 = arith.constant 0 : index
    %88 = vector.load %arg14[%c96, %c0_52] : memref<128x16xf32, #tpu.memory_space<vmem>>, vector<8x16xf32>
    tpu.vector_store %arg14[%c96, %c0_52], %87 {strides = array<i32>} : memref<128x16xf32, #tpu.memory_space<vmem>>, vector<8x16xf32>,
    %c80_i32_53 = arith.constant 80 : i32
    %89 = arith.addi %68, %c80_i32_53 : i32
    %90 = arith.index_cast %89 : i32 to index
    %c0_54 = arith.constant 0 : index
    %91 = vector.load %arg13[%90, %c0_54] : memref<256x16xf32, #tpu.memory_space<vmem>>, vector<8x16xf32>
    %c104 = arith.constant 104 : index
    %c0_55 = arith.constant 0 : index
    %92 = vector.load %arg14[%c104, %c0_55] : memref<128x16xf32, #tpu.memory_space<vmem>>, vector<8x16xf32>
    tpu.vector_store %arg14[%c104, %c0_55], %91 {strides = array<i32>} : memref<128x16xf32, #tpu.memory_space<vmem>>, vector<8x16xf32>,
    %c96_i32_56 = arith.constant 96 : i32
    %93 = arith.addi %68, %c96_i32_56 : i32
    %94 = arith.index_cast %93 : i32 to index
    %c0_57 = arith.constant 0 : index
    %95 = vector.load %arg13[%94, %c0_57] : memref<256x16xf32, #tpu.memory_space<vmem>>, vector<8x16xf32>
    %c112 = arith.constant 112 : index
    %c0_58 = arith.constant 0 : index
    %96 = vector.load %arg14[%c112, %c0_58] : memref<128x16xf32, #tpu.memory_space<vmem>>, vector<8x16xf32>
    tpu.vector_store %arg14[%c112, %c0_58], %95 {strides = array<i32>} : memref<128x16xf32, #tpu.memory_space<vmem>>, vector<8x16xf32>,
    %c112_i32_59 = arith.constant 112 : i32
    %97 = arith.addi %68, %c112_i32_59 : i32
    %98 = arith.index_cast %97 : i32 to index
    %c0_60 = arith.constant 0 : index
    %99 = vector.load %arg13[%98, %c0_60] : memref<256x16xf32, #tpu.memory_space<vmem>>, vector<8x16xf32>
    %c120 = arith.constant 120 : index
    %c0_61 = arith.constant 0 : index
    %100 = vector.load %arg14[%c120, %c0_61] : memref<128x16xf32, #tpu.memory_space<vmem>>, vector<8x16xf32>
    tpu.vector_store %arg14[%c120, %c0_61], %99 {strides = array<i32>} : memref<128x16xf32, #tpu.memory_space<vmem>>, vector<8x16xf32>,
    %c0_62 = arith.constant 0 : index
    %c0_63 = arith.constant 0 : index
    %101 = vector.load %arg8[%c0_62, %c0_63] : memref<128x128xf32, #tpu.memory_space<vmem>>, vector<128x128xf32>
    %c0_64 = arith.constant 0 : index
    %c0_65 = arith.constant 0 : index
    %102 = vector.load %arg14[%c0_64, %c0_65] : memref<128x16xf32, #tpu.memory_space<vmem>>, vector<128x16xf32>
    %cst_66 = arith.constant dense<0.000000e+00> : vector<128x16xf32>
    %103 = tpu.matmul %101, %102, %cst_66 {dimension_numbers = #tpu.dot_dimension_numbers<[1], [0], [0], [1], [0, 0, 1, 1], [], []>} : vector<128x128xf32>, vector<128x16xf32>, vector<128x16xf32> -> vector<128x16xf32>
    %c0_67 = arith.constant 0 : index
    %c0_68 = arith.constant 0 : index
    %104 = vector.load %arg9[%c0_67, %c0_68] : memref<16x48xf32, #tpu.memory_space<vmem>>, vector<16x48xf32>
    %cst_69 = arith.constant dense<0.000000e+00> : vector<128x48xf32>
    %105 = tpu.matmul %103, %104, %cst_69 {dimension_numbers = #tpu.dot_dimension_numbers<[1], [0], [0], [1], [0, 0, 1, 1], [], []>} : vector<128x16xf32>, vector<16x48xf32>, vector<128x48xf32> -> vector<128x48xf32>
    %c0_70 = arith.constant 0 : index
    %c0_71 = arith.constant 0 : index
    %106 = vector.load %arg15[%c0_70, %c0_71] : memref<128x48xf32, #tpu.memory_space<vmem>>, vector<128x48xf32>
    tpu.vector_store %arg15[%c0_70, %c0_71], %105 {strides = array<i32>} : memref<128x48xf32, #tpu.memory_space<vmem>>, vector<128x48xf32>,
    %c0_72 = arith.constant 0 : index
    %c0_73 = arith.constant 0 : index
    %107 = vector.load %arg15[%c0_72, %c0_73] : memref<128x48xf32, #tpu.memory_space<vmem>>, vector<64x8xf32>
    %c0_74 = arith.constant 0 : index
    %c16_75 = arith.constant 16 : index
    %108 = vector.load %arg15[%c0_74, %c16_75] : memref<128x48xf32, #tpu.memory_space<vmem>>, vector<64x8xf32>
    %c0_76 = arith.constant 0 : index
    %c32_77 = arith.constant 32 : index
    %109 = vector.load %arg15[%c0_76, %c32_77] : memref<128x48xf32, #tpu.memory_space<vmem>>, vector<64x8xf32>
    %cst_78 = arith.constant dense<0.000000e+00> : vector<64x64xf32>
    %110 = tpu.matmul %107, %108, %cst_78 {dimension_numbers = #tpu.dot_dimension_numbers<[1], [1], [0], [0], [0, 0, 1, 0], [], []>} : vector<64x8xf32>, vector<64x8xf32>, vector<64x64xf32> -> vector<64x64xf32>
    %cst_79 = arith.constant dense<0xFF800000> : vector<64xf32>
    %111 = vector.multi_reduction <maximumf>, %110, %cst_79 [1] : vector<64x64xf32> to vector<64xf32>
    %112 = vector.shape_cast %111 : vector<64xf32> to vector<64x1xf32>
    %113 = vector.broadcast %112 : vector<64x1xf32> to vector<64x64xf32>
    %114 = arith.subf %110, %113 : vector<64x64xf32>
    %115 = math.exp %114 : vector<64x64xf32>
    %cst_80 = arith.constant dense<0.000000e+00> : vector<64xf32>
    %116 = vector.multi_reduction <add>, %115, %cst_80 [1] : vector<64x64xf32> to vector<64xf32>
    %117 = vector.shape_cast %116 : vector<64xf32> to vector<64x1xf32>
    %118 = tpu.reciprocal %117 {approx = true} : vector<64x1xf32> -> vector<64x1xf32>
    %119 = vector.broadcast %118 : vector<64x1xf32> to vector<64x64xf32>
    %120 = arith.mulf %115, %119 : vector<64x64xf32>
    %cst_81 = arith.constant dense<0.000000e+00> : vector<64x8xf32>
    %121 = tpu.matmul %120, %109, %cst_81 {dimension_numbers = #tpu.dot_dimension_numbers<[1], [0], [0], [1], [0, 0, 1, 1], [], []>} : vector<64x64xf32>, vector<64x8xf32>, vector<64x8xf32> -> vector<64x8xf32>
    %c0_82 = arith.constant 0 : index
    %c0_83 = arith.constant 0 : index
    %122 = vector.load %arg16[%c0_82, %c0_83] : memref<128x16xf32, #tpu.memory_space<vmem>>, vector<64x8xf32>
    tpu.vector_store %arg16[%c0_82, %c0_83], %121 {strides = array<i32>} : memref<128x16xf32, #tpu.memory_space<vmem>>, vector<64x8xf32>,
    %c0_84 = arith.constant 0 : index
    %c8_85 = arith.constant 8 : index
    %123 = vector.load %arg15[%c0_84, %c8_85] : memref<128x48xf32, #tpu.memory_space<vmem>>, vector<64x8xf32>
    %c0_86 = arith.constant 0 : index
    %c24_87 = arith.constant 24 : index
    %124 = vector.load %arg15[%c0_86, %c24_87] : memref<128x48xf32, #tpu.memory_space<vmem>>, vector<64x8xf32>
    %c0_88 = arith.constant 0 : index
    %c40_89 = arith.constant 40 : index
    %125 = vector.load %arg15[%c0_88, %c40_89] : memref<128x48xf32, #tpu.memory_space<vmem>>, vector<64x8xf32>
    %cst_90 = arith.constant dense<0.000000e+00> : vector<64x64xf32>
    %126 = tpu.matmul %123, %124, %cst_90 {dimension_numbers = #tpu.dot_dimension_numbers<[1], [1], [0], [0], [0, 0, 1, 0], [], []>} : vector<64x8xf32>, vector<64x8xf32>, vector<64x64xf32> -> vector<64x64xf32>
    %cst_91 = arith.constant dense<0xFF800000> : vector<64xf32>
    %127 = vector.multi_reduction <maximumf>, %126, %cst_91 [1] : vector<64x64xf32> to vector<64xf32>
    %128 = vector.shape_cast %127 : vector<64xf32> to vector<64x1xf32>
    %129 = vector.broadcast %128 : vector<64x1xf32> to vector<64x64xf32>
    %130 = arith.subf %126, %129 : vector<64x64xf32>
    %131 = math.exp %130 : vector<64x64xf32>
    %cst_92 = arith.constant dense<0.000000e+00> : vector<64xf32>
    %132 = vector.multi_reduction <add>, %131, %cst_92 [1] : vector<64x64xf32> to vector<64xf32>
    %133 = vector.shape_cast %132 : vector<64xf32> to vector<64x1xf32>
    %134 = tpu.reciprocal %133 {approx = true} : vector<64x1xf32> -> vector<64x1xf32>
    %135 = vector.broadcast %134 : vector<64x1xf32> to vector<64x64xf32>
    %136 = arith.mulf %131, %135 : vector<64x64xf32>
    %cst_93 = arith.constant dense<0.000000e+00> : vector<64x8xf32>
    %137 = tpu.matmul %136, %125, %cst_93 {dimension_numbers = #tpu.dot_dimension_numbers<[1], [0], [0], [1], [0, 0, 1, 1], [], []>} : vector<64x64xf32>, vector<64x8xf32>, vector<64x8xf32> -> vector<64x8xf32>
    %c0_94 = arith.constant 0 : index
    %c8_95 = arith.constant 8 : index
    %138 = vector.load %arg16[%c0_94, %c8_95] : memref<128x16xf32, #tpu.memory_space<vmem>>, vector<64x8xf32>
    tpu.vector_store %arg16[%c0_94, %c8_95], %137 {strides = array<i32>} : memref<128x16xf32, #tpu.memory_space<vmem>>, vector<64x8xf32>,
    %c64_96 = arith.constant 64 : index
    %c0_97 = arith.constant 0 : index
    %139 = vector.load %arg15[%c64_96, %c0_97] : memref<128x48xf32, #tpu.memory_space<vmem>>, vector<64x8xf32>
    %c64_98 = arith.constant 64 : index
    %c16_99 = arith.constant 16 : index
    %140 = vector.load %arg15[%c64_98, %c16_99] : memref<128x48xf32, #tpu.memory_space<vmem>>, vector<64x8xf32>
    %c64_100 = arith.constant 64 : index
    %c32_101 = arith.constant 32 : index
    %141 = vector.load %arg15[%c64_100, %c32_101] : memref<128x48xf32, #tpu.memory_space<vmem>>, vector<64x8xf32>
    %cst_102 = arith.constant dense<0.000000e+00> : vector<64x64xf32>
    %142 = tpu.matmul %139, %140, %cst_102 {dimension_numbers = #tpu.dot_dimension_numbers<[1], [1], [0], [0], [0, 0, 1, 0], [], []>} : vector<64x8xf32>, vector<64x8xf32>, vector<64x64xf32> -> vector<64x64xf32>
    %cst_103 = arith.constant dense<0xFF800000> : vector<64xf32>
    %143 = vector.multi_reduction <maximumf>, %142, %cst_103 [1] : vector<64x64xf32> to vector<64xf32>
    %144 = vector.shape_cast %143 : vector<64xf32> to vector<64x1xf32>
    %145 = vector.broadcast %144 : vector<64x1xf32> to vector<64x64xf32>
    %146 = arith.subf %142, %145 : vector<64x64xf32>
    %147 = math.exp %146 : vector<64x64xf32>
    %cst_104 = arith.constant dense<0.000000e+00> : vector<64xf32>
    %148 = vector.multi_reduction <add>, %147, %cst_104 [1] : vector<64x64xf32> to vector<64xf32>
    %149 = vector.shape_cast %148 : vector<64xf32> to vector<64x1xf32>
    %150 = tpu.reciprocal %149 {approx = true} : vector<64x1xf32> -> vector<64x1xf32>
    %151 = vector.broadcast %150 : vector<64x1xf32> to vector<64x64xf32>
    %152 = arith.mulf %147, %151 : vector<64x64xf32>
    %cst_105 = arith.constant dense<0.000000e+00> : vector<64x8xf32>
    %153 = tpu.matmul %152, %141, %cst_105 {dimension_numbers = #tpu.dot_dimension_numbers<[1], [0], [0], [1], [0, 0, 1, 1], [], []>} : vector<64x64xf32>, vector<64x8xf32>, vector<64x8xf32> -> vector<64x8xf32>
    %c64_106 = arith.constant 64 : index
    %c0_107 = arith.constant 0 : index
    %154 = vector.load %arg16[%c64_106, %c0_107] : memref<128x16xf32, #tpu.memory_space<vmem>>, vector<64x8xf32>
    tpu.vector_store %arg16[%c64_106, %c0_107], %153 {strides = array<i32>} : memref<128x16xf32, #tpu.memory_space<vmem>>, vector<64x8xf32>,
    %c64_108 = arith.constant 64 : index
    %c8_109 = arith.constant 8 : index
    %155 = vector.load %arg15[%c64_108, %c8_109] : memref<128x48xf32, #tpu.memory_space<vmem>>, vector<64x8xf32>
    %c64_110 = arith.constant 64 : index
    %c24_111 = arith.constant 24 : index
    %156 = vector.load %arg15[%c64_110, %c24_111] : memref<128x48xf32, #tpu.memory_space<vmem>>, vector<64x8xf32>
    %c64_112 = arith.constant 64 : index
    %c40_113 = arith.constant 40 : index
    %157 = vector.load %arg15[%c64_112, %c40_113] : memref<128x48xf32, #tpu.memory_space<vmem>>, vector<64x8xf32>
    %cst_114 = arith.constant dense<0.000000e+00> : vector<64x64xf32>
    %158 = tpu.matmul %155, %156, %cst_114 {dimension_numbers = #tpu.dot_dimension_numbers<[1], [1], [0], [0], [0, 0, 1, 0], [], []>} : vector<64x8xf32>, vector<64x8xf32>, vector<64x64xf32> -> vector<64x64xf32>
    %cst_115 = arith.constant dense<0xFF800000> : vector<64xf32>
    %159 = vector.multi_reduction <maximumf>, %158, %cst_115 [1] : vector<64x64xf32> to vector<64xf32>
    %160 = vector.shape_cast %159 : vector<64xf32> to vector<64x1xf32>
    %161 = vector.broadcast %160 : vector<64x1xf32> to vector<64x64xf32>
    %162 = arith.subf %158, %161 : vector<64x64xf32>
    %163 = math.exp %162 : vector<64x64xf32>
    %cst_116 = arith.constant dense<0.000000e+00> : vector<64xf32>
    %164 = vector.multi_reduction <add>, %163, %cst_116 [1] : vector<64x64xf32> to vector<64xf32>
    %165 = vector.shape_cast %164 : vector<64xf32> to vector<64x1xf32>
    %166 = tpu.reciprocal %165 {approx = true} : vector<64x1xf32> -> vector<64x1xf32>
    %167 = vector.broadcast %166 : vector<64x1xf32> to vector<64x64xf32>
    %168 = arith.mulf %163, %167 : vector<64x64xf32>
    %cst_117 = arith.constant dense<0.000000e+00> : vector<64x8xf32>
    %169 = tpu.matmul %168, %157, %cst_117 {dimension_numbers = #tpu.dot_dimension_numbers<[1], [0], [0], [1], [0, 0, 1, 1], [], []>} : vector<64x64xf32>, vector<64x8xf32>, vector<64x8xf32> -> vector<64x8xf32>
    %c64_118 = arith.constant 64 : index
    %c8_119 = arith.constant 8 : index
    %170 = vector.load %arg16[%c64_118, %c8_119] : memref<128x16xf32, #tpu.memory_space<vmem>>, vector<64x8xf32>
    tpu.vector_store %arg16[%c64_118, %c8_119], %169 {strides = array<i32>} : memref<128x16xf32, #tpu.memory_space<vmem>>, vector<64x8xf32>,
    %c0_120 = arith.constant 0 : index
    %c0_121 = arith.constant 0 : index
    %171 = vector.load %arg16[%c0_120, %c0_121] : memref<128x16xf32, #tpu.memory_space<vmem>>, vector<128x16xf32>
    %c0_122 = arith.constant 0 : index
    %c0_123 = arith.constant 0 : index
    %172 = vector.load %arg10[%c0_122, %c0_123] : memref<16x16xf32, #tpu.memory_space<vmem>>, vector<16x16xf32>
    %cst_124 = arith.constant dense<0.000000e+00> : vector<128x16xf32>
    %173 = tpu.matmul %171, %172, %cst_124 {dimension_numbers = #tpu.dot_dimension_numbers<[1], [0], [0], [1], [0, 0, 1, 1], [], []>} : vector<128x16xf32>, vector<16x16xf32>, vector<128x16xf32> -> vector<128x16xf32>
    %c0_125 = arith.constant 0 : index
    %c0_126 = arith.constant 0 : index
    %174 = vector.load %arg11[%c0_125, %c0_126] : memref<1x16xf32, #tpu.memory_space<vmem>>, vector<1x16xf32>
    %175 = vector.broadcast %174 : vector<1x16xf32> to vector<128x16xf32>
    %176 = arith.addf %173, %175 : vector<128x16xf32>
    %177 = arith.index_cast %arg0 : i32 to index
    %c0_127 = arith.constant 0 : index
    %178 = memref.load %arg1[%177, %c0_127] : memref<2x2xi32, #tpu.memory_space<smem>>
    %179 = vector.extract_strided_slice %176 {offsets = [0, 0], sizes = [64, 16], strides = [1, 1]} : vector<128x16xf32> to vector<64x16xf32>
    %180 = arith.index_cast %arg0 : i32 to index
    %c0_128 = arith.constant 0 : index
    %181 = memref.load %arg2[%180, %c0_128] : memref<2x2xi32, #tpu.memory_space<smem>>
    %c0_i32_129 = arith.constant 0 : i32
    %182 = arith.cmpi sgt, %181, %c0_i32_129 : i32
    %183 = arith.extui %182 : i1 to i32
    %c0_i32_130 = arith.constant 0 : i32
    %184 = arith.cmpi ne, %183, %c0_i32_130 : i32
    scf.if %184 {
      %c0_i32_145 = arith.constant 0 : i32
      %203 = arith.addi %178, %c0_i32_145 : i32
      %204 = arith.index_cast %203 : i32 to index
      %c0_146 = arith.constant 0 : index
      %205 = vector.load %arg17[%204, %c0_146] : memref<256x16xf32, #tpu.memory_space<vmem>>, vector<8x16xf32>
      %206 = vector.extract_strided_slice %179 {offsets = [0, 0], sizes = [8, 16], strides = [1, 1]} : vector<64x16xf32> to vector<8x16xf32>
      %207 = arith.addf %205, %206 : vector<8x16xf32>
      %208 = arith.index_cast %203 : i32 to index
      %c0_147 = arith.constant 0 : index
      %209 = vector.load %arg17[%208, %c0_147] : memref<256x16xf32, #tpu.memory_space<vmem>>, vector<8x16xf32>
      tpu.vector_store %arg17[%208, %c0_147], %207 {strides = array<i32>} : memref<256x16xf32, #tpu.memory_space<vmem>>, vector<8x16xf32>,
      %c16_i32_148 = arith.constant 16 : i32
      %210 = arith.addi %178, %c16_i32_148 : i32
      %211 = arith.index_cast %210 : i32 to index
      %c0_149 = arith.constant 0 : index
      %212 = vector.load %arg17[%211, %c0_149] : memref<256x16xf32, #tpu.memory_space<vmem>>, vector<8x16xf32>
      %213 = vector.extract_strided_slice %179 {offsets = [8, 0], sizes = [8, 16], strides = [1, 1]} : vector<64x16xf32> to vector<8x16xf32>
      %214 = arith.addf %212, %213 : vector<8x16xf32>
      %215 = arith.index_cast %210 : i32 to index
      %c0_150 = arith.constant 0 : index
      %216 = vector.load %arg17[%215, %c0_150] : memref<256x16xf32, #tpu.memory_space<vmem>>, vector<8x16xf32>
      tpu.vector_store %arg17[%215, %c0_150], %214 {strides = array<i32>} : memref<256x16xf32, #tpu.memory_space<vmem>>, vector<8x16xf32>,
      %c32_i32_151 = arith.constant 32 : i32
      %217 = arith.addi %178, %c32_i32_151 : i32
      %218 = arith.index_cast %217 : i32 to index
      %c0_152 = arith.constant 0 : index
      %219 = vector.load %arg17[%218, %c0_152] : memref<256x16xf32, #tpu.memory_space<vmem>>, vector<8x16xf32>
      %220 = vector.extract_strided_slice %179 {offsets = [16, 0], sizes = [8, 16], strides = [1, 1]} : vector<64x16xf32> to vector<8x16xf32>
      %221 = arith.addf %219, %220 : vector<8x16xf32>
      %222 = arith.index_cast %217 : i32 to index
      %c0_153 = arith.constant 0 : index
      %223 = vector.load %arg17[%222, %c0_153] : memref<256x16xf32, #tpu.memory_space<vmem>>, vector<8x16xf32>
      tpu.vector_store %arg17[%222, %c0_153], %221 {strides = array<i32>} : memref<256x16xf32, #tpu.memory_space<vmem>>, vector<8x16xf32>,
      %c48_i32_154 = arith.constant 48 : i32
      %224 = arith.addi %178, %c48_i32_154 : i32
      %225 = arith.index_cast %224 : i32 to index
      %c0_155 = arith.constant 0 : index
      %226 = vector.load %arg17[%225, %c0_155] : memref<256x16xf32, #tpu.memory_space<vmem>>, vector<8x16xf32>
      %227 = vector.extract_strided_slice %179 {offsets = [24, 0], sizes = [8, 16], strides = [1, 1]} : vector<64x16xf32> to vector<8x16xf32>
      %228 = arith.addf %226, %227 : vector<8x16xf32>
      %229 = arith.index_cast %224 : i32 to index
      %c0_156 = arith.constant 0 : index
      %230 = vector.load %arg17[%229, %c0_156] : memref<256x16xf32, #tpu.memory_space<vmem>>, vector<8x16xf32>
      tpu.vector_store %arg17[%229, %c0_156], %228 {strides = array<i32>} : memref<256x16xf32, #tpu.memory_space<vmem>>, vector<8x16xf32>,
      %c64_i32_157 = arith.constant 64 : i32
      %231 = arith.addi %178, %c64_i32_157 : i32
      %232 = arith.index_cast %231 : i32 to index
      %c0_158 = arith.constant 0 : index
      %233 = vector.load %arg17[%232, %c0_158] : memref<256x16xf32, #tpu.memory_space<vmem>>, vector<8x16xf32>
      %234 = vector.extract_strided_slice %179 {offsets = [32, 0], sizes = [8, 16], strides = [1, 1]} : vector<64x16xf32> to vector<8x16xf32>
      %235 = arith.addf %233, %234 : vector<8x16xf32>
      %236 = arith.index_cast %231 : i32 to index
      %c0_159 = arith.constant 0 : index
      %237 = vector.load %arg17[%236, %c0_159] : memref<256x16xf32, #tpu.memory_space<vmem>>, vector<8x16xf32>
      tpu.vector_store %arg17[%236, %c0_159], %235 {strides = array<i32>} : memref<256x16xf32, #tpu.memory_space<vmem>>, vector<8x16xf32>,
      %c80_i32_160 = arith.constant 80 : i32
      %238 = arith.addi %178, %c80_i32_160 : i32
      %239 = arith.index_cast %238 : i32 to index
      %c0_161 = arith.constant 0 : index
      %240 = vector.load %arg17[%239, %c0_161] : memref<256x16xf32, #tpu.memory_space<vmem>>, vector<8x16xf32>
      %241 = vector.extract_strided_slice %179 {offsets = [40, 0], sizes = [8, 16], strides = [1, 1]} : vector<64x16xf32> to vector<8x16xf32>
      %242 = arith.addf %240, %241 : vector<8x16xf32>
      %243 = arith.index_cast %238 : i32 to index
      %c0_162 = arith.constant 0 : index
      %244 = vector.load %arg17[%243, %c0_162] : memref<256x16xf32, #tpu.memory_space<vmem>>, vector<8x16xf32>
      tpu.vector_store %arg17[%243, %c0_162], %242 {strides = array<i32>} : memref<256x16xf32, #tpu.memory_space<vmem>>, vector<8x16xf32>,
      %c96_i32_163 = arith.constant 96 : i32
      %245 = arith.addi %178, %c96_i32_163 : i32
      %246 = arith.index_cast %245 : i32 to index
      %c0_164 = arith.constant 0 : index
      %247 = vector.load %arg17[%246, %c0_164] : memref<256x16xf32, #tpu.memory_space<vmem>>, vector<8x16xf32>
      %248 = vector.extract_strided_slice %179 {offsets = [48, 0], sizes = [8, 16], strides = [1, 1]} : vector<64x16xf32> to vector<8x16xf32>
      %249 = arith.addf %247, %248 : vector<8x16xf32>
      %250 = arith.index_cast %245 : i32 to index
      %c0_165 = arith.constant 0 : index
      %251 = vector.load %arg17[%250, %c0_165] : memref<256x16xf32, #tpu.memory_space<vmem>>, vector<8x16xf32>
      tpu.vector_store %arg17[%250, %c0_165], %249 {strides = array<i32>} : memref<256x16xf32, #tpu.memory_space<vmem>>, vector<8x16xf32>,
      %c112_i32_166 = arith.constant 112 : i32
      %252 = arith.addi %178, %c112_i32_166 : i32
      %253 = arith.index_cast %252 : i32 to index
      %c0_167 = arith.constant 0 : index
      %254 = vector.load %arg17[%253, %c0_167] : memref<256x16xf32, #tpu.memory_space<vmem>>, vector<8x16xf32>
      %255 = vector.extract_strided_slice %179 {offsets = [56, 0], sizes = [8, 16], strides = [1, 1]} : vector<64x16xf32> to vector<8x16xf32>
      %256 = arith.addf %254, %255 : vector<8x16xf32>
      %257 = arith.index_cast %252 : i32 to index
      %c0_168 = arith.constant 0 : index
      %258 = vector.load %arg17[%257, %c0_168] : memref<256x16xf32, #tpu.memory_space<vmem>>, vector<8x16xf32>
      tpu.vector_store %arg17[%257, %c0_168], %256 {strides = array<i32>} : memref<256x16xf32, #tpu.memory_space<vmem>>, vector<8x16xf32>,
    } else {
    }
    %185 = arith.index_cast %arg0 : i32 to index
    %c1_131 = arith.constant 1 : index
    %186 = memref.load %arg1[%185, %c1_131] : memref<2x2xi32, #tpu.memory_space<smem>>
    %187 = vector.extract_strided_slice %176 {offsets = [64, 0], sizes = [64, 16], strides = [1, 1]} : vector<128x16xf32> to vector<64x16xf32>
    %188 = arith.index_cast %arg0 : i32 to index
    %c1_132 = arith.constant 1 : index
    %189 = memref.load %arg2[%188, %c1_132] : memref<2x2xi32, #tpu.memory_space<smem>>
    %c0_i32_133 = arith.constant 0 : i32
    %190 = arith.cmpi sgt, %189, %c0_i32_133 : i32
    %191 = arith.extui %190 : i1 to i32
    %c0_i32_134 = arith.constant 0 : i32
    %192 = arith.cmpi ne, %191, %c0_i32_134 : i32
    scf.if %192 {
      %c0_i32_145 = arith.constant 0 : i32
      %203 = arith.addi %186, %c0_i32_145 : i32
      %204 = arith.index_cast %203 : i32 to index
      %c0_146 = arith.constant 0 : index
      %205 = vector.load %arg17[%204, %c0_146] : memref<256x16xf32, #tpu.memory_space<vmem>>, vector<8x16xf32>
      %206 = vector.extract_strided_slice %187 {offsets = [0, 0], sizes = [8, 16], strides = [1, 1]} : vector<64x16xf32> to vector<8x16xf32>
      %207 = arith.addf %205, %206 : vector<8x16xf32>
      %208 = arith.index_cast %203 : i32 to index
      %c0_147 = arith.constant 0 : index
      %209 = vector.load %arg17[%208, %c0_147] : memref<256x16xf32, #tpu.memory_space<vmem>>, vector<8x16xf32>
      tpu.vector_store %arg17[%208, %c0_147], %207 {strides = array<i32>} : memref<256x16xf32, #tpu.memory_space<vmem>>, vector<8x16xf32>,
      %c16_i32_148 = arith.constant 16 : i32
      %210 = arith.addi %186, %c16_i32_148 : i32
      %211 = arith.index_cast %210 : i32 to index
      %c0_149 = arith.constant 0 : index
      %212 = vector.load %arg17[%211, %c0_149] : memref<256x16xf32, #tpu.memory_space<vmem>>, vector<8x16xf32>
      %213 = vector.extract_strided_slice %187 {offsets = [8, 0], sizes = [8, 16], strides = [1, 1]} : vector<64x16xf32> to vector<8x16xf32>
      %214 = arith.addf %212, %213 : vector<8x16xf32>
      %215 = arith.index_cast %210 : i32 to index
      %c0_150 = arith.constant 0 : index
      %216 = vector.load %arg17[%215, %c0_150] : memref<256x16xf32, #tpu.memory_space<vmem>>, vector<8x16xf32>
      tpu.vector_store %arg17[%215, %c0_150], %214 {strides = array<i32>} : memref<256x16xf32, #tpu.memory_space<vmem>>, vector<8x16xf32>,
      %c32_i32_151 = arith.constant 32 : i32
      %217 = arith.addi %186, %c32_i32_151 : i32
      %218 = arith.index_cast %217 : i32 to index
      %c0_152 = arith.constant 0 : index
      %219 = vector.load %arg17[%218, %c0_152] : memref<256x16xf32, #tpu.memory_space<vmem>>, vector<8x16xf32>
      %220 = vector.extract_strided_slice %187 {offsets = [16, 0], sizes = [8, 16], strides = [1, 1]} : vector<64x16xf32> to vector<8x16xf32>
      %221 = arith.addf %219, %220 : vector<8x16xf32>
      %222 = arith.index_cast %217 : i32 to index
      %c0_153 = arith.constant 0 : index
      %223 = vector.load %arg17[%222, %c0_153] : memref<256x16xf32, #tpu.memory_space<vmem>>, vector<8x16xf32>
      tpu.vector_store %arg17[%222, %c0_153], %221 {strides = array<i32>} : memref<256x16xf32, #tpu.memory_space<vmem>>, vector<8x16xf32>,
      %c48_i32_154 = arith.constant 48 : i32
      %224 = arith.addi %186, %c48_i32_154 : i32
      %225 = arith.index_cast %224 : i32 to index
      %c0_155 = arith.constant 0 : index
      %226 = vector.load %arg17[%225, %c0_155] : memref<256x16xf32, #tpu.memory_space<vmem>>, vector<8x16xf32>
      %227 = vector.extract_strided_slice %187 {offsets = [24, 0], sizes = [8, 16], strides = [1, 1]} : vector<64x16xf32> to vector<8x16xf32>
      %228 = arith.addf %226, %227 : vector<8x16xf32>
      %229 = arith.index_cast %224 : i32 to index
      %c0_156 = arith.constant 0 : index
      %230 = vector.load %arg17[%229, %c0_156] : memref<256x16xf32, #tpu.memory_space<vmem>>, vector<8x16xf32>
      tpu.vector_store %arg17[%229, %c0_156], %228 {strides = array<i32>} : memref<256x16xf32, #tpu.memory_space<vmem>>, vector<8x16xf32>,
      %c64_i32_157 = arith.constant 64 : i32
      %231 = arith.addi %186, %c64_i32_157 : i32
      %232 = arith.index_cast %231 : i32 to index
      %c0_158 = arith.constant 0 : index
      %233 = vector.load %arg17[%232, %c0_158] : memref<256x16xf32, #tpu.memory_space<vmem>>, vector<8x16xf32>
      %234 = vector.extract_strided_slice %187 {offsets = [32, 0], sizes = [8, 16], strides = [1, 1]} : vector<64x16xf32> to vector<8x16xf32>
      %235 = arith.addf %233, %234 : vector<8x16xf32>
      %236 = arith.index_cast %231 : i32 to index
      %c0_159 = arith.constant 0 : index
      %237 = vector.load %arg17[%236, %c0_159] : memref<256x16xf32, #tpu.memory_space<vmem>>, vector<8x16xf32>
      tpu.vector_store %arg17[%236, %c0_159], %235 {strides = array<i32>} : memref<256x16xf32, #tpu.memory_space<vmem>>, vector<8x16xf32>,
      %c80_i32_160 = arith.constant 80 : i32
      %238 = arith.addi %186, %c80_i32_160 : i32
      %239 = arith.index_cast %238 : i32 to index
      %c0_161 = arith.constant 0 : index
      %240 = vector.load %arg17[%239, %c0_161] : memref<256x16xf32, #tpu.memory_space<vmem>>, vector<8x16xf32>
      %241 = vector.extract_strided_slice %187 {offsets = [40, 0], sizes = [8, 16], strides = [1, 1]} : vector<64x16xf32> to vector<8x16xf32>
      %242 = arith.addf %240, %241 : vector<8x16xf32>
      %243 = arith.index_cast %238 : i32 to index
      %c0_162 = arith.constant 0 : index
      %244 = vector.load %arg17[%243, %c0_162] : memref<256x16xf32, #tpu.memory_space<vmem>>, vector<8x16xf32>
      tpu.vector_store %arg17[%243, %c0_162], %242 {strides = array<i32>} : memref<256x16xf32, #tpu.memory_space<vmem>>, vector<8x16xf32>,
      %c96_i32_163 = arith.constant 96 : i32
      %245 = arith.addi %186, %c96_i32_163 : i32
      %246 = arith.index_cast %245 : i32 to index
      %c0_164 = arith.constant 0 : index
      %247 = vector.load %arg17[%246, %c0_164] : memref<256x16xf32, #tpu.memory_space<vmem>>, vector<8x16xf32>
      %248 = vector.extract_strided_slice %187 {offsets = [48, 0], sizes = [8, 16], strides = [1, 1]} : vector<64x16xf32> to vector<8x16xf32>
      %249 = arith.addf %247, %248 : vector<8x16xf32>
      %250 = arith.index_cast %245 : i32 to index
      %c0_165 = arith.constant 0 : index
      %251 = vector.load %arg17[%250, %c0_165] : memref<256x16xf32, #tpu.memory_space<vmem>>, vector<8x16xf32>
      tpu.vector_store %arg17[%250, %c0_165], %249 {strides = array<i32>} : memref<256x16xf32, #tpu.memory_space<vmem>>, vector<8x16xf32>,
      %c112_i32_166 = arith.constant 112 : i32
      %252 = arith.addi %186, %c112_i32_166 : i32
      %253 = arith.index_cast %252 : i32 to index
      %c0_167 = arith.constant 0 : index
      %254 = vector.load %arg17[%253, %c0_167] : memref<256x16xf32, #tpu.memory_space<vmem>>, vector<8x16xf32>
      %255 = vector.extract_strided_slice %187 {offsets = [56, 0], sizes = [8, 16], strides = [1, 1]} : vector<64x16xf32> to vector<8x16xf32>
      %256 = arith.addf %254, %255 : vector<8x16xf32>
      %257 = arith.index_cast %252 : i32 to index
      %c0_168 = arith.constant 0 : index
      %258 = vector.load %arg17[%257, %c0_168] : memref<256x16xf32, #tpu.memory_space<vmem>>, vector<8x16xf32>
      tpu.vector_store %arg17[%257, %c0_168], %256 {strides = array<i32>} : memref<256x16xf32, #tpu.memory_space<vmem>>, vector<8x16xf32>,
    } else {
    }
    %c0_135 = arith.constant 0 : index
    %c0_136 = arith.constant 0 : index
    %193 = vector.load %arg13[%c0_135, %c0_136] : memref<256x16xf32, #tpu.memory_space<vmem>>, vector<256x16xf32>
    %c0_137 = arith.constant 0 : index
    %c0_138 = arith.constant 0 : index
    %194 = vector.load %arg17[%c0_137, %c0_138] : memref<256x16xf32, #tpu.memory_space<vmem>>, vector<256x16xf32>
    %c0_139 = arith.constant 0 : index
    %c0_140 = arith.constant 0 : index
    %c0_141 = arith.constant 0 : index
    %195 = vector.load %arg4[%c0_139, %c0_140, %c0_141] : memref<1x256x1xf32, #tpu.memory_space<vmem>>, vector<1x256x1xf32>
    %196 = vector.shape_cast %195 : vector<1x256x1xf32> to vector<256x1xf32>
    %197 = vector.broadcast %196 : vector<256x1xf32> to vector<256x16xf32>
    %198 = arith.mulf %194, %197 : vector<256x16xf32>
    %199 = arith.addf %193, %198 : vector<256x16xf32>
    %c0_142 = arith.constant 0 : index
    %c0_143 = arith.constant 0 : index
    %c0_144 = arith.constant 0 : index
    %200 = vector.load %arg12[%c0_142, %c0_143, %c0_144] : memref<1x256x16xf32, #tpu.memory_space<vmem>>, vector<1x256x16xf32>
    %201 = vector.shape_cast %200 : vector<1x256x16xf32> to vector<256x16xf32>
    %202 = vector.shape_cast %199 : vector<256x16xf32> to vector<1x256x16xf32>
    tpu.vector_store %arg12[%c0_142, %c0_143, %c0_144], %202 {strides = array<i32>} : memref<1x256x16xf32, #tpu.memory_space<vmem>>, vector<1x256x16xf32>,
    return
  }
  func.func @transform_0(%arg0: i32, %arg1: memref<2x2xi32, #tpu.memory_space<smem>>, %arg2: memref<2x2xi32, #tpu.memory_space<smem>>) -> (i32, i32, i32) {
    %c0_i32 = arith.constant 0 : i32
    %c0_i32_0 = arith.constant 0 : i32
    %c0_i32_1 = arith.constant 0 : i32
    return %arg0, %c0_i32, %c0_i32_0 : i32, i32, i32
  }
  func.func @transform_1(%arg0: i32, %arg1: memref<2x2xi32, #tpu.memory_space<smem>>, %arg2: memref<2x2xi32, #tpu.memory_space<smem>>) -> (i32, i32, i32) {
    %c0_i32 = arith.constant 0 : i32
    %c0_i32_0 = arith.constant 0 : i32
    %c0_i32_1 = arith.constant 0 : i32
    return %arg0, %c0_i32, %c0_i32_0 : i32, i32, i32
  }
  func.func @transform_2(%arg0: i32, %arg1: memref<2x2xi32, #tpu.memory_space<smem>>, %arg2: memref<2x2xi32, #tpu.memory_space<smem>>) -> (i32, i32) {
    %c0_i32 = arith.constant 0 : i32
    %c0_i32_0 = arith.constant 0 : i32
    %c0_i32_1 = arith.constant 0 : i32
    return %c0_i32, %c0_i32_0 : i32, i32
  }
  func.func @transform_3(%arg0: i32, %arg1: memref<2x2xi32, #tpu.memory_space<smem>>, %arg2: memref<2x2xi32, #tpu.memory_space<smem>>) -> (i32, i32) {
    %c0_i32 = arith.constant 0 : i32
    %c0_i32_0 = arith.constant 0 : i32
    %c0_i32_1 = arith.constant 0 : i32
    return %c0_i32, %c0_i32_0 : i32, i32
  }
  func.func @transform_4(%arg0: i32, %arg1: memref<2x2xi32, #tpu.memory_space<smem>>, %arg2: memref<2x2xi32, #tpu.memory_space<smem>>) -> (i32, i32) {
    %c0_i32 = arith.constant 0 : i32
    %c0_i32_0 = arith.constant 0 : i32
    %c0_i32_1 = arith.constant 0 : i32
    return %c0_i32, %c0_i32_0 : i32, i32
  }
  func.func @transform_5(%arg0: i32, %arg1: memref<2x2xi32, #tpu.memory_space<smem>>, %arg2: memref<2x2xi32, #tpu.memory_space<smem>>) -> (i32, i32) {
    %c0_i32 = arith.constant 0 : i32
    %c0_i32_0 = arith.constant 0 : i32
    %c0_i32_1 = arith.constant 0 : i32
    return %c0_i32, %c0_i32_0 : i32, i32
  }
  func.func @transform_6(%arg0: i32, %arg1: memref<2x2xi32, #tpu.memory_space<smem>>, %arg2: memref<2x2xi32, #tpu.memory_space<smem>>) -> (i32, i32) {
    %c0_i32 = arith.constant 0 : i32
    %c0_i32_0 = arith.constant 0 : i32
    %c0_i32_1 = arith.constant 0 : i32
    return %c0_i32, %c0_i32_0 : i32, i32
  }
  func.func @transform_7(%arg0: i32, %arg1: memref<2x2xi32, #tpu.memory_space<smem>>, %arg2: memref<2x2xi32, #tpu.memory_space<smem>>) -> (i32, i32) {
    %c0_i32 = arith.constant 0 : i32
    %c0_i32_0 = arith.constant 0 : i32
    %c0_i32_1 = arith.constant 0 : i32
    return %c0_i32, %c0_i32_0 : i32, i32
  }
  func.func @transform_8(%arg0: i32, %arg1: memref<2x2xi32, #tpu.memory_space<smem>>, %arg2: memref<2x2xi32, #tpu.memory_space<smem>>) -> (i32, i32) {
    %c0_i32 = arith.constant 0 : i32
    %c0_i32_0 = arith.constant 0 : i32
    %c0_i32_1 = arith.constant 0 : i32
    return %c0_i32, %c0_i32_0 : i32, i32
  }
  func.func @transform_9(%arg0: i32, %arg1: memref<2x2xi32, #tpu.memory_space<smem>>, %arg2: memref<2x2xi32, #tpu.memory_space<smem>>) -> (i32, i32, i32) {
    %c0_i32 = arith.constant 0 : i32
    %c0_i32_0 = arith.constant 0 : i32
    %c0_i32_1 = arith.constant 0 : i32
    return %arg0, %c0_i32, %c0_i32_0 : i32, i32, i32
  }
}

</mosaic_0001>

<bundles_post_ra>
// kernel: custom-call.4
= control target key start
LH: loop header
LB: loop body
LE: loop exit
PB: predicated region body
PF: predicated region fallthrough
CT: control target
= control target key end

     0   :  { %s6_s0 = inlined_call_operand.vmem [shape: pred[2,9], index: 0, kind: output, shape index: {}]  }

// kernel: neg.2
= control target key start
LH: loop header
LB: loop body
LE: loop exit
PB: predicated region body
PF: predicated region fallthrough
CT: control target
= control target key end

     0   :  { %s40_s0 = inlined_call_operand.vmem [shape: f32[2,8,8], index: 0, kind: input, shape index: {}]   ;;  %s41_s1 = inlined_call_operand.vmem [shape: f32[2,8,8], index: 1, kind: output, shape index: {}]  }
   0x1   :  { %v2_v0 = vld [vmem:[%s40_s0] sm:$0xff]  ;;  %v16_v1 = vld [vmem:[%s40_s0 + $0x8] sm:$0xff] }
   0x2   :  { %v5_v2 = vxor.u32 2147483648, %v2_v0  ;;  %v12_v3 = vxor.u32 2147483648, %v16_v1 }
   0x4   :  { %7 = vst [vmem:[%s41_s1] sm:$0xff] %v5_v2  ;;  %17 = vst [vmem:[%s41_s1 + $0x8] sm:$0xff] %v12_v3 }

// kernel: forward.1
= control target key start
LH: loop header
LB: loop body
LE: loop exit
PB: predicated region body
PF: predicated region fallthrough
CT: control target
= control target key end

     0   :  { %s7245_s0 = inlined_call_operand.vmem [shape: s32[2,2], index: 0, kind: input, shape index: {}]   ;;  %s7246_s2 = inlined_call_operand.vmem [shape: f32[2,256,4], index: 2, kind: input, shape index: {}]   ;;  %s7247_s3 = inlined_call_operand.vmem [shape: f32[2,256,1], index: 3, kind: input, shape index: {}]   ;;  %s7248_s4 = inlined_call_operand.vmem [shape: f32[4,16], index: 4, kind: input, shape index: {}]   ;;  %s7249_s5 = inlined_call_operand.vmem [shape: f32[256,16], index: 5, kind: input, shape index: {}]   ;;  %s7250_s6 = inlined_call_operand.vmem [shape: f32[2,16], index: 6, kind: input, shape index: {}]   ;;  %s7251_s7 = inlined_call_operand.vmem [shape: f32[128,128], index: 7, kind: input, shape index: {}]   ;;  %s7252_s8 = inlined_call_operand.vmem [shape: f32[16,48], index: 8, kind: input, shape index: {}]   ;;  %s7253_s9 = inlined_call_operand.vmem [shape: f32[16,16], index: 9, kind: input, shape index: {}]   ;;  %s7254_s10 = inlined_call_operand.vmem [shape: f32[1,16], index: 10, kind: input, shape index: {}]   ;;  %s7255_s11 = inlined_call_operand.vmem [shape: f32[2,256,16], index: 11, kind: output, shape index: {}]   ;;  %s7256_s1 = inlined_call_operand.vmem [shape: s32[2,2], index: 1, kind: input, shape index: {}]  }
   0x1   :  { %s16_s19 = sshll.u32 %s7245_s0, 4  ;;  %s20_s22 = sshll.u32 %s7256_s1, 4  ;;  %s17_s19 = int_to_ptr.vmem [resolvable:$true] %s16_s19  ;;  %s21_s22 = int_to_ptr.vmem [resolvable:$true] %s20_s22 }
   0x2   :  { %s5385_s23 = scalar_lea.vmem %s17_s19, 32  ;;  %p5390_p1 = scmp.lt.s32.totalorder %s17_s19, %s17_s19 }
   0x3   :  { %p5386_p0 = scmp.ne.s32.totalorder %s17_s19, %s5385_s23  ;;  %p5391_p2 = scmp.lt.s32.totalorder %s5385_s23, %s5385_s23 }
   0x5   :  { %p5392_p3 = por %p5391_p2, %p5390_p1 }
   0x7   :  { %p5393_p4 = pnand %p5392_p3, %p5386_p0 }
   0x9   :  { %5396 = shalt.err (!%p5393_p4)  }
   0xa   :  { %s5419_s24 = smov [#allocation8]   ;;  %s5397_s25 = scalar_lea.vmem %s21_s22, 32 }
   0xb   :  { %19 = dma.vmem_to_smem %s17_s19, 32, %s5419_s24, [#allocation7] }
   0xc   :  { %p5398_p5 = scmp.ne.s32.totalorder %s21_s22, %s5397_s25  ;;  %p5402_p6 = scmp.lt.s32.totalorder %s21_s22, %s21_s22 }
   0xd   :  { %p5403_p7 = scmp.lt.s32.totalorder %s5397_s25, %s5397_s25 }
   0xf   :  { %p5404_p8 = por %p5403_p7, %p5402_p6 }
  0x11   :  { %p5405_p9 = pnand %p5404_p8, %p5398_p5 }
  0x13   :  { %5408 = shalt.err (!%p5405_p9)  }
  0x14   :  { %s5420_s0 = smov [#allocation9]  }
  0x15   :  { %23 = dma.vmem_to_smem %s21_s22, 32, %s5420_s0, [#allocation7] }
  0x16   :  { %5413 = dma.done.wait [#allocation7], 64 }
  0x17   :  { %5414 = vsyncadd [#allocation7], 4294967232 }
  0x18   :  { %25 = sfence }
  0x19   :  { %s5495_s1 = smov 0  }
  0x1a LB: > { %s5501_s26 = sadd.s32 4294967295, %s5417_s1   ;;  %p4329_p10 = scmp.ge.s32.totalorder %s5417_s1, 1  ;;  %s5417_s1 = sphi %s5495_s1, %s31_s1  }
  0x1b   : > { %p309_p11 = scmp.lt.s32.totalorder %s5417_s1, 3 }
  0x1d   : > { %p310_p12 = pnand %p4329_p10, %p309_p11 }
  0x1f   : > { %313 = sbr.rel (%p310_p12) target bundleno = 3136 (0xc40), region = 56 }
  0x24   : > { %v397_v0 = vld [vmem:[%s7248_s4] sm:$0xf]  ;;  %vm527_vm0 = vcmask 1043456   ;;  %p350_p13 = scmp.lt.s32.totalorder %s5501_s26, 1  ;;  %vm430_vm1 = vcmask 31744   ;;  %v399_v33 = vld [vmem:[%s7249_s5 + $0x8] sm:$0xff] }
  0x25   : > { %4779 = vmatprep.subr.msk.mxu0 %vm527_vm0, %v397_v0  ;;  %v398_v35 = vld [vmem:[%s7249_s5] sm:$0xff]  ;;  %vm756_vm2 = vcmask 130048   ;;  %v401_v38 = vld [vmem:[%s7249_s5 + $0x18] sm:$0xff]  ;;  %v400_v42 = vld [vmem:[%s7249_s5 + $0x10] sm:$0xff]  ;;  %s6038_s15 = sshll.u32 %s5501_s26, 7  ;;  %vm1750_vm3 = vcmask 392192  }
  0x26   : > { %4780 = vmatpush3.msk.msra.mxu0 %vm527_vm0, %v397_v0  ;;  %s351_s29 = scalar_select %p350_p13, %s5501_s26, 1  ;;  %v403_v48 = vld [vmem:[%s7249_s5 + $0x28] sm:$0xff]  ;;  %v402_v50 = vld [vmem:[%s7249_s5 + $0x20] sm:$0xff]  ;;  %v405_v55 = vld [vmem:[%s7249_s5 + $0x38] sm:$0xff]  ;;  %vm1799_vm4 = vcmask 64512   ;;  %vm1937_vm5 = vcmask 523264  }
  0x27   : > { %v404_v57 = vld [vmem:[%s7249_s5 + $0x30] sm:$0xff]  ;;  %v407_v63 = vld [vmem:[%s7249_s5 + $0x48] sm:$0xff]  ;;  %s6041_s16 = sld [smem:[#allocation8 + %s6038_s15]]  ;;  %s6178_s25 = sadd.s32 1, %s6038_s15  ;;  %vm2645_vm6 = vcmask 130112  }
  0x28   : > { %s4547_s30 = sshll.u32 %s351_s29, 8  ;;  %s6044_s18 = sld [smem:[#allocation9 + %s6038_s15]] }
  0x29   : > { %s5513_s14 = scalar_lea.vmem %s7246_s2, %s4547_s30  ;;  %s5518_s17 = scalar_lea.vmem %s7247_s3, %s4547_s30 }
  0x2a   : > { %s5523_s20 = scalar_lea.vmem %s7255_s11, %s4547_s30  ;;  %v365_v1 = vld [vmem:[%s5513_s14] sm:$0xff]  ;;  %v366_v2 = vld [vmem:[%s5513_s14 + $0x8] sm:$0xff]  ;;  %v367_v3 = vld [vmem:[%s5513_s14 + $0x10] sm:$0xff]  ;;  %s1346_s0 = sld [smem:[#allocation8 + %s6178_s25]] }
  0x2b   : > { %4781 = vmatprep.mubr.msk.f32.mxu0 %vm430_vm1, %v365_v1  ;;  %v368_v4 = vld [vmem:[%s5513_s14 + $0x18] sm:$0xff]  ;;  %v369_v5 = vld [vmem:[%s5513_s14 + $0x20] sm:$0xff]  ;;  %v370_v6 = vld [vmem:[%s5513_s14 + $0x28] sm:$0xff]  ;;  %s1313_s27 = sld [smem:[#allocation8 + %s6038_s15]]  ;;  %s5422_s15 = smov 104  }
  0x2c   : > { %4782 = vmatmul.mubr.msk.f32.vlgmr.msra.gmra.mxu0 %vm430_vm1, %v366_v2  ;;  %v371_v7 = vld [vmem:[%s5513_s14 + $0x30] sm:$0xff]  ;;  %v372_v8 = vld [vmem:[%s5513_s14 + $0x38] sm:$0xff]  ;;  %v373_v9 = vld [vmem:[%s5513_s14 + $0x40] sm:$0xff]  ;;  %s5423_s26 = smov 112   ;;  %s5424_s19 = smov 120  }
  0x2d   : > { %4784 = vmatprep.mubr.msk.f32.mxu0 %vm430_vm1, %v367_v3  ;;  %v374_v10 = vld [vmem:[%s5513_s14 + $0x48] sm:$0xff]  ;;  %v375_v11 = vld [vmem:[%s5513_s14 + $0x50] sm:$0xff]  ;;  %v376_v12 = vld [vmem:[%s5513_s14 + $0x58] sm:$0xff]  ;;  %s5425_s21 = smov 96   ;;  %s5426_s22 = smov 88  }
  0x2e   : > { %v377_v13 = vld [vmem:[%s5513_s14 + $0x60] sm:$0xff]  ;;  %v378_v14 = vld [vmem:[%s5513_s14 + $0x68] sm:$0xff]  ;;  %v379_v15 = vld [vmem:[%s5513_s14 + $0x70] sm:$0xff]  ;;  %s5427_s23 = smov 8   ;;  %p4515_p0 = scmp.le.s32.totalorder %s6044_s18, 0 }
  0x2f   : > { %v380_v16 = vld [vmem:[%s5513_s14 + $0x78] sm:$0xff]  ;;  %v381_v17 = vld [vmem:[%s5513_s14 + $0x80] sm:$0xff]  ;;  %v382_v18 = vld [vmem:[%s5513_s14 + $0x88] sm:$0xff]  ;;  %s3762_s12 = scalar_lea.vmem (!%p4515_p0), [#allocation6], %s6041_s16 }
  0x30   : > { %4785 = vmatmul.mubr.msk.f32.gmra.mxu0 %vm430_vm1, %v368_v4  ;;  %v383_v19 = vld [vmem:[%s5513_s14 + $0x90] sm:$0xff]  ;;  %v384_v20 = vld [vmem:[%s5513_s14 + $0x98] sm:$0xff]  ;;  %v385_v21 = vld [vmem:[%s5513_s14 + $0xa0] sm:$0xff]  ;;  %s1347_s28 = scalar_lea.vmem [#allocation2], %s1346_s0 }
  0x31   : > { %4787 = vmatprep.mubr.msk.f32.mxu0 %vm430_vm1, %v369_v5  ;;  %v386_v22 = vld [vmem:[%s5513_s14 + $0xa8] sm:$0xff]  ;;  %v387_v23 = vld [vmem:[%s5513_s14 + $0xb0] sm:$0xff]  ;;  %v388_v24 = vld [vmem:[%s5513_s14 + $0xb8] sm:$0xff]  ;;  %s1314_s29 = scalar_lea.vmem [#allocation2], %s1313_s27 }
  0x32   : > { %v389_v25 = vld [vmem:[%s5513_s14 + $0xc0] sm:$0xff]  ;;  %v390_v26 = vld [vmem:[%s5513_s14 + $0xc8] sm:$0xff]  ;;  %v391_v27 = vld [vmem:[%s5513_s14 + $0xd0] sm:$0xff] }
  0x33   : > { %v392_v28 = vld [vmem:[%s5513_s14 + $0xd8] sm:$0xff]  ;;  %v393_v29 = vld [vmem:[%s5513_s14 + $0xe0] sm:$0xff]  ;;  %v394_v30 = vld [vmem:[%s5513_s14 + $0xe8] sm:$0xff] }
  0x34   : > { %4788 = vmatmul.mubr.msk.f32.gmra.mxu0 %vm430_vm1, %v370_v6  ;;  %v395_v31 = vld [vmem:[%s5513_s14 + $0xf0] sm:$0xff]  ;;  %v396_v32 = vld [vmem:[%s5513_s14 + $0xf8] sm:$0xff]  ;;  %v406_v1 = vld [vmem:[%s7249_s5 + $0x40] sm:$0xff] }
  0x35   : > { %4790 = vmatprep.mubr.msk.f32.mxu0 %vm430_vm1, %v371_v7  ;;  %v409_v7 = vld [vmem:[%s7249_s5 + $0x58] sm:$0xff] }
  0x38   : > { %4791 = vmatmul.mubr.msk.f32.gmra.mxu0 %vm430_vm1, %v372_v8 }
  0x39   : > { %4793 = vmatprep.mubr.msk.f32.mxu0 %vm430_vm1, %v373_v9  ;;  %v408_v9 = vld [vmem:[%s7249_s5 + $0x50] sm:$0xff] }
  0x3c   : > { %4794 = vmatmul.mubr.msk.f32.gmra.mxu0 %vm430_vm1, %v374_v10 }
  0x3d   : > { %4796 = vmatprep.mubr.msk.f32.mxu0 %vm430_vm1, %v375_v11 }
  0x40   : > { %4797 = vmatmul.mubr.msk.f32.gmra.mxu0 %vm430_vm1, %v376_v12 }
  0x41   : > { %4799 = vmatprep.mubr.msk.f32.mxu0 %vm430_vm1, %v377_v13 }
  0x44   : > { %4800 = vmatmul.mubr.msk.f32.gmra.mxu0 %vm430_vm1, %v378_v14 }
  0x45   : > { %4802 = vmatprep.mubr.msk.f32.mxu0 %vm430_vm1, %v379_v15  ;;  %v411_v15 = vld [vmem:[%s7249_s5 + $0x68] sm:$0xff] }
  0x48   : > { %4803 = vmatmul.mubr.msk.f32.gmra.mxu0 %vm430_vm1, %v380_v16 }
  0x49   : > { %4805 = vmatprep.mubr.msk.f32.mxu0 %vm430_vm1, %v381_v17  ;;  %v410_v17 = vld [vmem:[%s7249_s5 + $0x60] sm:$0xff] }
  0x4c   : > { %4806 = vmatmul.mubr.msk.f32.gmra.mxu0 %vm430_vm1, %v382_v18 }
  0x4d   : > { %4808 = vmatprep.mubr.msk.f32.mxu0 %vm430_vm1, %v383_v19 }
  0x50   : > { %4809 = vmatmul.mubr.msk.f32.gmra.mxu0 %vm430_vm1, %v384_v20 }
  0x51   : > { %4811 = vmatprep.mubr.msk.f32.mxu0 %vm430_vm1, %v385_v21 }
  0x54   : > { %4812 = vmatmul.mubr.msk.f32.gmra.mxu0 %vm430_vm1, %v386_v22 }
  0x55   : > { %4814 = vmatprep.mubr.msk.f32.mxu0 %vm430_vm1, %v387_v23  ;;  %v413_v23 = vld [vmem:[%s7249_s5 + $0x78] sm:$0xff] }
  0x58   : > { %4815 = vmatmul.mubr.msk.f32.gmra.mxu0 %vm430_vm1, %v388_v24 }
  0x59   : > { %4817 = vmatprep.mubr.msk.f32.mxu0 %vm430_vm1, %v389_v25  ;;  %v412_v25 = vld [vmem:[%s7249_s5 + $0x70] sm:$0xff] }
  0x5c   : > { %4818 = vmatmul.mubr.msk.f32.gmra.mxu0 %vm430_vm1, %v390_v26 }
  0x5d   : > { %4820 = vmatprep.mubr.msk.f32.mxu0 %vm430_vm1, %v391_v27 }
  0x60   : > { %4821 = vmatmul.mubr.msk.f32.gmra.mxu0 %vm430_vm1, %v392_v28 }
  0x61   : > { %4823 = vmatprep.mubr.msk.f32.mxu0 %vm430_vm1, %v393_v29 }
  0x64   : > { %4824 = vmatmul.mubr.msk.f32.gmra.mxu0 %vm430_vm1, %v394_v30 }
  0x65   : > { %4826 = vmatprep.mubr.msk.f32.mxu0 %vm430_vm1, %v395_v31  ;;  %v415_v31 = vld [vmem:[%s7249_s5 + $0x88] sm:$0xff] }
  0x68   : > { %4827 = vmatmul.mubr.msk.f32.gmra.mxu0 %vm430_vm1, %v396_v32 }
  0xec   : > { %v4783_v34 = vpop.f32.mrf.mxu0 }
  0xed   : > { %v5595_v36 = vadd.f32 %v4783_v34, %v399_v33  ;;  %v414_v33 = vld [vmem:[%s7249_s5 + $0x80] sm:$0xff] }
  0xee   : > { %v597_v37 = vpop.f32.mrf.mxu0 }
  0xef   : > { %v5600_v39 = vadd.f32 %v597_v37, %v398_v35  ;;  %v760_v40 = vsel %vm756_vm2, %v5595_v36, 0.0 }
  0xf0   : > { %761 = vadd.xlane.f32.xlu0 %v760_v40  ;;  %v4786_v41 = vpop.f32.mrf.mxu0 }
  0xf1   : > { %v5607_v43 = vadd.f32 %v4786_v41, %v401_v38  ;;  %v757_v47 = vsel %vm756_vm2, %v5600_v39, 0.0  ;;  %v417_v41 = vld [vmem:[%s7249_s5 + $0x98] sm:$0xff] }
  0xf2   : > { %v607_v44 = vpop.f32.mrf.mxu0 }
  0xf3   : > { %v5609_v45 = vadd.f32 %v607_v44, %v400_v42  ;;  %v766_v46 = vsel %vm756_vm2, %v5607_v43, 0.0  ;;  %v416_v44 = vld [vmem:[%s7249_s5 + $0x90] sm:$0xff] }
  0xf4   : > { %767 = vadd.xlane.f32.xlu1 %v766_v46  ;;  %v4789_v49 = vpop.f32.mrf.mxu0  ;;  %758 = vadd.xlane.f32.xlu0 %v757_v47 }
  0xf5   : > { %v5621_v52 = vadd.f32 %v4789_v49, %v403_v48  ;;  %v763_v54 = vsel %vm756_vm2, %v5609_v45, 0.0 }
  0xf6   : > { %v617_v51 = vpop.f32.mrf.mxu0 }
  0xf7   : > { %v5623_v53 = vadd.f32 %v617_v51, %v402_v50  ;;  %v772_v62 = vsel %vm756_vm2, %v5621_v52, 0.0  ;;  %v419_v51 = vld [vmem:[%s7249_s5 + $0xa8] sm:$0xff] }
  0xf8   : > { %v4792_v56 = vpop.f32.mrf.mxu0  ;;  %764 = vadd.xlane.f32.xlu1 %v763_v54 }
  0xf9   : > { %v769_v58 = vsel %vm756_vm2, %v5623_v53, 0.0  ;;  %v5635_v60 = vadd.f32 %v4792_v56, %v405_v55  ;;  %v418_v55 = vld [vmem:[%s7249_s5 + $0xa0] sm:$0xff] }
  0xfa   : > { %v627_v59 = vpop.f32.mrf.mxu0  ;;  %770 = vadd.xlane.f32.xlu0 %v769_v58 }
  0xfb   : > { %v5637_v61 = vadd.f32 %v627_v59, %v404_v57  ;;  %v778_v6 = vsel %vm756_vm2, %v5635_v60, 0.0 }
  0xfc   : > { %v4795_v0 = vpop.f32.mrf.mxu0  ;;  %773 = vadd.xlane.f32.xlu1 %v772_v62 }
  0xfd   : > { %v775_v2 = vsel %vm756_vm2, %v5637_v61, 0.0  ;;  %v5649_v4 = vadd.f32 %v4795_v0, %v407_v63  ;;  %v421_v63 = vld [vmem:[%s7249_s5 + $0xb8] sm:$0xff] }
  0xfe   : > { %v637_v3 = vpop.f32.mrf.mxu0  ;;  %776 = vadd.xlane.f32.xlu0 %v775_v2 }
  0xff   : > { %v5651_v5 = vadd.f32 %v637_v3, %v406_v1  ;;  %v784_v14 = vsel %vm756_vm2, %v5649_v4, 0.0  ;;  %v420_v1 = vld [vmem:[%s7249_s5 + $0xb0] sm:$0xff] }
 0x100   : > { %v4798_v8 = vpop.f32.mrf.mxu0  ;;  %779 = vadd.xlane.f32.xlu1 %v778_v6 }
 0x101   : > { %v781_v10 = vsel %vm756_vm2, %v5651_v5, 0.0  ;;  %v5663_v12 = vadd.f32 %v4798_v8, %v409_v7 }
 0x102   : > { %v647_v11 = vpop.f32.mrf.mxu0  ;;  %782 = vadd.xlane.f32.xlu0 %v781_v10 }
 0x103   : > { %v5665_v13 = vadd.f32 %v647_v11, %v408_v9  ;;  %v790_v22 = vsel %vm756_vm2, %v5663_v12, 0.0  ;;  %v423_v9 = vld [vmem:[%s7249_s5 + $0xc8] sm:$0xff]  ;;  %v422_v11 = vld [vmem:[%s7249_s5 + $0xc0] sm:$0xff] }
 0x104   : > { %v4801_v16 = vpop.f32.mrf.mxu0  ;;  %785 = vadd.xlane.f32.xlu1 %v784_v14 }
 0x105   : > { %v787_v18 = vsel %vm756_vm2, %v5665_v13, 0.0  ;;  %v5677_v20 = vadd.f32 %v4801_v16, %v411_v15 }
 0x106   : > { %v657_v19 = vpop.f32.mrf.mxu0  ;;  %788 = vadd.xlane.f32.xlu0 %v787_v18 }
 0x107   : > { %v5679_v21 = vadd.f32 %v657_v19, %v410_v17  ;;  %v796_v30 = vsel %vm756_vm2, %v5677_v20, 0.0  ;;  %v425_v19 = vld [vmem:[%s7249_s5 + $0xd8] sm:$0xff] }
 0x108   : > { %v4804_v24 = vpop.f32.mrf.mxu0  ;;  %791 = vadd.xlane.f32.xlu1 %v790_v22 }
 0x109   : > { %v793_v26 = vsel %vm756_vm2, %v5679_v21, 0.0  ;;  %v5691_v28 = vadd.f32 %v4804_v24, %v413_v23  ;;  %v424_v23 = vld [vmem:[%s7249_s5 + $0xd0] sm:$0xff] }
 0x10a   : > { %v667_v27 = vpop.f32.mrf.mxu0  ;;  %794 = vadd.xlane.f32.xlu0 %v793_v26 }
 0x10b   : > { %v5693_v29 = vadd.f32 %v667_v27, %v412_v25  ;;  %v802_v40 = vsel %vm756_vm2, %v5691_v28, 0.0 }
 0x10c   : > { %v4807_v32 = vpop.f32.mrf.mxu0  ;;  %797 = vadd.xlane.f32.xlu1 %v796_v30 }
 0x10d   : > { %v799_v34 = vsel %vm756_vm2, %v5693_v29, 0.0  ;;  %v5705_v37 = vadd.f32 %v4807_v32, %v415_v31  ;;  %v427_v31 = vld [vmem:[%s7249_s5 + $0xe8] sm:$0xff] }
 0x10e   : > { %v677_v35 = vpop.f32.mrf.mxu0  ;;  %800 = vadd.xlane.f32.xlu0 %v799_v34 }
 0x10f   : > { %v5707_v38 = vadd.f32 %v677_v35, %v414_v33  ;;  %v808_v50 = vsel %vm756_vm2, %v5705_v37, 0.0  ;;  %v426_v33 = vld [vmem:[%s7249_s5 + $0xe0] sm:$0xff] }
 0x110   : > { %v4810_v42 = vpop.f32.mrf.mxu0  ;;  %803 = vadd.xlane.f32.xlu1 %v802_v40 }
 0x111   : > { %v805_v46 = vsel %vm756_vm2, %v5707_v38, 0.0  ;;  %v5719_v48 = vadd.f32 %v4810_v42, %v417_v41 }
 0x112   : > { %v687_v47 = vpop.f32.mrf.mxu0  ;;  %806 = vadd.xlane.f32.xlu0 %v805_v46 }
 0x113   : > { %v5721_v49 = vadd.f32 %v687_v47, %v416_v44  ;;  %v814_v62 = vsel %vm756_vm2, %v5719_v48, 0.0  ;;  %v429_v44 = vld [vmem:[%s7249_s5 + $0xf8] sm:$0xff]  ;;  %v428_v47 = vld [vmem:[%s7249_s5 + $0xf0] sm:$0xff] }
 0x114   : > { %v4813_v54 = vpop.f32.mrf.mxu0  ;;  %809 = vadd.xlane.f32.xlu1 %v808_v50 }
 0x115   : > { %v811_v56 = vsel %vm756_vm2, %v5721_v49, 0.0  ;;  %v5733_v58 = vadd.f32 %v4813_v54, %v419_v51 }
 0x116   : > { %v697_v57 = vpop.f32.mrf.mxu0  ;;  %812 = vadd.xlane.f32.xlu0 %v811_v56 }
 0x117   : > { %v5735_v59 = vadd.f32 %v697_v57, %v418_v55  ;;  %v820_v8 = vsel %vm756_vm2, %v5733_v58, 0.0 }
 0x118   : > { %v4816_v0 = vpop.f32.mrf.mxu0  ;;  %815 = vadd.xlane.f32.xlu1 %v814_v62 }
 0x119   : > { %v817_v2 = vsel %vm756_vm2, %v5735_v59, 0.0  ;;  %v5747_v6 = vadd.f32 %v4816_v0, %v421_v63 }
 0x11a   : > { %v707_v3 = vpop.f32.mrf.mxu0  ;;  %818 = vadd.xlane.f32.xlu0 %v817_v2 }
 0x11b   : > { %v5749_v7 = vadd.f32 %v707_v3, %v420_v1  ;;  %v826_v18 = vsel %vm756_vm2, %v5747_v6, 0.0 }
 0x11c   : > { %v4819_v10 = vpop.f32.mrf.mxu0  ;;  %821 = vadd.xlane.f32.xlu1 %v820_v8 }
 0x11d   : > { %v823_v14 = vsel %vm756_vm2, %v5749_v7, 0.0  ;;  %v5761_v16 = vadd.f32 %v4819_v10, %v423_v9 }
 0x11e   : > { %v717_v15 = vpop.f32.mrf.mxu0  ;;  %824 = vadd.xlane.f32.xlu0 %v823_v14 }
 0x11f   : > { %v5763_v17 = vadd.f32 %v717_v15, %v422_v11  ;;  %v832_v30 = vsel %vm756_vm2, %v5761_v16, 0.0 }
 0x120   : > { %v4822_v22 = vpop.f32.mrf.mxu0  ;;  %827 = vadd.xlane.f32.xlu1 %v826_v18 }
 0x121   : > { %v829_v24 = vsel %vm756_vm2, %v5763_v17, 0.0  ;;  %v5775_v26 = vadd.f32 %v4822_v22, %v425_v19 }
 0x122   : > { %v727_v25 = vpop.f32.mrf.mxu0  ;;  %830 = vadd.xlane.f32.xlu0 %v829_v24 }
 0x123   : > { %v5777_v27 = vadd.f32 %v727_v25, %v424_v23  ;;  %v838_v42 = vsel %vm756_vm2, %v5775_v26, 0.0 }
 0x124   : > { %v4825_v32 = vpop.f32.mrf.mxu0  ;;  %833 = vadd.xlane.f32.xlu1 %v832_v30 }
 0x125   : > { %v835_v34 = vsel %vm756_vm2, %v5777_v27, 0.0  ;;  %v5789_v40 = vadd.f32 %v4825_v32, %v427_v31 }
 0x126   : > { %v737_v35 = vpop.f32.mrf.mxu0  ;;  %836 = vadd.xlane.f32.xlu0 %v835_v34 }
 0x127   : > { %v5791_v41 = vadd.f32 %v737_v35, %v426_v33  ;;  %v844_v56 = vsel %vm756_vm2, %v5789_v40, 0.0 }
 0x128   : > { %v4828_v46 = vpop.f32.mrf.mxu0  ;;  %839 = vadd.xlane.f32.xlu1 %v838_v42 }
 0x129   : > { %v841_v50 = vsel %vm756_vm2, %v5791_v41, 0.0  ;;  %v5803_v54 = vadd.f32 %v4828_v46, %v429_v44 }
 0x12a   : > { %v747_v51 = vpop.f32.mrf.mxu0  ;;  %842 = vadd.xlane.f32.xlu0 %v841_v50 }
 0x12b   : > { %v5805_v55 = vadd.f32 %v747_v51, %v428_v47  ;;  %v850_v62 = vsel %vm756_vm2, %v5803_v54, 0.0 }
 0x12c   : > { %845 = vadd.xlane.f32.xlu1 %v844_v56 }
 0x12d   : > { %v847_v57 = vsel %vm756_vm2, %v5805_v55, 0.0 }
 0x12e   : > { %848 = vadd.xlane.f32.xlu0 %v847_v57 }
 0x130   : > { %851 = vadd.xlane.f32.xlu1 %v850_v62 }
 0x179   : > { %v762_v63 = vpop.xlane.xlu0 %761 }
 0x17a   : > { %v855_v0 = vmul.f32 0.0625, %v762_v63 }
 0x17c   : > { %v5814_v1 = vsub.f32 %v5595_v36, %v855_v0 }
 0x17d   : > { %v768_v2 = vpop.xlane.xlu1 %767  ;;  %v759_v3 = vpop.xlane.xlu0 %758 }
 0x17e   : > { %v857_v8 = vmul.f32 0.0625, %v768_v2  ;;  %v854_v9 = vmul.f32 0.0625, %v759_v3  ;;  %v919_v10 = vmul.f32 %v5814_v1, %v5814_v1 }
 0x180   : > { %v5819_v11 = vsub.f32 %v5607_v43, %v857_v8  ;;  %v5822_v14 = vsub.f32 %v5600_v39, %v854_v9  ;;  %v953_v15 = vsel %vm756_vm2, %v919_v10, 0.0 }
 0x181   : > { %954 = vadd.xlane.f32.xlu1 %v953_v15  ;;  %v765_v18 = vpop.xlane.xlu1 %764 }
 0x182   : > { %v856_v19 = vmul.f32 0.0625, %v765_v18  ;;  %v921_v36 = vmul.f32 %v5819_v11, %v5819_v11  ;;  %v918_v22 = vmul.f32 %v5822_v14, %v5822_v14 }
 0x183   : > { %v771_v23 = vpop.xlane.xlu0 %770 }
 0x184   : > { %v5830_v24 = vsub.f32 %v5609_v45, %v856_v19  ;;  %v858_v43 = vmul.f32 0.0625, %v771_v23  ;;  %v959_v25 = vsel %vm756_vm2, %v921_v36, 0.0  ;;  %v950_v39 = vsel %vm756_vm2, %v918_v22, 0.0 }
 0x185   : > { %960 = vadd.xlane.f32.xlu1 %v959_v25  ;;  %v774_v30 = vpop.xlane.xlu1 %773  ;;  %951 = vadd.xlane.f32.xlu0 %v950_v39 }
 0x186   : > { %v5835_v31 = vsub.f32 %v5623_v53, %v858_v43  ;;  %v859_v32 = vmul.f32 0.0625, %v774_v30  ;;  %v920_v33 = vmul.f32 %v5830_v24, %v5830_v24 }
 0x187   : > { %v777_v34 = vpop.xlane.xlu0 %776 }
 0x188   : > { %v5840_v35 = vsub.f32 %v5621_v52, %v859_v32  ;;  %v860_v45 = vmul.f32 0.0625, %v777_v34  ;;  %v956_v42 = vsel %vm756_vm2, %v920_v33, 0.0  ;;  %v922_v44 = vmul.f32 %v5835_v31, %v5835_v31 }
 0x189   : > { %v780_v46 = vpop.xlane.xlu1 %779  ;;  %957 = vadd.xlane.f32.xlu0 %v956_v42 }
 0x18a   : > { %v5846_v47 = vsub.f32 %v5637_v61, %v860_v45  ;;  %v861_v53 = vmul.f32 0.0625, %v780_v46  ;;  %v923_v50 = vmul.f32 %v5840_v35, %v5840_v35  ;;  %v962_v56 = vsel %vm756_vm2, %v922_v44, 0.0 }
 0x18b   : > { %v783_v51 = vpop.xlane.xlu0 %782 }
 0x18c   : > { %v5852_v52 = vsub.f32 %v5635_v60, %v861_v53  ;;  %v862_v57 = vmul.f32 0.0625, %v783_v51  ;;  %v965_v62 = vsel %vm756_vm2, %v923_v50, 0.0  ;;  %v924_v63 = vmul.f32 %v5846_v47, %v5846_v47 }
 0x18d   : > { %966 = vadd.xlane.f32.xlu1 %v965_v62  ;;  %v786_v0 = vpop.xlane.xlu1 %785  ;;  %963 = vadd.xlane.f32.xlu0 %v962_v56 }
 0x18e   : > { %v5858_v61 = vsub.f32 %v5651_v5, %v862_v57  ;;  %v863_v2 = vmul.f32 0.0625, %v786_v0  ;;  %v925_v3 = vmul.f32 %v5852_v52, %v5852_v52  ;;  %v968_v60 = vsel %vm756_vm2, %v924_v63, 0.0 }
 0x18f   : > { %v789_v8 = vpop.xlane.xlu0 %788 }
 0x190   : > { %v5864_v9 = vsub.f32 %v5649_v4, %v863_v2  ;;  %v864_v10 = vmul.f32 0.0625, %v789_v8  ;;  %v971_v15 = vsel %vm756_vm2, %v925_v3, 0.0  ;;  %v926_v18 = vmul.f32 %v5858_v61, %v5858_v61 }
 0x191   : > { %972 = vadd.xlane.f32.xlu1 %v971_v15  ;;  %v792_v19 = vpop.xlane.xlu1 %791  ;;  %969 = vadd.xlane.f32.xlu0 %v968_v60 }
 0x192   : > { %v5870_v5 = vsub.f32 %v5665_v13, %v864_v10  ;;  %v865_v36 = vmul.f32 0.0625, %v792_v19  ;;  %v927_v22 = vmul.f32 %v5864_v9, %v5864_v9  ;;  %v974_v4 = vsel %vm756_vm2, %v926_v18, 0.0 }
 0x193   : > { %v795_v23 = vpop.xlane.xlu0 %794 }
 0x194   : > { %v5876_v43 = vsub.f32 %v5663_v12, %v865_v36  ;;  %v866_v25 = vmul.f32 0.0625, %v795_v23  ;;  %v977_v39 = vsel %vm756_vm2, %v927_v22, 0.0  ;;  %v928_v30 = vmul.f32 %v5870_v5, %v5870_v5 }
 0x195   : > { %978 = vadd.xlane.f32.xlu1 %v977_v39  ;;  %v798_v32 = vpop.xlane.xlu1 %797  ;;  %975 = vadd.xlane.f32.xlu0 %v974_v4 }
 0x196   : > { %v5882_v13 = vsub.f32 %v5679_v21, %v866_v25  ;;  %v867_v33 = vmul.f32 0.0625, %v798_v32  ;;  %v929_v34 = vmul.f32 %v5876_v43, %v5876_v43  ;;  %v980_v12 = vsel %vm756_vm2, %v928_v30, 0.0 }
 0x197   : > { %v801_v45 = vpop.xlane.xlu0 %800 }
 0x198   : > { %v5888_v42 = vsub.f32 %v5677_v20, %v867_v33  ;;  %v868_v44 = vmul.f32 0.0625, %v801_v45  ;;  %v983_v46 = vsel %vm756_vm2, %v929_v34, 0.0  ;;  %v930_v53 = vmul.f32 %v5882_v13, %v5882_v13 }
 0x199   : > { %984 = vadd.xlane.f32.xlu1 %v983_v46  ;;  %v804_v50 = vpop.xlane.xlu1 %803  ;;  %981 = vadd.xlane.f32.xlu0 %v980_v12 }
 0x19a   : > { %v5894_v21 = vsub.f32 %v5693_v29, %v868_v44  ;;  %v869_v51 = vmul.f32 0.0625, %v804_v50  ;;  %v931_v56 = vmul.f32 %v5888_v42, %v5888_v42  ;;  %v986_v20 = vsel %vm756_vm2, %v930_v53, 0.0 }
 0x19b   : > { %v807_v57 = vpop.xlane.xlu0 %806 }
 0x19c   : > { %v5900_v62 = vsub.f32 %v5691_v28, %v869_v51  ;;  %v870_v63 = vmul.f32 0.0625, %v807_v57  ;;  %v989_v0 = vsel %vm756_vm2, %v931_v56, 0.0  ;;  %v932_v2 = vmul.f32 %v5894_v21, %v5894_v21 }
 0x19d   : > { %990 = vadd.xlane.f32.xlu1 %v989_v0  ;;  %v810_v3 = vpop.xlane.xlu1 %809  ;;  %987 = vadd.xlane.f32.xlu0 %v986_v20 }
 0x19e   : > { %v5906_v29 = vsub.f32 %v5707_v38, %v870_v63  ;;  %v871_v8 = vmul.f32 0.0625, %v810_v3  ;;  %v933_v60 = vmul.f32 %v5900_v62, %v5900_v62  ;;  %v992_v28 = vsel %vm756_vm2, %v932_v2, 0.0 }
 0x19f   : > { %v813_v10 = vpop.xlane.xlu0 %812 }
 0x1a0   : > { %v5912_v15 = vsub.f32 %v5705_v37, %v871_v8  ;;  %v872_v18 = vmul.f32 0.0625, %v813_v10  ;;  %v995_v19 = vsel %vm756_vm2, %v933_v60, 0.0  ;;  %v934_v36 = vmul.f32 %v5906_v29, %v5906_v29 }
 0x1a1   : > { %996 = vadd.xlane.f32.xlu1 %v995_v19  ;;  %v816_v22 = vpop.xlane.xlu1 %815  ;;  %993 = vadd.xlane.f32.xlu0 %v992_v28 }
 0x1a2   : > { %v5918_v38 = vsub.f32 %v5721_v49, %v872_v18  ;;  %v873_v23 = vmul.f32 0.0625, %v816_v22  ;;  %v935_v4 = vmul.f32 %v5912_v15, %v5912_v15  ;;  %v998_v37 = vsel %vm756_vm2, %v934_v36, 0.0 }
 0x1a3   : > { %v819_v25 = vpop.xlane.xlu0 %818 }
 0x1a4   : > { %v5924_v39 = vsub.f32 %v5719_v48, %v873_v23  ;;  %v874_v30 = vmul.f32 0.0625, %v819_v25  ;;  %v1001_v32 = vsel %vm756_vm2, %v935_v4, 0.0  ;;  %v936_v33 = vmul.f32 %v5918_v38, %v5918_v38 }
 0x1a5   : > { %1002 = vadd.xlane.f32.xlu1 %v1001_v32  ;;  %v822_v34 = vpop.xlane.xlu1 %821  ;;  %999 = vadd.xlane.f32.xlu0 %v998_v37 }
 0x1a6   : > { %v5930_v49 = vsub.f32 %v5735_v59, %v874_v30  ;;  %v875_v45 = vmul.f32 0.0625, %v822_v34  ;;  %v937_v12 = vmul.f32 %v5924_v39, %v5924_v39  ;;  %v1004_v48 = vsel %vm756_vm2, %v936_v33, 0.0 }
 0x1a7   : > { %v825_v44 = vpop.xlane.xlu0 %824 }
 0x1a8   : > { %v5936_v46 = vsub.f32 %v5733_v58, %v875_v45  ;;  %v876_v53 = vmul.f32 0.0625, %v825_v44  ;;  %v1007_v50 = vsel %vm756_vm2, %v937_v12, 0.0  ;;  %v938_v51 = vmul.f32 %v5930_v49, %v5930_v49 }
 0x1a9   : > { %1008 = vadd.xlane.f32.xlu1 %v1007_v50  ;;  %v828_v56 = vpop.xlane.xlu1 %827  ;;  %1005 = vadd.xlane.f32.xlu0 %v1004_v48 }
 0x1aa   : > { %v5942_v59 = vsub.f32 %v5749_v7, %v876_v53  ;;  %v877_v57 = vmul.f32 0.0625, %v828_v56  ;;  %v939_v20 = vmul.f32 %v5936_v46, %v5936_v46  ;;  %v1010_v58 = vsel %vm756_vm2, %v938_v51, 0.0 }
 0x1ab   : > { %v831_v63 = vpop.xlane.xlu0 %830 }
 0x1ac   : > { %v5948_v0 = vsub.f32 %v5747_v6, %v877_v57  ;;  %v878_v2 = vmul.f32 0.0625, %v831_v63  ;;  %v1013_v3 = vsel %vm756_vm2, %v939_v20, 0.0  ;;  %v940_v8 = vmul.f32 %v5942_v59, %v5942_v59 }
 0x1ad   : > { %1014 = vadd.xlane.f32.xlu1 %v1013_v3  ;;  %v834_v60 = vpop.xlane.xlu1 %833  ;;  %1011 = vadd.xlane.f32.xlu0 %v1010_v58 }
 0x1ae   : > { %v5954_v7 = vsub.f32 %v5763_v17, %v878_v2  ;;  %v879_v10 = vmul.f32 0.0625, %v834_v60  ;;  %v941_v28 = vmul.f32 %v5948_v0, %v5948_v0  ;;  %v1016_v6 = vsel %vm756_vm2, %v940_v8, 0.0 }
 0x1af   : > { %v837_v18 = vpop.xlane.xlu0 %836 }
 0x1b0   : > { %v5960_v19 = vsub.f32 %v5761_v16, %v879_v10  ;;  %v880_v36 = vmul.f32 0.0625, %v837_v18  ;;  %v1019_v22 = vsel %vm756_vm2, %v941_v28, 0.0  ;;  %v942_v23 = vmul.f32 %v5954_v7, %v5954_v7 }
 0x1b1   : > { %1020 = vadd.xlane.f32.xlu1 %v1019_v22  ;;  %v840_v4 = vpop.xlane.xlu1 %839  ;;  %1017 = vadd.xlane.f32.xlu0 %v1016_v6 }
 0x1b2   : > { %v5966_v17 = vsub.f32 %v5777_v27, %v880_v36  ;;  %v881_v25 = vmul.f32 0.0625, %v840_v4  ;;  %v943_v37 = vmul.f32 %v5960_v19, %v5960_v19  ;;  %v1022_v16 = vsel %vm756_vm2, %v942_v23, 0.0 }
 0x1b3   : > { %v843_v30 = vpop.xlane.xlu0 %842 }
 0x1b4   : > { %v5972_v32 = vsub.f32 %v5775_v26, %v881_v25  ;;  %v882_v33 = vmul.f32 0.0625, %v843_v30  ;;  %v1025_v34 = vsel %vm756_vm2, %v943_v37, 0.0  ;;  %v944_v45 = vmul.f32 %v5966_v17, %v5966_v17 }
 0x1b5   : > { %1026 = vadd.xlane.f32.xlu1 %v1025_v34  ;;  %v846_v12 = vpop.xlane.xlu1 %845  ;;  %1023 = vadd.xlane.f32.xlu0 %v1022_v16 }
 0x1b6   : > { %v5978_v27 = vsub.f32 %v5791_v41, %v882_v33  ;;  %v883_v44 = vmul.f32 0.0625, %v846_v12  ;;  %v945_v48 = vmul.f32 %v5972_v32, %v5972_v32  ;;  %v1028_v26 = vsel %vm756_vm2, %v944_v45, 0.0  ;;  %v1378_v33 = vld [vmem:[%s7251_s7] sm:$0xff] }
 0x1b7   : > { %v849_v53 = vpop.xlane.xlu0 %848  ;;  %4861 = vmatprep.mubr.f32.mxu1 %v1378_v33 }
 0x1b8   : > { %v5984_v50 = vsub.f32 %v5789_v40, %v883_v44  ;;  %v884_v51 = vmul.f32 0.0625, %v849_v53  ;;  %v1031_v56 = vsel %vm756_vm2, %v945_v48, 0.0  ;;  %v946_v57 = vmul.f32 %v5978_v27, %v5978_v27 }
 0x1b9   : > { %1032 = vadd.xlane.f32.xlu1 %v1031_v56  ;;  %v852_v20 = vpop.xlane.xlu1 %851  ;;  %1029 = vadd.xlane.f32.xlu0 %v1028_v26 }
 0x1ba   : > { %v5990_v41 = vsub.f32 %v5805_v55, %v884_v51  ;;  %v885_v63 = vmul.f32 0.0625, %v852_v20  ;;  %v947_v58 = vmul.f32 %v5984_v50, %v5984_v50  ;;  %v1034_v3 = vsel %vm756_vm2, %v946_v57, 0.0 }
 0x1bc   : > { %v5995_v2 = vsub.f32 %v5803_v54, %v885_v63  ;;  %v1037_v40 = vsel %vm756_vm2, %v947_v58, 0.0  ;;  %v948_v8 = vmul.f32 %v5990_v41, %v5990_v41  ;;  %v5421_v54 = vmov 0.0   ;;  %v6052_v58 = vld [vmem:[%s7250_s6] ss:$0 sm:$0xff] }
 0x1bd   : > { %1038 = vadd.xlane.f32.xlu1 %v1037_v40  ;;  %1035 = vadd.xlane.f32.xlu0 %v1034_v3  ;;  %1280 = vst.msk [vmem:[#allocation6] sm:$0xff] %vm756_vm2, %v5421_v54  ;;  %1281 = vst.msk [vmem:[#allocation6 + $0x8] sm:$0xff] %vm756_vm2, %v5421_v54 }
 0x1be   : > { %v949_v55 = vmul.f32 %v5995_v2, %v5995_v2  ;;  %v1040_v10 = vsel %vm756_vm2, %v948_v8, 0.0  ;;  %1282 = vst.msk [vmem:[#allocation6 + $0x10] sm:$0xff] %vm756_vm2, %v5421_v54  ;;  %1283 = vst.msk [vmem:[#allocation6 + $0x18] sm:$0xff] %vm756_vm2, %v5421_v54 }
 0x1bf   : > { %1284 = vst.msk [vmem:[#allocation6 + $0x20] sm:$0xff] %vm756_vm2, %v5421_v54  ;;  %1285 = vst.msk [vmem:[#allocation6 + $0x28] sm:$0xff] %vm756_vm2, %v5421_v54 }
 0x1c0   : > { %v1043_v60 = vsel %vm756_vm2, %v949_v55, 0.0  ;;  %1286 = vst.msk [vmem:[#allocation6 + $0x30] sm:$0xff] %vm756_vm2, %v5421_v54  ;;  %1287 = vst.msk [vmem:[#allocation6 + $0x38] sm:$0xff] %vm756_vm2, %v5421_v54  ;;  %v6058_v55 = vld [vmem:[%s7250_s6 + $0x1] ss:$0 sm:$0xff] }
 0x1c1   : > { %1044 = vadd.xlane.f32.xlu1 %v1043_v60  ;;  %1041 = vadd.xlane.f32.xlu0 %v1040_v10  ;;  %1288 = vst.msk [vmem:[#allocation6 + $0x40] sm:$0xff] %vm756_vm2, %v5421_v54  ;;  %1289 = vst.msk [vmem:[#allocation6 + $0x48] sm:$0xff] %vm756_vm2, %v5421_v54 }
 0x1c2   : > { %1290 = vst.msk [vmem:[#allocation6 + $0x50] sm:$0xff] %vm756_vm2, %v5421_v54  ;;  %1291 = vst.msk [vmem:[#allocation6 + $0x58] sm:$0xff] %vm756_vm2, %v5421_v54 }
 0x1c3   : > { %1292 = vst.msk [vmem:[#allocation6 + $0x60] sm:$0xff] %vm756_vm2, %v5421_v54  ;;  %1293 = vst.msk [vmem:[#allocation6 + $0x68] sm:$0xff] %vm756_vm2, %v5421_v54 }
 0x1c4   : > { %1294 = vst.msk [vmem:[#allocation6 + $0x70] sm:$0xff] %vm756_vm2, %v5421_v54  ;;  %1295 = vst.msk [vmem:[#allocation6 + $0x78] sm:$0xff] %vm756_vm2, %v5421_v54 }
 0x1c5   : > { %1296 = vst.msk [vmem:[#allocation6 + $0x80] sm:$0xff] %vm756_vm2, %v5421_v54  ;;  %1297 = vst.msk [vmem:[#allocation6 + $0x88] sm:$0xff] %vm756_vm2, %v5421_v54 }
 0x1c6   : > { %1298 = vst.msk [vmem:[#allocation6 + $0x90] sm:$0xff] %vm756_vm2, %v5421_v54  ;;  %1299 = vst.msk [vmem:[#allocation6 + $0x98] sm:$0xff] %vm756_vm2, %v5421_v54 }
 0x1c7   : > { %1300 = vst.msk [vmem:[#allocation6 + $0xa0] sm:$0xff] %vm756_vm2, %v5421_v54  ;;  %1301 = vst.msk [vmem:[#allocation6 + $0xa8] sm:$0xff] %vm756_vm2, %v5421_v54 }
 0x1c8   : > { %1302 = vst.msk [vmem:[#allocation6 + $0xb0] sm:$0xff] %vm756_vm2, %v5421_v54  ;;  %1303 = vst.msk [vmem:[#allocation6 + $0xb8] sm:$0xff] %vm756_vm2, %v5421_v54 }
 0x1c9   : > { %1304 = vst.msk [vmem:[#allocation6 + $0xc0] sm:$0xff] %vm756_vm2, %v5421_v54  ;;  %1305 = vst.msk [vmem:[#allocation6 + $0xc8] sm:$0xff] %vm756_vm2, %v5421_v54 }
 0x1ca   : > { %1306 = vst.msk [vmem:[#allocation6 + $0xd0] sm:$0xff] %vm756_vm2, %v5421_v54  ;;  %1307 = vst.msk [vmem:[#allocation6 + $0xd8] sm:$0xff] %vm756_vm2, %v5421_v54 }
 0x1cb   : > { %1308 = vst.msk [vmem:[#allocation6 + $0xe0] sm:$0xff] %vm756_vm2, %v5421_v54  ;;  %1309 = vst.msk [vmem:[#allocation6 + $0xe8] sm:$0xff] %vm756_vm2, %v5421_v54 }
 0x1cc   : > { %1310 = vst.msk [vmem:[#allocation6 + $0xf0] sm:$0xff] %vm756_vm2, %v5421_v54  ;;  %1311 = vst.msk [vmem:[#allocation6 + $0xf8] sm:$0xff] %vm756_vm2, %v5421_v54 }
 0x20a   : > { %v955_v28 = vpop.xlane.xlu1 %954 }
 0x20b   : > { %v1047_v18 = vmul.f32 0.0625, %v955_v28 }
 0x20d   : > { %v1079_v6 = vadd.f32 1e-05, %v1047_v18 }
 0x20e   : > { %v961_v36 = vpop.xlane.xlu1 %960  ;;  %v952_v22 = vpop.xlane.xlu0 %951 }
 0x20f   : > { %5183 = vrsqrt.f32 %v1079_v6  ;;  %v1049_v23 = vmul.f32 0.0625, %v961_v36  ;;  %v1046_v4 = vmul.f32 0.0625, %v952_v22 }
 0x211   : > { %v1081_v25 = vadd.f32 1e-05, %v1049_v23  ;;  %v1078_v37 = vadd.f32 1e-05, %v1046_v4 }
 0x212   : > { %v958_v30 = vpop.xlane.xlu0 %957 }
 0x213   : > { %5185 = vrsqrt.f32 %v1081_v25  ;;  %v1048_v16 = vmul.f32 0.0625, %v958_v30 }
 0x214   : > { %5187 = vrsqrt.f32 %v1078_v37 }
 0x215   : > { %v1080_v34 = vadd.f32 1e-05, %v1048_v16 }
 0x216   : > { %v967_v45 = vpop.xlane.xlu1 %966  ;;  %v964_v12 = vpop.xlane.xlu0 %963 }
 0x217   : > { %5189 = vrsqrt.f32 %v1080_v34  ;;  %v1051_v44 = vmul.f32 0.0625, %v967_v45  ;;  %v1050_v48 = vmul.f32 0.0625, %v964_v12 }
 0x219   : > { %v1083_v53 = vadd.f32 1e-05, %v1051_v44  ;;  %v1082_v26 = vadd.f32 1e-05, %v1050_v48 }
 0x21a   : > { %v973_v51 = vpop.xlane.xlu1 %972  ;;  %v970_v56 = vpop.xlane.xlu0 %969 }
 0x21b   : > { %5191 = vrsqrt.f32 %v1083_v53  ;;  %v1053_v57 = vmul.f32 0.0625, %v973_v51  ;;  %v1052_v20 = vmul.f32 0.0625, %v970_v56 }
 0x21c   : > { %v5184_v63 = vpop.eup %5183  ;;  %5193 = vrsqrt.f32 %v1082_v26 }
 0x21d   : > { %v1143_v40 = vmul.f32 %v5184_v63, %v5814_v1  ;;  %v1085_v3 = vadd.f32 1e-05, %v1053_v57  ;;  %v1084_v8 = vadd.f32 1e-05, %v1052_v20 }
 0x21e   : > { %v979_v60 = vpop.xlane.xlu1 %978  ;;  %v976_v10 = vpop.xlane.xlu0 %975 }
 0x21f   : > { %v1180_v54 = vmul.f32 %v6052_v58, %v1143_v40  ;;  %5195 = vrsqrt.f32 %v1085_v3  ;;  %v1055_v28 = vmul.f32 0.0625, %v979_v60  ;;  %v1054_v18 = vmul.f32 0.0625, %v976_v10 }
 0x220   : > { %v5186_v6 = vpop.eup %5185  ;;  %5197 = vrsqrt.f32 %v1084_v8 }
 0x221   : > { %v5188_v36 = vpop.eup %5187  ;;  %v1217_v22 = vadd.f32 %v6058_v55, %v1180_v54  ;;  %v1145_v1 = vmul.f32 %v5186_v6, %v5819_v11  ;;  %v1087_v23 = vadd.f32 1e-05, %v1055_v28  ;;  %v1086_v4 = vadd.f32 1e-05, %v1054_v18 }
 0x222   : > { %v1142_v25 = vmul.f32 %v5188_v36, %v5822_v14  ;;  %v985_v37 = vpop.xlane.xlu1 %984  ;;  %v982_v30 = vpop.xlane.xlu0 %981 }
 0x223   : > { %1249 = vst.msk [vmem:[#allocation2 + $0x8] sm:$0xff] %vm756_vm2, %v1217_v22  ;;  %v1182_v16 = vmul.f32 %v6052_v58, %v1145_v1  ;;  %5199 = vrsqrt.f32 %v1087_v23  ;;  %v1057_v33 = vmul.f32 0.0625, %v985_v37  ;;  %v1056_v34 = vmul.f32 0.0625, %v982_v30 }
 0x224   : > { %v5190_v45 = vpop.eup %5189  ;;  %v1179_v12 = vmul.f32 %v6052_v58, %v1142_v25  ;;  %5201 = vrsqrt.f32 %v1086_v4 }
 0x225   : > { %v1219_v44 = vadd.f32 %v6058_v55, %v1182_v16  ;;  %v1144_v11 = vmul.f32 %v5190_v45, %v5830_v24  ;;  %v1089_v48 = vadd.f32 1e-05, %v1057_v33  ;;  %v1088_v53 = vadd.f32 1e-05, %v1056_v34 }
 0x226   : > { %v1216_v14 = vadd.f32 %v6058_v55, %v1179_v12  ;;  %v991_v26 = vpop.xlane.xlu1 %990  ;;  %v988_v51 = vpop.xlane.xlu0 %987 }
 0x227   : > { %1251 = vst.msk [vmem:[#allocation2 + $0x18] sm:$0xff] %vm756_vm2, %v1219_v44  ;;  %v1181_v56 = vmul.f32 %v6052_v58, %v1144_v11  ;;  %5203 = vrsqrt.f32 %v1089_v48  ;;  %v1059_v57 = vmul.f32 0.0625, %v991_v26  ;;  %v1058_v20 = vmul.f32 0.0625, %v988_v51 }
 0x228   : > { %v5192_v63 = vpop.eup %5191  ;;  %1248 = vst.msk [vmem:[#allocation2] sm:$0xff] %vm756_vm2, %v1216_v14  ;;  %5205 = vrsqrt.f32 %v1088_v53 }
 0x229   : > { %v5194_v40 = vpop.eup %5193  ;;  %v1218_v24 = vadd.f32 %v6058_v55, %v1181_v56  ;;  %v1147_v3 = vmul.f32 %v5192_v63, %v5840_v35  ;;  %v1091_v8 = vadd.f32 1e-05, %v1059_v57  ;;  %v1090_v60 = vadd.f32 1e-05, %v1058_v20 }
 0x22a   : > { %v1146_v10 = vmul.f32 %v5194_v40, %v5835_v31  ;;  %v997_v54 = vpop.xlane.xlu1 %996  ;;  %v994_v28 = vpop.xlane.xlu0 %993 }
 0x22b   : > { %1250 = vst.msk [vmem:[#allocation2 + $0x10] sm:$0xff] %vm756_vm2, %v1218_v24  ;;  %v1184_v18 = vmul.f32 %v6052_v58, %v1147_v3  ;;  %5207 = vrsqrt.f32 %v1091_v8  ;;  %v1061_v6 = vmul.f32 0.0625, %v997_v54  ;;  %v1060_v36 = vmul.f32 0.0625, %v994_v28 }
 0x22c   : > { %v5196_v22 = vpop.eup %5195  ;;  %v1183_v1 = vmul.f32 %v6052_v58, %v1146_v10  ;;  %5209 = vrsqrt.f32 %v1090_v60 }
 0x22d   : > { %v5198_v23 = vpop.eup %5197  ;;  %v1221_v35 = vadd.f32 %v6058_v55, %v1184_v18  ;;  %v1149_v4 = vmul.f32 %v5196_v22, %v5852_v52  ;;  %v1093_v25 = vadd.f32 1e-05, %v1061_v6  ;;  %v1092_v31 = vadd.f32 1e-05, %v1060_v36 }
 0x22e   : > { %v1220_v37 = vadd.f32 %v6058_v55, %v1183_v1  ;;  %v1148_v30 = vmul.f32 %v5198_v23, %v5846_v47  ;;  %v1003_v16 = vpop.xlane.xlu1 %1002  ;;  %v1000_v33 = vpop.xlane.xlu0 %999 }
 0x22f   : > { %1253 = vst.msk [vmem:[#allocation2 + $0x28] sm:$0xff] %vm756_vm2, %v1221_v35  ;;  %v1186_v34 = vmul.f32 %v6052_v58, %v1149_v4  ;;  %5211 = vrsqrt.f32 %v1093_v25  ;;  %v1063_v45 = vmul.f32 0.0625, %v1003_v16  ;;  %v1062_v12 = vmul.f32 0.0625, %v1000_v33 }
 0x230   : > { %v5200_v44 = vpop.eup %5199  ;;  %1252 = vst.msk [vmem:[#allocation2 + $0x20] sm:$0xff] %vm756_vm2, %v1220_v37  ;;  %v1185_v52 = vmul.f32 %v6052_v58, %v1148_v30  ;;  %5213 = vrsqrt.f32 %v1092_v31 }
 0x231   : > { %v5202_v11 = vpop.eup %5201  ;;  %v1223_v48 = vadd.f32 %v6058_v55, %v1186_v34  ;;  %v1151_v47 = vmul.f32 %v5200_v44, %v5864_v9  ;;  %v1095_v53 = vadd.f32 1e-05, %v1063_v45  ;;  %v1094_v14 = vadd.f32 1e-05, %v1062_v12 }
 0x232   : > { %v1222_v26 = vadd.f32 %v6058_v55, %v1185_v52  ;;  %v1150_v51 = vmul.f32 %v5202_v11, %v5858_v61  ;;  %v1009_v56 = vpop.xlane.xlu1 %1008  ;;  %v1006_v57 = vpop.xlane.xlu0 %1005 }
 0x233   : > { %1255 = vst.msk [vmem:[#allocation2 + $0x38] sm:$0xff] %vm756_vm2, %v1223_v48  ;;  %v1188_v20 = vmul.f32 %v6052_v58, %v1151_v47  ;;  %5215 = vrsqrt.f32 %v1095_v53  ;;  %v1065_v63 = vmul.f32 0.0625, %v1009_v56  ;;  %v1064_v40 = vmul.f32 0.0625, %v1006_v57 }
 0x234   : > { %v5204_v24 = vpop.eup %5203  ;;  %1254 = vst.msk [vmem:[#allocation2 + $0x30] sm:$0xff] %vm756_vm2, %v1222_v26  ;;  %v1187_v9 = vmul.f32 %v6052_v58, %v1150_v51  ;;  %5217 = vrsqrt.f32 %v1094_v14 }
 0x235   : > { %v5206_v3 = vpop.eup %5205  ;;  %v1225_v8 = vadd.f32 %v6058_v55, %v1188_v20  ;;  %v1153_v61 = vmul.f32 %v5204_v24, %v5876_v43  ;;  %v1097_v60 = vadd.f32 1e-05, %v1065_v63  ;;  %v1096_v10 = vadd.f32 1e-05, %v1064_v40 }
 0x236   : > { %v1224_v54 = vadd.f32 %v6058_v55, %v1187_v9  ;;  %v1152_v28 = vmul.f32 %v5206_v3, %v5870_v5  ;;  %v1015_v18 = vpop.xlane.xlu1 %1014  ;;  %v1012_v6 = vpop.xlane.xlu0 %1011 }
 0x237   : > { %1257 = vst.msk [vmem:[#allocation2 + $0x48] sm:$0xff] %vm756_vm2, %v1225_v8  ;;  %v1190_v36 = vmul.f32 %v6052_v58, %v1153_v61  ;;  %5219 = vrsqrt.f32 %v1097_v60  ;;  %v1067_v22 = vmul.f32 0.0625, %v1015_v18  ;;  %v1066_v1 = vmul.f32 0.0625, %v1012_v6 }
 0x238   : > { %v5208_v23 = vpop.eup %5207  ;;  %1256 = vst.msk [vmem:[#allocation2 + $0x40] sm:$0xff] %vm756_vm2, %v1224_v54  ;;  %v1189_v43 = vmul.f32 %v6052_v58, %v1152_v28  ;;  %5221 = vrsqrt.f32 %v1096_v10 }
 0x239   : > { %v5210_v35 = vpop.eup %5209  ;;  %v1227_v4 = vadd.f32 %v6058_v55, %v1190_v36  ;;  %v1155_v5 = vmul.f32 %v5208_v23, %v5888_v42  ;;  %v1099_v25 = vadd.f32 1e-05, %v1067_v22  ;;  %v1098_v31 = vadd.f32 1e-05, %v1066_v1 }
 0x23a   : > { %v1226_v37 = vadd.f32 %v6058_v55, %v1189_v43  ;;  %v1154_v30 = vmul.f32 %v5210_v35, %v5882_v13  ;;  %v1021_v16 = vpop.xlane.xlu1 %1020  ;;  %v1018_v33 = vpop.xlane.xlu0 %1017 }
 0x23b   : > { %1259 = vst.msk [vmem:[#allocation2 + $0x58] sm:$0xff] %vm756_vm2, %v1227_v4  ;;  %v1192_v34 = vmul.f32 %v6052_v58, %v1155_v5  ;;  %5223 = vrsqrt.f32 %v1099_v25  ;;  %v1069_v45 = vmul.f32 0.0625, %v1021_v16  ;;  %v1068_v12 = vmul.f32 0.0625, %v1018_v33 }
 0x23c   : > { %v5212_v44 = vpop.eup %5211  ;;  %1258 = vst.msk [vmem:[#allocation2 + $0x50] sm:$0xff] %vm756_vm2, %v1226_v37  ;;  %v1191_v42 = vmul.f32 %v6052_v58, %v1154_v30  ;;  %5225 = vrsqrt.f32 %v1098_v31 }
 0x23d   : > { %v5214_v52 = vpop.eup %5213  ;;  %v1229_v11 = vadd.f32 %v6058_v55, %v1192_v34  ;;  %v1157_v13 = vmul.f32 %v5212_v44, %v5900_v62  ;;  %v1101_v48 = vadd.f32 1e-05, %v1069_v45  ;;  %v1100_v47 = vadd.f32 1e-05, %v1068_v12 }
 0x23e   : > { %v1228_v53 = vadd.f32 %v6058_v55, %v1191_v42  ;;  %v1156_v14 = vmul.f32 %v5214_v52, %v5894_v21  ;;  %v1027_v26 = vpop.xlane.xlu1 %1026  ;;  %v1024_v51 = vpop.xlane.xlu0 %1023 }
 0x23f   : > { %1261 = vst.msk [vmem:[#allocation2 + $0x68] sm:$0xff] %vm756_vm2, %v1229_v11  ;;  %v1194_v56 = vmul.f32 %v6052_v58, %v1157_v13  ;;  %5227 = vrsqrt.f32 %v1101_v48  ;;  %v1071_v57 = vmul.f32 0.0625, %v1027_v26  ;;  %v1070_v20 = vmul.f32 0.0625, %v1024_v51 }
 0x240   : > { %v5216_v63 = vpop.eup %5215  ;;  %1260 = vst.msk [vmem:[#allocation2 + $0x60] sm:$0xff] %vm756_vm2, %v1228_v53  ;;  %v1193_v62 = vmul.f32 %v6052_v58, %v1156_v14  ;;  %5229 = vrsqrt.f32 %v1100_v47 }
 0x241   : > { %v5218_v40 = vpop.eup %5217  ;;  %v1231_v24 = vadd.f32 %v6058_v55, %v1194_v56  ;;  %v1159_v21 = vmul.f32 %v5216_v63, %v5912_v15  ;;  %v1103_v9 = vadd.f32 1e-05, %v1071_v57  ;;  %v1102_v3 = vadd.f32 1e-05, %v1070_v20 }
 0x242   : > { %v1230_v8 = vadd.f32 %v6058_v55, %v1193_v62  ;;  %v1158_v61 = vmul.f32 %v5218_v40, %v5906_v29  ;;  %v1033_v60 = vpop.xlane.xlu1 %1032  ;;  %v1030_v10 = vpop.xlane.xlu0 %1029 }
 0x243   : > { %1263 = vst.msk [vmem:[#allocation2 + $0x78] sm:$0xff] %vm756_vm2, %v1231_v24  ;;  %v1196_v54 = vmul.f32 %v6052_v58, %v1159_v21  ;;  %5231 = vrsqrt.f32 %v1103_v9  ;;  %v1073_v28 = vmul.f32 0.0625, %v1033_v60  ;;  %v1072_v18 = vmul.f32 0.0625, %v1030_v10 }
 0x244   : > { %v5220_v6 = vpop.eup %5219  ;;  %1262 = vst.msk [vmem:[#allocation2 + $0x70] sm:$0xff] %vm756_vm2, %v1230_v8  ;;  %v1195_v15 = vmul.f32 %v6052_v58, %v1158_v61  ;;  %5233 = vrsqrt.f32 %v1102_v3 }
 0x245   : > { %v5222_v36 = vpop.eup %5221  ;;  %v1233_v22 = vadd.f32 %v6058_v55, %v1196_v54  ;;  %v1161_v29 = vmul.f32 %v5220_v6, %v5924_v39  ;;  %v1105_v1 = vadd.f32 1e-05, %v1073_v28  ;;  %v1104_v23 = vadd.f32 1e-05, %v1072_v18 }
 0x246   : > { %v1232_v43 = vadd.f32 %v6058_v55, %v1195_v15  ;;  %v1160_v35 = vmul.f32 %v5222_v36, %v5918_v38  ;;  %v1039_v4 = vpop.xlane.xlu1 %1038  ;;  %v1036_v5 = vpop.xlane.xlu0 %1035 }
 0x247   : > { %1265 = vst.msk [vmem:[#allocation2 + $0x88] sm:$0xff] %vm756_vm2, %v1233_v22  ;;  %v1198_v25 = vmul.f32 %v6052_v58, %v1161_v29  ;;  %5235 = vrsqrt.f32 %v1105_v1  ;;  %v1075_v31 = vmul.f32 0.0625, %v1039_v4  ;;  %v1074_v37 = vmul.f32 0.0625, %v1036_v5 }
 0x248   : > { %v5224_v30 = vpop.eup %5223  ;;  %1264 = vst.msk [vmem:[#allocation2 + $0x80] sm:$0xff] %vm756_vm2, %v1232_v43  ;;  %v1197_v39 = vmul.f32 %v6052_v58, %v1160_v35  ;;  %5237 = vrsqrt.f32 %v1104_v23 }
 0x249   : > { %v5226_v16 = vpop.eup %5225  ;;  %v1235_v33 = vadd.f32 %v6058_v55, %v1198_v25  ;;  %v1163_v38 = vmul.f32 %v5224_v30, %v5936_v46  ;;  %v1107_v34 = vadd.f32 1e-05, %v1075_v31  ;;  %v1106_v45 = vadd.f32 1e-05, %v1074_v37 }
 0x24a   : > { %v1234_v12 = vadd.f32 %v6058_v55, %v1197_v39  ;;  %v1162_v44 = vmul.f32 %v5226_v16, %v5930_v49  ;;  %v1045_v42 = vpop.xlane.xlu1 %1044  ;;  %v1042_v52 = vpop.xlane.xlu0 %1041 }
 0x24b   : > { %1267 = vst.msk [vmem:[#allocation2 + $0x98] sm:$0xff] %vm756_vm2, %v1235_v33  ;;  %v1200_v11 = vmul.f32 %v6052_v58, %v1163_v38  ;;  %5239 = vrsqrt.f32 %v1107_v34  ;;  %v1077_v13 = vmul.f32 0.0625, %v1045_v42  ;;  %v1076_v48 = vmul.f32 0.0625, %v1042_v52 }
 0x24c   : > { %v5228_v47 = vpop.eup %5227  ;;  %1266 = vst.msk [vmem:[#allocation2 + $0x90] sm:$0xff] %vm756_vm2, %v1234_v12  ;;  %v1199_v46 = vmul.f32 %v6052_v58, %v1162_v44  ;;  %5241 = vrsqrt.f32 %v1106_v45 }
 0x24d   : > { %v5230_v53 = vpop.eup %5229  ;;  %v1237_v14 = vadd.f32 %v6058_v55, %v1200_v11  ;;  %v1165_v49 = vmul.f32 %v5228_v47, %v5948_v0  ;;  %v1109_v26 = vadd.f32 1e-05, %v1077_v13  ;;  %v1108_v51 = vadd.f32 1e-05, %v1076_v48 }
 0x24e   : > { %v1236_v56 = vadd.f32 %v6058_v55, %v1199_v46  ;;  %v1164_v57 = vmul.f32 %v5230_v53, %v5942_v59 }
 0x24f   : > { %1269 = vst.msk [vmem:[#allocation2 + $0xa8] sm:$0xff] %vm756_vm2, %v1237_v14  ;;  %v1202_v20 = vmul.f32 %v6052_v58, %v1165_v49  ;;  %5243 = vrsqrt.f32 %v1109_v26 }
 0x250   : > { %v5232_v63 = vpop.eup %5231  ;;  %1268 = vst.msk [vmem:[#allocation2 + $0xa0] sm:$0xff] %vm756_vm2, %v1236_v56  ;;  %v1201_v62 = vmul.f32 %v6052_v58, %v1164_v57  ;;  %5245 = vrsqrt.f32 %v1108_v51 }
 0x251   : > { %v5234_v40 = vpop.eup %5233  ;;  %v1239_v0 = vadd.f32 %v6058_v55, %v1202_v20  ;;  %v1167_v24 = vmul.f32 %v5232_v63, %v5960_v19 }
 0x252   : > { %v1238_v21 = vadd.f32 %v6058_v55, %v1201_v62  ;;  %v1166_v59 = vmul.f32 %v5234_v40, %v5954_v7 }
 0x253   : > { %1271 = vst.msk [vmem:[#allocation2 + $0xb8] sm:$0xff] %vm756_vm2, %v1239_v0  ;;  %v1204_v9 = vmul.f32 %v6052_v58, %v1167_v24  ;;  %v1379_v0 = vld [vmem:[%s7251_s7 + $0x8] sm:$0xff]  ;;  %v1380_v24 = vld [vmem:[%s7251_s7 + $0x10] sm:$0xff] }
 0x254   : > { %v5236_v3 = vpop.eup %5235  ;;  %1270 = vst.msk [vmem:[#allocation2 + $0xb0] sm:$0xff] %vm756_vm2, %v1238_v21  ;;  %v1203_v8 = vmul.f32 %v6052_v58, %v1166_v59  ;;  %v1381_v21 = vld [vmem:[%s7251_s7 + $0x18] sm:$0xff]  ;;  %v1382_v59 = vld [vmem:[%s7251_s7 + $0x20] sm:$0xff] }
 0x255   : > { %v5238_v61 = vpop.eup %5237  ;;  %v1241_v60 = vadd.f32 %v6058_v55, %v1204_v9  ;;  %v1169_v10 = vmul.f32 %v5236_v3, %v5972_v32  ;;  %v1383_v9 = vld [vmem:[%s7251_s7 + $0x28] sm:$0xff]  ;;  %v1384_v3 = vld [vmem:[%s7251_s7 + $0x30] sm:$0xff] }
 0x256   : > { %v1240_v19 = vadd.f32 %v6058_v55, %v1203_v8  ;;  %v1168_v54 = vmul.f32 %v5238_v61, %v5966_v17  ;;  %v1385_v8 = vld [vmem:[%s7251_s7 + $0x38] sm:$0xff]  ;;  %v1386_v61 = vld [vmem:[%s7251_s7 + $0x40] sm:$0xff] }
 0x257   : > { %1273 = vst.msk [vmem:[#allocation2 + $0xc8] sm:$0xff] %vm756_vm2, %v1241_v60  ;;  %v1206_v7 = vmul.f32 %v6052_v58, %v1169_v10  ;;  %v1387_v60 = vld [vmem:[%s7251_s7 + $0x48] sm:$0xff]  ;;  %v1388_v10 = vld [vmem:[%s7251_s7 + $0x50] sm:$0xff] }
 0x258   : > { %v5240_v28 = vpop.eup %5239  ;;  %1272 = vst.msk [vmem:[#allocation2 + $0xc0] sm:$0xff] %vm756_vm2, %v1240_v19  ;;  %v1205_v18 = vmul.f32 %v6052_v58, %v1168_v54  ;;  %v1389_v19 = vld [vmem:[%s7251_s7 + $0x58] sm:$0xff]  ;;  %v1390_v54 = vld [vmem:[%s7251_s7 + $0x60] sm:$0xff] }
 0x259   : > { %v5242_v6 = vpop.eup %5241  ;;  %v1243_v15 = vadd.f32 %v6058_v55, %v1206_v7  ;;  %v1171_v36 = vmul.f32 %v5240_v28, %v5984_v50  ;;  %v1391_v7 = vld [vmem:[%s7251_s7 + $0x68] sm:$0xff]  ;;  %v1392_v28 = vld [vmem:[%s7251_s7 + $0x70] sm:$0xff] }
 0x25a   : > { %v1242_v32 = vadd.f32 %v6058_v55, %v1205_v18  ;;  %v1170_v22 = vmul.f32 %v5242_v6, %v5978_v27  ;;  %v1393_v18 = vld [vmem:[%s7251_s7 + $0x78] sm:$0xff]  ;;  %v1556_v6 = vld [vmem:[%s7252_s8 + $0x8] sm:$0xff] }
 0x25b   : > { %1275 = vst.msk [vmem:[#allocation2 + $0xd8] sm:$0xff] %vm756_vm2, %v1243_v15  ;;  %v1208_v17 = vmul.f32 %v6052_v58, %v1171_v36  ;;  %v1555_v15 = vld [vmem:[%s7252_s8] sm:$0xff] }
 0x25c   : > { %v5244_v29 = vpop.eup %5243  ;;  %1274 = vst.msk [vmem:[#allocation2 + $0xd0] sm:$0xff] %vm756_vm2, %v1242_v32  ;;  %v1207_v1 = vmul.f32 %v6052_v58, %v1170_v22 }
 0x25d   : > { %v5246_v23 = vpop.eup %5245  ;;  %v1245_v43 = vadd.f32 %v6058_v55, %v1208_v17  ;;  %v1173_v35 = vmul.f32 %v5244_v29, %v5995_v2 }
 0x25e   : > { %v1244_v27 = vadd.f32 %v6058_v55, %v1207_v1  ;;  %v1172_v50 = vmul.f32 %v5246_v23, %v5990_v41 }
 0x25f   : > { %1277 = vst.msk [vmem:[#allocation2 + $0xe8] sm:$0xff] %vm756_vm2, %v1245_v43  ;;  %v1210_v4 = vmul.f32 %v6052_v58, %v1173_v35 }
 0x260   : > { %1276 = vst.msk [vmem:[#allocation2 + $0xe0] sm:$0xff] %vm756_vm2, %v1244_v27  ;;  %v1209_v5 = vmul.f32 %v6052_v58, %v1172_v50 }
 0x261   : > { %v1247_v25 = vadd.f32 %v6058_v55, %v1210_v4 }
 0x262   : > { %v1246_v2 = vadd.f32 %v6058_v55, %v1209_v5 }
 0x263   : > { %1279 = vst.msk [vmem:[#allocation2 + $0xf8] sm:$0xff] %vm756_vm2, %v1247_v25 }
 0x264   : > { %1278 = vst.msk [vmem:[#allocation2 + $0xf0] sm:$0xff] %vm756_vm2, %v1246_v2 }
 0x26b   : > { %v4385_v41 = vld [vmem:[%s1347_s28 + $0x70] sm:$0xff]  ;;  %v4384_v31 = vld [vmem:[%s1347_s28 + $0x60] sm:$0xff] }
 0x26c   : > { %v4383_v37 = vld [vmem:[%s1347_s28 + $0x50] sm:$0xff]  ;;  %1377 = vst.msk [vmem:[#allocation3 + $0x78] sm:$0xff] %vm756_vm2, %v4385_v41  ;;  %1373 = vst.msk [vmem:[#allocation3 + $0x70] sm:$0xff] %vm756_vm2, %v4384_v31  ;;  %v4382_v58 = vld [vmem:[%s1347_s28 + $0x40] sm:$0xff] }
 0x26d   : > { %1369 = vst.msk [vmem:[#allocation3 + $0x68] sm:$0xff] %vm756_vm2, %v4383_v37  ;;  %v4381_v30 = vld [vmem:[%s1347_s28 + $0x30] sm:$0xff]  ;;  %v4380_v39 = vld [vmem:[%s1347_s28 + $0x20] sm:$0xff]  ;;  %1365 = vst.msk [vmem:[#allocation3 + $0x60] sm:$0xff] %vm756_vm2, %v4382_v58 }
 0x26e   : > { %1361 = vst.msk [vmem:[#allocation3 + $0x58] sm:$0xff] %vm756_vm2, %v4381_v30  ;;  %1357 = vst.msk [vmem:[#allocation3 + $0x50] sm:$0xff] %vm756_vm2, %v4380_v39  ;;  %v4379_v55 = vld [vmem:[%s1347_s28 + $0x10] sm:$0xff]  ;;  %v1348_v16 = vld [vmem:[%s1347_s28] sm:$0xff] }
 0x26f   : > { %v4378_v33 = vld [vmem:[%s1314_s29 + $0x70] sm:$0xff]  ;;  %1353 = vst.msk [vmem:[#allocation3 + $0x48] sm:$0xff] %vm756_vm2, %v4379_v55  ;;  %1349 = vst.msk [vmem:[#allocation3 + $0x40] sm:$0xff] %vm756_vm2, %v1348_v16  ;;  %v4377_v38 = vld [vmem:[%s1314_s29 + $0x60] sm:$0xff] }
 0x270   : > { %1344 = vst.msk [vmem:[#allocation3 + $0x38] sm:$0xff] %vm756_vm2, %v4378_v33  ;;  %v4376_v34 = vld [vmem:[%s1314_s29 + $0x50] sm:$0xff]  ;;  %v4375_v45 = vld [vmem:[%s1314_s29 + $0x40] sm:$0xff]  ;;  %1340 = vst.msk [vmem:[#allocation3 + $0x30] sm:$0xff] %vm756_vm2, %v4377_v38 }
 0x271   : > { %1336 = vst.msk [vmem:[#allocation3 + $0x28] sm:$0xff] %vm756_vm2, %v4376_v34  ;;  %1332 = vst.msk [vmem:[#allocation3 + $0x20] sm:$0xff] %vm756_vm2, %v4375_v45  ;;  %v4374_v12 = vld [vmem:[%s1314_s29 + $0x30] sm:$0xff]  ;;  %v4373_v44 = vld [vmem:[%s1314_s29 + $0x20] sm:$0xff] }
 0x272   : > { %v4372_v42 = vld [vmem:[%s1314_s29 + $0x10] sm:$0xff]  ;;  %1328 = vst.msk [vmem:[#allocation3 + $0x18] sm:$0xff] %vm756_vm2, %v4374_v12  ;;  %1324 = vst.msk [vmem:[#allocation3 + $0x10] sm:$0xff] %vm756_vm2, %v4373_v44  ;;  %v1315_v52 = vld [vmem:[%s1314_s29] sm:$0xff] }
 0x273   : > { %1320 = vst.msk [vmem:[#allocation3 + $0x8] sm:$0xff] %vm756_vm2, %v4372_v42  ;;  %1316 = vst.msk [vmem:[#allocation3] sm:$0xff] %vm756_vm2, %v1315_v52  ;;  %v1409_v11 = vld [vmem:[#allocation3 + $0x78] sm:$0xff]  ;;  %v1408_v13 = vld [vmem:[#allocation3 + $0x70] sm:$0xff] }
 0x274   : > { %4829 = vmatprep.subr.mxu1 %v1409_v11  ;;  %v1407_v48 = vld [vmem:[#allocation3 + $0x68] sm:$0xff]  ;;  %v1406_v47 = vld [vmem:[#allocation3 + $0x60] sm:$0xff] }
 0x275   : > { %4830 = vmatpush3.msra.mxu1 %v1409_v11  ;;  %v1405_v46 = vld [vmem:[#allocation3 + $0x58] sm:$0xff]  ;;  %v1404_v53 = vld [vmem:[#allocation3 + $0x50] sm:$0xff] }
 0x276   : > { %4831 = vmatprep.subr.mxu1 %v1408_v13  ;;  %v1403_v14 = vld [vmem:[#allocation3 + $0x48] sm:$0xff]  ;;  %v1402_v49 = vld [vmem:[#allocation3 + $0x40] sm:$0xff] }
 0x277   : > { %4832 = vmatpush3.msra.mxu1 %v1408_v13  ;;  %v1401_v26 = vld [vmem:[#allocation3 + $0x38] sm:$0xff]  ;;  %v1400_v51 = vld [vmem:[#allocation3 + $0x30] sm:$0xff] }
 0x278   : > { %4833 = vmatprep.subr.mxu1 %v1407_v48  ;;  %v1399_v56 = vld [vmem:[#allocation3 + $0x28] sm:$0xff]  ;;  %v1398_v57 = vld [vmem:[#allocation3 + $0x20] sm:$0xff] }
 0x279   : > { %4834 = vmatpush3.msra.mxu1 %v1407_v48  ;;  %v1397_v20 = vld [vmem:[#allocation3 + $0x18] sm:$0xff]  ;;  %v1396_v63 = vld [vmem:[#allocation3 + $0x10] sm:$0xff] }
 0x27a   : > { %4835 = vmatprep.subr.mxu1 %v1406_v47  ;;  %v1395_v62 = vld [vmem:[#allocation3 + $0x8] sm:$0xff]  ;;  %v1394_v40 = vld [vmem:[#allocation3] sm:$0xff] }
 0x27b   : > { %4836 = vmatpush3.msra.mxu1 %v1406_v47 }
 0x27c   : > { %4837 = vmatprep.subr.mxu1 %v1405_v46 }
 0x27d   : > { %4838 = vmatpush3.msra.mxu1 %v1405_v46 }
 0x27e   : > { %4839 = vmatprep.subr.mxu1 %v1404_v53 }
 0x27f   : > { %4840 = vmatpush3.msra.mxu1 %v1404_v53 }
 0x280   : > { %4841 = vmatprep.subr.mxu1 %v1403_v14 }
 0x281   : > { %4842 = vmatpush3.msra.mxu1 %v1403_v14 }
 0x282   : > { %4843 = vmatprep.subr.mxu1 %v1402_v49 }
 0x283   : > { %4844 = vmatpush3.msra.mxu1 %v1402_v49 }
 0x284   : > { %4845 = vmatprep.subr.mxu1 %v1401_v26 }
 0x285   : > { %4846 = vmatpush3.msra.mxu1 %v1401_v26 }
 0x286   : > { %4847 = vmatprep.subr.mxu1 %v1400_v51 }
 0x287   : > { %4848 = vmatpush3.msra.mxu1 %v1400_v51 }
 0x288   : > { %4849 = vmatprep.subr.mxu1 %v1399_v56 }
 0x289   : > { %4850 = vmatpush3.msra.mxu1 %v1399_v56 }
 0x28a   : > { %4851 = vmatprep.subr.mxu1 %v1398_v57 }
 0x28b   : > { %4852 = vmatpush3.msra.mxu1 %v1398_v57 }
 0x28c   : > { %4853 = vmatprep.subr.mxu1 %v1397_v20 }
 0x28d   : > { %4854 = vmatpush3.msra.mxu1 %v1397_v20 }
 0x28e   : > { %4855 = vmatprep.subr.mxu1 %v1396_v63 }
 0x28f   : > { %4856 = vmatpush3.msra.mxu1 %v1396_v63 }
 0x290   : > { %4857 = vmatprep.subr.mxu1 %v1395_v62 }
 0x291   : > { %4858 = vmatpush3.msra.mxu1 %v1395_v62 }
 0x292   : > { %4859 = vmatprep.subr.mxu1 %v1394_v40 }
 0x293   : > { %4860 = vmatpush3.msra.mxu1 %v1394_v40 }
 0x294   : > { %4862 = vmatmul.mubr.f32.vlgmr.msra.gmra.mxu1 %v1379_v0  ;;  %4885 = vmatprep.subr.mxu1 %v1556_v6 }
 0x295   : > { %4864 = vmatprep.mubr.f32.mxu1 %v1380_v24  ;;  %4886 = vmatpush3.msra.mxu1 %v1556_v6 }
 0x296   : > { %4887 = vmatprep.subr.mxu1 %v1555_v15 }
 0x297   : > { %4888 = vmatpush3.msra.mxu1 %v1555_v15 }
 0x298   : > { %4865 = vmatmul.mubr.f32.gmra.mxu1 %v1381_v21 }
 0x299   : > { %4867 = vmatprep.mubr.f32.mxu1 %v1382_v59 }
 0x29c   : > { %4868 = vmatmul.mubr.f32.gmra.mxu1 %v1383_v9 }
 0x29d   : > { %4870 = vmatprep.mubr.f32.mxu1 %v1384_v3 }
 0x2a0   : > { %4871 = vmatmul.mubr.f32.gmra.mxu1 %v1385_v8 }
 0x2a1   : > { %4873 = vmatprep.mubr.f32.mxu1 %v1386_v61 }
 0x2a4   : > { %4874 = vmatmul.mubr.f32.gmra.mxu1 %v1387_v60 }
 0x2a5   : > { %4876 = vmatprep.mubr.f32.mxu1 %v1388_v10 }
 0x2a8   : > { %4877 = vmatmul.mubr.f32.gmra.mxu1 %v1389_v19 }
 0x2a9   : > { %4879 = vmatprep.mubr.f32.mxu1 %v1390_v54 }
 0x2ac   : > { %4880 = vmatmul.mubr.f32.gmra.mxu1 %v1391_v7 }
 0x2ad   : > { %4882 = vmatprep.mubr.f32.mxu1 %v1392_v28 }
 0x2b0   : > { %4883 = vmatmul.mubr.f32.gmra.mxu1 %v1393_v18 }
 0x354   : > { %v4863_v36 = vpop.f32.mrf.mxu1 }
 0x356   : > { %v1476_v32 = vpop.f32.mrf.mxu1 }
 0x357   : > { %4889 = vmatprep.mubr.msk.f32.mxu1 %vm756_vm2, %v1476_v32 }
 0x358   : > { %v4866_v22 = vpop.f32.mrf.mxu1  ;;  %4890 = vmatmul.mubr.msk.f32.vlgmr.msra.gmra.mxu1 %vm756_vm2, %v4863_v36 }
 0x35a   : > { %v1486_v17 = vpop.f32.mrf.mxu1 }
 0x35b   : > { %4892 = vmatprep.mubr.msk.f32.mxu1 %vm756_vm2, %v1486_v17 }
 0x35c   : > { %v4869_v29 = vpop.f32.mrf.mxu1  ;;  %4893 = vmatmul.mubr.msk.f32.gmra.mxu1 %vm756_vm2, %v4866_v22 }
 0x35e   : > { %v1496_v1 = vpop.f32.mrf.mxu1 }
 0x35f   : > { %4895 = vmatprep.mubr.msk.f32.mxu1 %vm756_vm2, %v1496_v1 }
 0x360   : > { %v4872_v23 = vpop.f32.mrf.mxu1  ;;  %4896 = vmatmul.mubr.msk.f32.gmra.mxu1 %vm756_vm2, %v4869_v29 }
 0x362   : > { %v1506_v43 = vpop.f32.mrf.mxu1 }
 0x363   : > { %4898 = vmatprep.mubr.msk.f32.mxu1 %vm756_vm2, %v1506_v43 }
 0x364   : > { %4899 = vmatmul.mubr.msk.f32.gmra.mxu1 %vm756_vm2, %v4872_v23  ;;  %v4875_v35 = vpop.f32.mrf.mxu1 }
 0x366   : > { %v1516_v27 = vpop.f32.mrf.mxu1 }
 0x367   : > { %4901 = vmatprep.mubr.msk.f32.mxu1 %vm756_vm2, %v1516_v27 }
 0x368   : > { %v4878_v50 = vpop.f32.mrf.mxu1  ;;  %4902 = vmatmul.mubr.msk.f32.gmra.mxu1 %vm756_vm2, %v4875_v35 }
 0x36a   : > { %v1526_v4 = vpop.f32.mrf.mxu1 }
 0x36b   : > { %4904 = vmatprep.mubr.msk.f32.mxu1 %vm756_vm2, %v1526_v4 }
 0x36c   : > { %v4881_v5 = vpop.f32.mrf.mxu1  ;;  %4905 = vmatmul.mubr.msk.f32.gmra.mxu1 %vm756_vm2, %v4878_v50 }
 0x36e   : > { %v1536_v25 = vpop.f32.mrf.mxu1 }
 0x36f   : > { %4907 = vmatprep.mubr.msk.f32.mxu1 %vm756_vm2, %v1536_v25 }
 0x370   : > { %v4884_v2 = vpop.f32.mrf.mxu1  ;;  %4908 = vmatmul.mubr.msk.f32.gmra.mxu1 %vm756_vm2, %v4881_v5 }
 0x372   : > { %v1546_v41 = vpop.f32.mrf.mxu1 }
 0x373   : > { %4910 = vmatprep.mubr.msk.f32.mxu1 %vm756_vm2, %v1546_v41 }
 0x374   : > { %4911 = vmatmul.mubr.msk.f32.gmra.mxu1 %vm756_vm2, %v4884_v2 }
 0x418   : > { %v4891_v31 = vpop.f32.mrf.mxu1 }
 0x419   : > { %1752 = vst.msk [vmem:[#allocation4 + $0x8] sm:$0xff] %vm1750_vm3, %v4891_v31 }
 0x41a   : > { %v1671_v37 = vpop.f32.mrf.mxu1 }
 0x41b   : > { %1751 = vst.msk [vmem:[#allocation4] sm:$0xff] %vm1750_vm3, %v1671_v37 }
 0x41c   : > { %v4894_v58 = vpop.f32.mrf.mxu1 }
 0x41d   : > { %1754 = vst.msk [vmem:[#allocation4 + $0x18] sm:$0xff] %vm1750_vm3, %v4894_v58 }
 0x41e   : > { %v1681_v30 = vpop.f32.mrf.mxu1 }
 0x41f   : > { %1753 = vst.msk [vmem:[#allocation4 + $0x10] sm:$0xff] %vm1750_vm3, %v1681_v30 }
 0x420   : > { %v4897_v39 = vpop.f32.mrf.mxu1  ;;  %v6327_v26 = vld [vmem:[#allocation4 + $0x8] sm:$0xff] }
 0x421   : > { %1756 = vst.msk [vmem:[#allocation4 + $0x28] sm:$0xff] %vm1750_vm3, %v4897_v39 }
 0x422   : > { %v1691_v55 = vpop.f32.mrf.mxu1  ;;  %v6280_v16 = vld [vmem:[#allocation4] sm:$0xff] }
 0x423   : > { %1755 = vst.msk [vmem:[#allocation4 + $0x20] sm:$0xff] %vm1750_vm3, %v1691_v55  ;;  %4929 = vmatprep.mubr.msk.f32.mxu0 %vm1799_vm4, %v6280_v16 }
 0x424   : > { %v4900_v33 = vpop.f32.mrf.mxu1  ;;  %v6315_v14 = vld [vmem:[#allocation4 + $0x18] sm:$0xff] }
 0x425   : > { %1758 = vst.msk [vmem:[#allocation4 + $0x38] sm:$0xff] %vm1750_vm3, %v4900_v33 }
 0x426   : > { %v1701_v38 = vpop.f32.mrf.mxu1  ;;  %v6321_v49 = vld [vmem:[#allocation4 + $0x10] sm:$0xff] }
 0x427   : > { %1757 = vst.msk [vmem:[#allocation4 + $0x30] sm:$0xff] %vm1750_vm3, %v1701_v38 }
 0x428   : > { %v4903_v34 = vpop.f32.mrf.mxu1  ;;  %v6297_v52 = vld [vmem:[#allocation4 + $0x28] sm:$0xff] }
 0x429   : > { %1760 = vst.msk [vmem:[#allocation4 + $0x48] sm:$0xff] %vm1750_vm3, %v4903_v34 }
 0x42a   : > { %v1711_v45 = vpop.f32.mrf.mxu1  ;;  %v6307_v47 = vld [vmem:[#allocation4 + $0x20] sm:$0xff] }
 0x42b   : > { %1759 = vst.msk [vmem:[#allocation4 + $0x40] sm:$0xff] %vm1750_vm3, %v1711_v45 }
 0x42c   : > { %v6289_v12 = vld [vmem:[#allocation4 + $0x38] sm:$0xff]  ;;  %v4906_v44 = vpop.f32.mrf.mxu1 }
 0x42d   : > { %2233 = vrot.lane.b32.xlu1 %v6289_v12, %s5422_s15  ;;  %1797 = vrot.lane.b32.xlu0 %v6289_v12, %s5423_s26  ;;  %1762 = vst.msk [vmem:[#allocation4 + $0x58] sm:$0xff] %vm1750_vm3, %v4906_v44 }
 0x42e   : > { %v1721_v42 = vpop.f32.mrf.mxu1  ;;  %v6299_v11 = vld [vmem:[#allocation4 + $0x30] sm:$0xff] }
 0x42f   : > { %1761 = vst.msk [vmem:[#allocation4 + $0x50] sm:$0xff] %vm1750_vm3, %v1721_v42 }
 0x430   : > { %v4909_v13 = vpop.f32.mrf.mxu1  ;;  %v6371_v62 = vld [vmem:[#allocation4 + $0x48] sm:$0xff] }
 0x431   : > { %1793 = vrot.lane.b32.xlu0 %v6297_v52, %s5423_s26  ;;  %1795 = vrot.lane.b32.xlu1 %v6299_v11, %s5423_s26  ;;  %1764 = vst.msk [vmem:[#allocation4 + $0x68] sm:$0xff] %vm1750_vm3, %v4909_v13 }
 0x432   : > { %v1731_v48 = vpop.f32.mrf.mxu1  ;;  %v6387_v0 = vld [vmem:[#allocation4 + $0x40] sm:$0xff] }
 0x433   : > { %1763 = vst.msk [vmem:[#allocation4 + $0x60] sm:$0xff] %vm1750_vm3, %v1731_v48 }
 0x434   : > { %v4912_v46 = vpop.f32.mrf.mxu1  ;;  %v6353_v57 = vld [vmem:[#allocation4 + $0x58] sm:$0xff] }
 0x435   : > { %1791 = vrot.lane.b32.xlu0 %v6307_v47, %s5423_s26  ;;  %2231 = vrot.lane.b32.xlu1 %v6299_v11, %s5422_s15  ;;  %1766 = vst.msk [vmem:[#allocation4 + $0x78] sm:$0xff] %vm1750_vm3, %v4912_v46 }
 0x436   : > { %v1741_v53 = vpop.f32.mrf.mxu1  ;;  %v6373_v40 = vld [vmem:[#allocation4 + $0x50] sm:$0xff] }
 0x437   : > { %1765 = vst.msk [vmem:[#allocation4 + $0x70] sm:$0xff] %vm1750_vm3, %v1741_v53 }
 0x438   : > { %v6345_v51 = vld [vmem:[#allocation4 + $0x68] sm:$0xff] }
 0x439   : > { %1789 = vrot.lane.b32.xlu0 %v6315_v14, %s5423_s26  ;;  %2229 = vrot.lane.b32.xlu1 %v6297_v52, %s5422_s15 }
 0x43a   : > { %v6361_v63 = vld [vmem:[#allocation4 + $0x60] sm:$0xff] }
 0x43c   : > { %v6347_v56 = vld [vmem:[#allocation4 + $0x78] sm:$0xff] }
 0x43d   : > { %1787 = vrot.lane.b32.xlu0 %v6321_v49, %s5423_s26  ;;  %2227 = vrot.lane.b32.xlu1 %v6307_v47, %s5422_s15 }
 0x43e   : > { %v6355_v20 = vld [vmem:[#allocation4 + $0x70] sm:$0xff] }
 0x441   : > { %1785 = vrot.lane.b32.xlu0 %v6327_v26, %s5423_s26  ;;  %2225 = vrot.lane.b32.xlu1 %v6315_v14, %s5422_s15 }
 0x445   : > { %1783 = vrot.lane.b32.xlu0 %v6280_v16, %s5423_s26  ;;  %2223 = vrot.lane.b32.xlu1 %v6321_v49, %s5422_s15 }
 0x449   : > { %2203 = vrot.lane.b32.xlu0 %v6280_v16, %s5424_s19  ;;  %2221 = vrot.lane.b32.xlu1 %v6327_v26, %s5422_s15 }
 0x44d   : > { %2205 = vrot.lane.b32.xlu0 %v6327_v26, %s5424_s19  ;;  %2219 = vrot.lane.b32.xlu1 %v6280_v16, %s5422_s15 }
 0x451   : > { %2680 = vrot.lane.b32.xlu0 %v6345_v51, %s5423_s26  ;;  %2684 = vrot.lane.b32.xlu1 %v6347_v56, %s5423_s26 }
 0x455   : > { %2676 = vrot.lane.b32.xlu0 %v6353_v57, %s5423_s26  ;;  %2682 = vrot.lane.b32.xlu1 %v6355_v20, %s5423_s26 }
 0x459   : > { %2209 = vrot.lane.b32.xlu0 %v6315_v14, %s5424_s19  ;;  %2678 = vrot.lane.b32.xlu1 %v6361_v63, %s5423_s26 }
 0x45d   : > { %2211 = vrot.lane.b32.xlu0 %v6307_v47, %s5424_s19  ;;  %2207 = vrot.lane.b32.xlu1 %v6321_v49, %s5424_s19 }
 0x461   : > { %2672 = vrot.lane.b32.xlu0 %v6371_v62, %s5423_s26  ;;  %2674 = vrot.lane.b32.xlu1 %v6373_v40, %s5423_s26 }
 0x465   : > { %2217 = vrot.lane.b32.xlu0 %v6289_v12, %s5424_s19  ;;  %2213 = vrot.lane.b32.xlu1 %v6297_v52, %s5424_s19 }
 0x469   : > { %2038 = vrot.lane.b32.xlu0 %v6299_v11, %s5425_s21  ;;  %2215 = vrot.lane.b32.xlu1 %v6299_v11, %s5424_s19 }
 0x46d   : > { %2032 = vrot.lane.b32.xlu0 %v6315_v14, %s5425_s21  ;;  %2670 = vrot.lane.b32.xlu1 %v6387_v0, %s5423_s26 }
 0x471   : > { %2028 = vrot.lane.b32.xlu0 %v6327_v26, %s5425_s21  ;;  %2040 = vrot.lane.b32.xlu1 %v6289_v12, %s5425_s21 }
 0x475   : > { %2474 = vrot.lane.b32.xlu0 %v6289_v12, %s5426_s22  ;;  %2036 = vrot.lane.b32.xlu1 %v6297_v52, %s5425_s21 }
 0x479   : > { %2472 = vrot.lane.b32.xlu0 %v6299_v11, %s5426_s22  ;;  %2034 = vrot.lane.b32.xlu1 %v6307_v47, %s5425_s21 }
 0x47d   : > { %2470 = vrot.lane.b32.xlu0 %v6297_v52, %s5426_s22  ;;  %2030 = vrot.lane.b32.xlu1 %v6321_v49, %s5425_s21 }
 0x481   : > { %2466 = vrot.lane.b32.xlu0 %v6315_v14, %s5426_s22  ;;  %2026 = vrot.lane.b32.xlu1 %v6280_v16, %s5425_s21 }
 0x485   : > { %2921 = vrot.lane.b32.xlu0 %v6345_v51, %s5425_s21  ;;  %2468 = vrot.lane.b32.xlu1 %v6307_v47, %s5426_s22 }
 0x489   : > { %2917 = vrot.lane.b32.xlu0 %v6353_v57, %s5425_s21  ;;  %2464 = vrot.lane.b32.xlu1 %v6321_v49, %s5426_s22 }
 0x48d   : > { %2913 = vrot.lane.b32.xlu0 %v6371_v62, %s5425_s21  ;;  %2462 = vrot.lane.b32.xlu1 %v6327_v26, %s5426_s22 }
 0x491   : > { %3118 = vrot.lane.b32.xlu0 %v6347_v56, %s5422_s15  ;;  %2460 = vrot.lane.b32.xlu1 %v6280_v16, %s5426_s22 }
 0x495   : > { %2925 = vrot.lane.b32.xlu1 %v6347_v56, %s5425_s21 }
 0x499   : > { %2919 = vrot.lane.b32.xlu1 %v6361_v63, %s5425_s21 }
 0x49d   : > { %2915 = vrot.lane.b32.xlu1 %v6373_v40, %s5425_s21 }
 0x49f   : > { %v2234_v24 = vpop.permute.xlu1 %2233  ;;  %v1798_v21 = vpop.permute.xlu0 %1797 }
 0x4a0   : > { %4913 = vmatprep.subr.msk.mxu0 %vm1799_vm4, %v1798_v21  ;;  %4969 = vmatprep.subr.msk.mxu1 %vm1799_vm4, %v2234_v24 }
 0x4a1   : > { %4914 = vmatpush3.xpose.msk.msra.mxu0 %vm1799_vm4, %v1798_v21  ;;  %4970 = vmatpush3.xpose.msk.msra.mxu1 %vm1799_vm4, %v2234_v24 }
 0x4a2   : > { %2911 = vrot.lane.b32.xlu1 %v6387_v0, %s5425_s21 }
 0x4a3   : > { %v1794_v59 = vpop.permute.xlu0 %1793  ;;  %v1796_v9 = vpop.permute.xlu1 %1795 }
 0x4a4   : > { %4915 = vmatprep.subr.msk.mxu0 %vm1799_vm4, %v1796_v9 }
 0x4a5   : > { %4916 = vmatpush3.xpose.msk.msra.mxu0 %vm1799_vm4, %v1796_v9 }
 0x4a6   : > { %2923 = vrot.lane.b32.xlu1 %v6355_v20, %s5425_s21  ;;  %4917 = vmatprep.subr.msk.mxu0 %vm1799_vm4, %v1794_v59 }
 0x4a7   : > { %v1792_v3 = vpop.permute.xlu0 %1791  ;;  %v2232_v8 = vpop.permute.xlu1 %2231 }
 0x4a8   : > { %4971 = vmatprep.subr.msk.mxu1 %vm1799_vm4, %v2232_v8 }
 0x4a9   : > { %4918 = vmatpush3.xpose.msk.msra.mxu0 %vm1799_vm4, %v1794_v59  ;;  %4972 = vmatpush3.xpose.msk.msra.mxu1 %vm1799_vm4, %v2232_v8 }
 0x4aa   : > { %3116 = vrot.lane.b32.xlu1 %v6355_v20, %s5422_s15  ;;  %4919 = vmatprep.subr.msk.mxu0 %vm1799_vm4, %v1792_v3 }
 0x4ab   : > { %v1790_v61 = vpop.permute.xlu0 %1789  ;;  %v2230_v60 = vpop.permute.xlu1 %2229 }
 0x4ac   : > { %4973 = vmatprep.subr.msk.mxu1 %vm1799_vm4, %v2230_v60 }
 0x4ad   : > { %4920 = vmatpush3.xpose.msk.msra.mxu0 %vm1799_vm4, %v1792_v3  ;;  %4974 = vmatpush3.xpose.msk.msra.mxu1 %vm1799_vm4, %v2230_v60 }
 0x4ae   : > { %4921 = vmatprep.subr.msk.mxu0 %vm1799_vm4, %v1790_v61 }
 0x4af   : > { %v1788_v10 = vpop.permute.xlu0 %1787  ;;  %v2228_v19 = vpop.permute.xlu1 %2227 }
 0x4b0   : > { %4975 = vmatprep.subr.msk.mxu1 %vm1799_vm4, %v2228_v19 }
 0x4b1   : > { %4922 = vmatpush3.xpose.msk.msra.mxu0 %vm1799_vm4, %v1790_v61  ;;  %4976 = vmatpush3.xpose.msk.msra.mxu1 %vm1799_vm4, %v2228_v19 }
 0x4b2   : > { %4923 = vmatprep.subr.msk.mxu0 %vm1799_vm4, %v1788_v10 }
 0x4b3   : > { %v1786_v54 = vpop.permute.xlu0 %1785  ;;  %v2226_v7 = vpop.permute.xlu1 %2225 }
 0x4b4   : > { %4977 = vmatprep.subr.msk.mxu1 %vm1799_vm4, %v2226_v7 }
 0x4b5   : > { %4924 = vmatpush3.xpose.msk.msra.mxu0 %vm1799_vm4, %v1788_v10  ;;  %4978 = vmatpush3.xpose.msk.msra.mxu1 %vm1799_vm4, %v2226_v7 }
 0x4b6   : > { %4925 = vmatprep.subr.msk.mxu0 %vm1799_vm4, %v1786_v54 }
 0x4b7   : > { %v1784_v28 = vpop.permute.xlu0 %1783  ;;  %v2224_v18 = vpop.permute.xlu1 %2223 }
 0x4b8   : > { %4979 = vmatprep.subr.msk.mxu1 %vm1799_vm4, %v2224_v18 }
 0x4b9   : > { %4926 = vmatpush3.xpose.msk.msra.mxu0 %vm1799_vm4, %v1786_v54  ;;  %4980 = vmatpush3.xpose.msk.msra.mxu1 %vm1799_vm4, %v2224_v18 }
 0x4ba   : > { %4927 = vmatprep.subr.msk.mxu0 %vm1799_vm4, %v1784_v28 }
 0x4bb   : > { %v2204_v6 = vpop.permute.xlu0 %2203  ;;  %v2222_v15 = vpop.permute.xlu1 %2221 }
 0x4bc   : > { %4981 = vmatprep.subr.msk.mxu1 %vm1799_vm4, %v2222_v15  ;;  %4985 = vmatprep.mubr.msk.f32.mxu1 %vm1799_vm4, %v2204_v6 }
 0x4bd   : > { %4928 = vmatpush3.xpose.msk.msra.mxu0 %vm1799_vm4, %v1784_v28  ;;  %4982 = vmatpush3.xpose.msk.msra.mxu1 %vm1799_vm4, %v2222_v15 }
 0x4bf   : > { %v2206_v36 = vpop.permute.xlu0 %2205  ;;  %v2220_v32 = vpop.permute.xlu1 %2219 }
 0x4c0   : > { %4930 = vmatmul.mubr.msk.f32.vlgmr.msra.gmra.mxu0 %vm1799_vm4, %v6327_v26  ;;  %4983 = vmatprep.subr.msk.mxu1 %vm1799_vm4, %v2220_v32 }
 0x4c1   : > { %4932 = vmatprep.mubr.msk.f32.mxu0 %vm1799_vm4, %v6321_v49  ;;  %4984 = vmatpush3.xpose.msk.msra.mxu1 %vm1799_vm4, %v2220_v32 }
 0x4c3   : > { %v2681_v22 = vpop.permute.xlu0 %2680  ;;  %v2685_v17 = vpop.permute.xlu1 %2684 }
 0x4c4   : > { %4933 = vmatmul.mubr.msk.f32.gmra.mxu0 %vm1799_vm4, %v6315_v14  ;;  %4986 = vmatmul.mubr.msk.f32.vlgmr.msra.gmra.mxu1 %vm1799_vm4, %v2206_v36 }
 0x4c5   : > { %5025 = vmatprep.subr.msk.mxu1 %vm1799_vm4, %v2685_v17  ;;  %4935 = vmatprep.mubr.msk.f32.mxu0 %vm1799_vm4, %v6307_v47 }
 0x4c6   : > { %5026 = vmatpush3.xpose.msk.msra.mxu1 %vm1799_vm4, %v2685_v17 }
 0x4c7   : > { %v2677_v29 = vpop.permute.xlu0 %2676  ;;  %v2683_v1 = vpop.permute.xlu1 %2682 }
 0x4c8   : > { %4936 = vmatmul.mubr.msk.f32.gmra.mxu0 %vm1799_vm4, %v6297_v52  ;;  %5027 = vmatprep.subr.msk.mxu1 %vm1799_vm4, %v2683_v1 }
 0x4c9   : > { %4938 = vmatprep.mubr.msk.f32.mxu0 %vm1799_vm4, %v6299_v11 }
 0x4ca   : > { %5028 = vmatpush3.xpose.msk.msra.mxu1 %vm1799_vm4, %v2683_v1 }
 0x4cb   : > { %v2210_v23 = vpop.permute.xlu0 %2209  ;;  %v2679_v43 = vpop.permute.xlu1 %2678  ;;  %5029 = vmatprep.subr.msk.mxu1 %vm1799_vm4, %v2681_v22 }
 0x4cc   : > { %4939 = vmatmul.mubr.msk.f32.gmra.mxu0 %vm1799_vm4, %v6289_v12 }
 0x4ce   : > { %5030 = vmatpush3.xpose.msk.msra.mxu1 %vm1799_vm4, %v2681_v22 }
 0x4cf   : > { %v2208_v35 = vpop.permute.xlu1 %2207  ;;  %5031 = vmatprep.subr.msk.mxu1 %vm1799_vm4, %v2679_v43  ;;  %v2212_v27 = vpop.permute.xlu0 %2211 }
 0x4d0   : > { %4988 = vmatprep.mubr.msk.f32.mxu1 %vm1799_vm4, %v2208_v35 }
 0x4d1   : > { %4989 = vmatmul.mubr.msk.f32.gmra.mxu1 %vm1799_vm4, %v2210_v23 }
 0x4d2   : > { %5032 = vmatpush3.xpose.msk.msra.mxu1 %vm1799_vm4, %v2679_v43  ;;  %4991 = vmatprep.mubr.msk.f32.mxu1 %vm1799_vm4, %v2212_v27 }
 0x4d3   : > { %v2675_v50 = vpop.permute.xlu1 %2674  ;;  %5033 = vmatprep.subr.msk.mxu1 %vm1799_vm4, %v2677_v29  ;;  %v2673_v4 = vpop.permute.xlu0 %2672 }
 0x4d6   : > { %5034 = vmatpush3.xpose.msk.msra.mxu1 %vm1799_vm4, %v2677_v29 }
 0x4d7   : > { %v2214_v5 = vpop.permute.xlu1 %2213  ;;  %5035 = vmatprep.subr.msk.mxu1 %vm1799_vm4, %v2675_v50  ;;  %v2218_v2 = vpop.permute.xlu0 %2217 }
 0x4d8   : > { %4992 = vmatmul.mubr.msk.f32.gmra.mxu1 %vm1799_vm4, %v2214_v5 }
 0x4da   : > { %5036 = vmatpush3.xpose.msk.msra.mxu1 %vm1799_vm4, %v2675_v50 }
 0x4db   : > { %5037 = vmatprep.subr.msk.mxu1 %vm1799_vm4, %v2673_v4  ;;  %v2216_v25 = vpop.permute.xlu1 %2215  ;;  %v2039_v31 = vpop.permute.xlu0 %2038 }
 0x4dc   : > { %4994 = vmatprep.mubr.msk.f32.mxu1 %vm1799_vm4, %v2216_v25 }
 0x4dd   : > { %4995 = vmatmul.mubr.msk.f32.gmra.mxu1 %vm1799_vm4, %v2218_v2 }
 0x4de   : > { %5038 = vmatpush3.xpose.msk.msra.mxu1 %vm1799_vm4, %v2673_v4  ;;  %5041 = vmatprep.mubr.msk.f32.mxu1 %vm1799_vm4, %v6387_v0 }
 0x4df   : > { %v2671_v41 = vpop.permute.xlu1 %2670  ;;  %v2033_v30 = vpop.permute.xlu0 %2032 }
 0x4e0   : > { %5039 = vmatprep.subr.msk.mxu1 %vm1799_vm4, %v2671_v41 }
 0x4e2   : > { %5040 = vmatpush3.xpose.msk.msra.mxu1 %vm1799_vm4, %v2671_v41 }
 0x4e3   : > { %v2041_v37 = vpop.permute.xlu1 %2040  ;;  %v2029_v55 = vpop.permute.xlu0 %2028 }
 0x4e4   : > { %4941 = vmatprep.subr.mxu0 %v2041_v37 }
 0x4e5   : > { %5042 = vmatmul.mubr.msk.f32.vlgmr.msra.gmra.mxu1 %vm1799_vm4, %v6371_v62  ;;  %4942 = vmatpush3.msra.mxu0 %v2041_v37 }
 0x4e6   : > { %5044 = vmatprep.mubr.msk.f32.mxu1 %vm1799_vm4, %v6373_v40  ;;  %4943 = vmatprep.subr.mxu0 %v2039_v31 }
 0x4e7   : > { %4944 = vmatpush3.msra.mxu0 %v2039_v31  ;;  %v2037_v58 = vpop.permute.xlu1 %2036  ;;  %v6527_v38 = vpop.permute.xlu0 %2474 }
 0x4e8   : > { %4945 = vmatprep.subr.mxu0 %v2037_v58 }
 0x4e9   : > { %5045 = vmatmul.mubr.msk.f32.gmra.mxu1 %vm1799_vm4, %v6353_v57  ;;  %4946 = vmatpush3.msra.mxu0 %v2037_v58 }
 0x4ea   : > { %5047 = vmatprep.mubr.msk.f32.mxu1 %vm1799_vm4, %v6361_v63 }
 0x4eb   : > { %v2035_v39 = vpop.permute.xlu1 %2034 }
 0x4ec   : > { %4947 = vmatprep.subr.mxu0 %v2035_v39 }
 0x4ed   : > { %5048 = vmatmul.mubr.msk.f32.gmra.mxu1 %vm1799_vm4, %v6345_v51  ;;  %4948 = vmatpush3.msra.mxu0 %v2035_v39  ;;  %v6636_v39 = vpop.permute.xlu0 %2472 }
 0x4ee   : > { %5050 = vmatprep.mubr.msk.f32.mxu1 %vm1799_vm4, %v6355_v20  ;;  %4949 = vmatprep.subr.mxu0 %v2033_v30 }
 0x4ef   : > { %4950 = vmatpush3.msra.mxu0 %v2033_v30  ;;  %v2031_v16 = vpop.permute.xlu1 %2030 }
 0x4f0   : > { %4951 = vmatprep.subr.mxu0 %v2031_v16 }
 0x4f1   : > { %5051 = vmatmul.mubr.msk.f32.gmra.mxu1 %vm1799_vm4, %v6347_v56  ;;  %4952 = vmatpush3.msra.mxu0 %v2031_v16 }
 0x4f2   : > { %4953 = vmatprep.subr.mxu0 %v2029_v55 }
 0x4f3   : > { %4954 = vmatpush3.msra.mxu0 %v2029_v55  ;;  %v2027_v33 = vpop.permute.xlu1 %2026 }
 0x4f4   : > { %4955 = vmatprep.subr.mxu0 %v2027_v33 }
 0x4f5   : > { %4956 = vmatpush3.msra.mxu0 %v2027_v33  ;;  %v6642_v33 = vpop.permute.xlu0 %2470 }
 0x4f6   : > { %4997 = vmatprep.subr.mxu0 %v6527_v38 }
 0x4f7   : > { %v6604_v29 = vpop.permute.xlu1 %2468 }
 0x4fb   : > { %v6612_v35 = vpop.permute.xlu1 %2464 }
 0x4ff   : > { %v6620_v5 = vpop.permute.xlu1 %2462 }
 0x503   : > { %v6632_v58 = vpop.permute.xlu1 %2460 }
 0x507   : > { %v6640_v16 = vpop.permute.xlu1 %2925 }
 0x580   : > { %v6530_v34 = vpop.f32.mrf.mxu0 }
 0x581   : > { %v1941_v45 = vsel %vm1937_vm5, %v6530_v34, -inf }
 0x582   : > { %v6534_v12 = vpop.f32.mrf.mxu0  ;;  %1942 = vmax.xlane.f32.xlu1 %v1941_v45  ;;  %v6644_v45 = vpop.permute.xlu1 %2919 }
 0x583   : > { %v1938_v44 = vsel %vm1937_vm5, %v6534_v12, -inf }
 0x584   : > { %1939 = vmax.xlane.f32.xlu0 %v1938_v44  ;;  %v6538_v42 = vpop.f32.mrf.mxu1  ;;  %v6546_v48 = vpop.f32.mrf.mxu0 }
 0x585   : > { %v2375_v52 = vsel %vm1937_vm5, %v6538_v42, -inf  ;;  %v1947_v47 = vsel %vm1937_vm5, %v6546_v48, -inf  ;;  %v6646_v44 = vpop.permute.xlu0 %2466 }
 0x586   : > { %v6542_v11 = vpop.f32.mrf.mxu1  ;;  %2376 = vmax.xlane.f32.xlu1 %v2375_v52  ;;  %v6550_v46 = vpop.f32.mrf.mxu0 }
 0x587   : > { %v2372_v13 = vsel %vm1937_vm5, %v6542_v11, -inf  ;;  %v1944_v53 = vsel %vm1937_vm5, %v6550_v46, -inf  ;;  %v6648_v52 = vpop.permute.xlu1 %2915 }
 0x588   : > { %2373 = vmax.xlane.f32.xlu0 %v2372_v13  ;;  %v6554_v14 = vpop.f32.mrf.mxu0 }
 0x589   : > { %v1953_v9 = vsel %vm1937_vm5, %v6554_v14, -inf  ;;  %v6650_v13 = vpop.permute.xlu0 %2921 }
 0x58a   : > { %v6564_v59 = vpop.f32.mrf.mxu0 }
 0x58b   : > { %v1950_v8 = vsel %vm1937_vm5, %v6564_v59, -inf }
 0x58c   : > { %1948 = vmax.xlane.f32.xlu0 %v1947_v47  ;;  %v6572_v61 = vpop.f32.mrf.mxu0  ;;  %v6652_v47 = vpop.permute.xlu1 %2911 }
 0x58d   : > { %v1959_v7 = vsel %vm1937_vm5, %v6572_v61, -inf }
 0x58e   : > { %v6580_v54 = vpop.f32.mrf.mxu0 }
 0x58f   : > { %v1956_v18 = vsel %vm1937_vm5, %v6580_v54, -inf }
 0x590   : > { %1945 = vmax.xlane.f32.xlu0 %v1944_v53  ;;  %v6654_v53 = vpop.permute.xlu0 %2917 }
 0x591   : > { %v6556_v49 = vpop.f32.mrf.mxu1 }
 0x592   : > { %v2381_v26 = vsel %vm1937_vm5, %v6556_v49, -inf }
 0x593   : > { %2382 = vmax.xlane.f32.xlu1 %v2381_v26  ;;  %v6560_v24 = vpop.f32.mrf.mxu1  ;;  %v6656_v26 = vpop.permute.xlu1 %2923 }
 0x594   : > { %v2378_v21 = vsel %vm1937_vm5, %v6560_v24, -inf }
 0x595   : > { %2379 = vmax.xlane.f32.xlu0 %v2378_v21  ;;  %v6658_v21 = vpop.permute.xlu0 %2913 }
 0x597   : > { %1954 = vmax.xlane.f32.xlu1 %v1953_v9  ;;  %v6660_v9 = vpop.permute.xlu1 %3116 }
 0x598   : > { %v6568_v3 = vpop.f32.mrf.mxu1 }
 0x599   : > { %1951 = vmax.xlane.f32.xlu0 %v1950_v8  ;;  %v2387_v60 = vsel %vm1937_vm5, %v6568_v3, -inf  ;;  %v6662_v8 = vpop.permute.xlu0 %3118 }
 0x59a   : > { %v6576_v10 = vpop.f32.mrf.mxu1 }
 0x59b   : > { %2388 = vmax.xlane.f32.xlu1 %v2387_v60  ;;  %v2384_v19 = vsel %vm1937_vm5, %v6576_v10, -inf }
 0x59d   : > { %2385 = vmax.xlane.f32.xlu0 %v2384_v19  ;;  %v6584_v28 = vpop.f32.mrf.mxu1 }
 0x59e   : > { %v2393_v6 = vsel %vm1937_vm5, %v6584_v28, -inf }
 0x59f   : > { %1960 = vmax.xlane.f32.xlu1 %v1959_v7  ;;  %v6590_v15 = vpop.f32.mrf.mxu1 }
 0x5a0   : > { %v2390_v23 = vsel %vm1937_vm5, %v6590_v15, -inf }
 0x5a1   : > { %1957 = vmax.xlane.f32.xlu0 %v1956_v18 }
 0x5a3   : > { %2394 = vmax.xlane.f32.xlu1 %v2393_v6 }
 0x5a5   : > { %v6592_v36 = vpop.f32.mrf.mxu1 }
 0x5a6   : > { %v2826_v32 = vsel %vm1937_vm5, %v6592_v36, -inf }
 0x5a7   : > { %2827 = vmax.xlane.f32.xlu1 %v2826_v32  ;;  %v6600_v22 = vpop.f32.mrf.mxu1 }
 0x5a8   : > { %v2823_v27 = vsel %vm1937_vm5, %v6600_v22, -inf }
 0x5a9   : > { %v6602_v17 = vpop.f32.mrf.mxu1 }
 0x5aa   : > { %v2832_v4 = vsel %vm1937_vm5, %v6602_v17, -inf }
 0x5ab   : > { %v6606_v1 = vpop.f32.mrf.mxu1 }
 0x5ac   : > { %v2829_v25 = vsel %vm1937_vm5, %v6606_v1, -inf }
 0x5ad   : > { %v6610_v43 = vpop.f32.mrf.mxu1 }
 0x5ae   : > { %v2838_v41 = vsel %vm1937_vm5, %v6610_v43, -inf }
 0x5af   : > { %v6616_v50 = vpop.f32.mrf.mxu1 }
 0x5b0   : > { %v2835_v31 = vsel %vm1937_vm5, %v6616_v50, -inf }
 0x5b1   : > { %v6624_v2 = vpop.f32.mrf.mxu1 }
 0x5b2   : > { %v2844_v30 = vsel %vm1937_vm5, %v6624_v2, -inf }
 0x5b3   : > { %v6630_v37 = vpop.f32.mrf.mxu1 }
 0x5b4   : > { %v2841_v55 = vsel %vm1937_vm5, %v6630_v37, -inf }
 0x5b7   : > { %3114 = vrot.lane.b32.xlu0 %v6345_v51, %s5422_s15 }
 0x5b8   : > { %3112 = vrot.lane.b32.xlu1 %v6361_v63, %s5422_s15 }
 0x5d6   : > { %2391 = vmax.xlane.f32.xlu0 %v2390_v23 }
 0x5da   : > { %2824 = vmax.xlane.f32.xlu0 %v2823_v27 }
 0x5dc   : > { %2833 = vmax.xlane.f32.xlu1 %v2832_v4 }
 0x5de   : > { %2830 = vmax.xlane.f32.xlu0 %v2829_v25 }
 0x5e0   : > { %2839 = vmax.xlane.f32.xlu1 %v2838_v41 }
 0x5e2   : > { %2836 = vmax.xlane.f32.xlu0 %v2835_v31 }
 0x5e4   : > { %2845 = vmax.xlane.f32.xlu1 %v2844_v30 }
 0x5e6   : > { %2842 = vmax.xlane.f32.xlu0 %v2841_v55 }
 0x60b   : > { %v1943_v60 = vpop.xlane.xlu1 %1942 }
 0x60c   : > { %v1963_v19 = vsub.f32 %v6530_v34, %v1943_v60 }
 0x60d   : > { %v1940_v7 = vpop.xlane.xlu0 %1939 }
 0x60e   : > { %v1972_v18 = vmul.f32 1.442695, %v1963_v19  ;;  %v1962_v6 = vsub.f32 %v6534_v12, %v1940_v7 }
 0x60f   : > { %v2377_v32 = vpop.xlane.xlu1 %2376 }
 0x610   : > { %5247 = vpow2.f32 %v1972_v18  ;;  %v2397_v23 = vsub.f32 %v6538_v42, %v2377_v32  ;;  %v1970_v27 = vmul.f32 1.442695, %v1962_v6 }
 0x611   : > { %v2374_v4 = vpop.xlane.xlu0 %2373 }
 0x612   : > { %v2406_v25 = vmul.f32 1.442695, %v2397_v23  ;;  %v2396_v41 = vsub.f32 %v6542_v11, %v2374_v4 }
 0x614   : > { %5249 = vpow2.f32 %v2406_v25  ;;  %v2404_v31 = vmul.f32 1.442695, %v2396_v41 }
 0x615   : > { %5251 = vpow2.f32 %v1970_v27  ;;  %v1949_v30 = vpop.xlane.xlu0 %1948 }
 0x616   : > { %5253 = vpow2.f32 %v2404_v31  ;;  %v1965_v34 = vsub.f32 %v6546_v48, %v1949_v30 }
 0x618   : > { %v1976_v55 = vmul.f32 1.442695, %v1965_v34 }
 0x619   : > { %v1946_v60 = vpop.xlane.xlu0 %1945 }
 0x61a   : > { %5255 = vpow2.f32 %v1976_v55  ;;  %v1964_v12 = vsub.f32 %v6550_v46, %v1946_v60 }
 0x61c   : > { %v2383_v19 = vpop.xlane.xlu1 %2382  ;;  %v1974_v18 = vmul.f32 1.442695, %v1964_v12 }
 0x61d   : > { %v6670_v7 = vpop.eup %5247  ;;  %v2399_v42 = vsub.f32 %v6556_v49, %v2383_v19 }
 0x61e   : > { %v2380_v6 = vpop.xlane.xlu0 %2379  ;;  %v1989_v11 = vsel %vm1937_vm5, %v6670_v7, 0.0 }
 0x61f   : > { %v2410_v32 = vmul.f32 1.442695, %v2399_v42  ;;  %v2398_v23 = vsub.f32 %v6560_v24, %v2380_v6  ;;  %1990 = vadd.xlane.f32.xlu1 %v1989_v11 }
 0x620   : > { %v1955_v48 = vpop.xlane.xlu1 %1954 }
 0x621   : > { %v6676_v27 = vpop.eup %5249  ;;  %5257 = vpow2.f32 %v2410_v32  ;;  %v2408_v4 = vmul.f32 1.442695, %v2398_v23  ;;  %v1967_v46 = vsub.f32 %v6554_v14, %v1955_v48 }
 0x622   : > { %v6679_v25 = vpop.eup %5251  ;;  %5259 = vpow2.f32 %v1974_v18  ;;  %v1952_v49 = vpop.xlane.xlu0 %1951  ;;  %v2423_v41 = vsel %vm1937_vm5, %v6676_v27, 0.0 }
 0x623   : > { %v6683_v31 = vpop.eup %5253  ;;  %5261 = vpow2.f32 %v2408_v4  ;;  %v1980_v30 = vmul.f32 1.442695, %v1967_v46  ;;  %v1966_v24 = vsub.f32 %v6564_v59, %v1952_v49  ;;  %2424 = vadd.xlane.f32.xlu0 %v2423_v41  ;;  %v1986_v19 = vsel %vm1937_vm5, %v6679_v25, 0.0 }
 0x624   : > { %v2389_v34 = vpop.xlane.xlu1 %2388  ;;  %v2420_v55 = vsel %vm1937_vm5, %v6683_v31, 0.0 }
 0x625   : > { %5263 = vpow2.f32 %v1980_v30  ;;  %v2401_v14 = vsub.f32 %v6568_v3, %v2389_v34  ;;  %2421 = vadd.xlane.f32.xlu1 %v2420_v55  ;;  %v1978_v60 = vmul.f32 1.442695, %v1966_v24 }
 0x626   : > { %v2386_v12 = vpop.xlane.xlu0 %2385 }
 0x627   : > { %v6691_v42 = vpop.eup %5255  ;;  %v2414_v18 = vmul.f32 1.442695, %v2401_v14  ;;  %v2400_v6 = vsub.f32 %v6576_v10, %v2386_v12  ;;  %1987 = vadd.xlane.f32.xlu0 %v1986_v19 }
 0x628   : > { %v1961_v59 = vpop.xlane.xlu1 %1960  ;;  %v1995_v11 = vsel %vm1937_vm5, %v6691_v42, 0.0 }
 0x629   : > { %5265 = vpow2.f32 %v2414_v18  ;;  %v2412_v32 = vmul.f32 1.442695, %v2400_v6  ;;  %v1969_v3 = vsub.f32 %v6572_v61, %v1961_v59  ;;  %1996 = vadd.xlane.f32.xlu1 %v1995_v11 }
 0x62a   : > { %5267 = vpow2.f32 %v1978_v60  ;;  %v1958_v23 = vpop.xlane.xlu0 %1957 }
 0x62b   : > { %5269 = vpow2.f32 %v2412_v32  ;;  %v1984_v48 = vmul.f32 1.442695, %v1969_v3  ;;  %v1968_v4 = vsub.f32 %v6580_v54, %v1958_v23 }
 0x62c   : > { %v2395_v46 = vpop.xlane.xlu1 %2394 }
 0x62d   : > { %v2403_v49 = vsub.f32 %v6584_v28, %v2395_v46  ;;  %5271 = vpow2.f32 %v1984_v48  ;;  %v1982_v30 = vmul.f32 1.442695, %v1968_v4 }
 0x62e   : > { %v6699_v10 = vpop.eup %5257 }
 0x62f   : > { %v6701_v41 = vpop.eup %5259  ;;  %v2418_v24 = vmul.f32 1.442695, %v2403_v49  ;;  %v2429_v61 = vsel %vm1937_vm5, %v6699_v10, 0.0 }
 0x630   : > { %v6705_v34 = vpop.eup %5261  ;;  %2430 = vadd.xlane.f32.xlu0 %v2429_v61  ;;  %v2828_v55 = vpop.xlane.xlu1 %2827  ;;  %v1992_v12 = vsel %vm1937_vm5, %v6701_v41, 0.0 }
 0x631   : > { %5273 = vpow2.f32 %v2418_v24  ;;  %v2848_v54 = vsub.f32 %v6592_v36, %v2828_v55  ;;  %v2426_v28 = vsel %vm1937_vm5, %v6705_v34, 0.0  ;;  %v6746_v61 = vpop.permute.xlu0 %3114 }
 0x632   : > { %v6710_v14 = vpop.eup %5263  ;;  %2427 = vadd.xlane.f32.xlu1 %v2426_v28  ;;  %5275 = vpow2.f32 %v1982_v30  ;;  %7258 = vst [vmem:[#allocation11_spill] sm:$0xff] %v6746_v61 }
 0x633   : > { %v2857_v60 = vmul.f32 1.442695, %v2848_v54  ;;  %v2001_v19 = vsel %vm1937_vm5, %v6710_v14, 0.0 }
 0x634   : > { %1993 = vadd.xlane.f32.xlu0 %v1992_v12  ;;  %v6749_v28 = vpop.permute.xlu1 %3112 }
 0x635   : > { %5277 = vpow2.f32 %v2857_v60 }
 0x636   : > { %v6716_v18 = vpop.eup %5265  ;;  %2002 = vadd.xlane.f32.xlu1 %v2001_v19 }
 0x637   : > { %v6718_v36 = vpop.eup %5267  ;;  %v2435_v6 = vsel %vm1937_vm5, %v6716_v18, 0.0 }
 0x638   : > { %v6722_v59 = vpop.eup %5269  ;;  %2436 = vadd.xlane.f32.xlu0 %v2435_v6  ;;  %v1998_v32 = vsel %vm1937_vm5, %v6718_v36, 0.0 }
 0x639   : > { %v2432_v11 = vsel %vm1937_vm5, %v6722_v59, 0.0 }
 0x63a   : > { %2433 = vadd.xlane.f32.xlu1 %v2432_v11  ;;  %v6728_v3 = vpop.eup %5271 }
 0x63b   : > { %v2007_v48 = vsel %vm1937_vm5, %v6728_v3, 0.0 }
 0x63c   : > { %1999 = vadd.xlane.f32.xlu0 %v1998_v32 }
 0x63e   : > { %v6730_v23 = vpop.eup %5273 }
 0x63f   : > { %v2441_v4 = vsel %vm1937_vm5, %v6730_v23, 0.0  ;;  %v6736_v46 = vpop.eup %5275 }
 0x640   : > { %2008 = vadd.xlane.f32.xlu0 %v2007_v48  ;;  %2442 = vadd.xlane.f32.xlu1 %v2441_v4  ;;  %v2004_v30 = vsel %vm1937_vm5, %v6736_v46, 0.0 }
 0x642   : > { %v6738_v49 = vpop.eup %5277 }
 0x643   : > { %v2874_v24 = vsel %vm1937_vm5, %v6738_v49, 0.0 }
 0x644   : > { %2005 = vadd.xlane.f32.xlu0 %v2004_v30  ;;  %2875 = vadd.xlane.f32.xlu1 %v2874_v24 }
 0x655   : > { %3108 = vrot.lane.b32.xlu1 %v6373_v40, %s5422_s15 }
 0x65f   : > { %v2392_v55 = vpop.xlane.xlu0 %2391 }
 0x660   : > { %v2402_v54 = vsub.f32 %v6590_v15, %v2392_v55 }
 0x662   : > { %v2416_v60 = vmul.f32 1.442695, %v2402_v54 }
 0x663   : > { %v2825_v12 = vpop.xlane.xlu0 %2824 }
 0x664   : > { %5279 = vpow2.f32 %v2416_v60  ;;  %v2847_v19 = vsub.f32 %v6600_v22, %v2825_v12 }
 0x665   : > { %v2834_v6 = vpop.xlane.xlu1 %2833 }
 0x666   : > { %v2855_v11 = vmul.f32 1.442695, %v2847_v19  ;;  %v2850_v32 = vsub.f32 %v6602_v17, %v2834_v6 }
 0x668   : > { %5281 = vpow2.f32 %v2855_v11  ;;  %v2861_v48 = vmul.f32 1.442695, %v2850_v32  ;;  %v2831_v11 = vpop.xlane.xlu0 %2830 }
 0x669   : > { %v2840_v4 = vpop.xlane.xlu1 %2839 }
 0x66a   : > { %5283 = vpow2.f32 %v2861_v48  ;;  %v2852_v30 = vsub.f32 %v6610_v43, %v2840_v4  ;;  %v2849_v48 = vsub.f32 %v6606_v1, %v2831_v11 }
 0x66c   : > { %v2865_v24 = vmul.f32 1.442695, %v2852_v30  ;;  %v2837_v32 = vpop.xlane.xlu0 %2836  ;;  %v2859_v4 = vmul.f32 1.442695, %v2849_v48 }
 0x66d   : > { %v2846_v61 = vpop.xlane.xlu1 %2845  ;;  %v2851_v30 = vsub.f32 %v6616_v50, %v2837_v32 }
 0x66e   : > { %5285 = vpow2.f32 %v2865_v24  ;;  %v2854_v15 = vsub.f32 %v6624_v2, %v2846_v61 }
 0x670   : > { %v2869_v55 = vmul.f32 1.442695, %v2854_v15  ;;  %v2843_v24 = vpop.xlane.xlu0 %2842  ;;  %v2863_v15 = vmul.f32 1.442695, %v2851_v30 }
 0x671   : > { %v6755_v54 = vpop.eup %5279 }
 0x672   : > { %5287 = vpow2.f32 %v2869_v55  ;;  %v2438_v22 = vsel %vm1937_vm5, %v6755_v54, 0.0  ;;  %v2853_v55 = vsub.f32 %v6630_v37, %v2843_v24 }
 0x673   : > { %2439 = vadd.xlane.f32.xlu0 %v2438_v22  ;;  %5289 = vpow2.f32 %v2859_v4 }
 0x674   : > { %5291 = vpow2.f32 %v2863_v15  ;;  %v2867_v22 = vmul.f32 1.442695, %v2853_v55 }
 0x675   : > { %v6759_v17 = vpop.eup %5281 }
 0x676   : > { %v2871_v60 = vsel %vm1937_vm5, %v6759_v17, 0.0  ;;  %5293 = vpow2.f32 %v2867_v22 }
 0x677   : > { %v6763_v12 = vpop.eup %5283  ;;  %2872 = vadd.xlane.f32.xlu0 %v2871_v60 }
 0x678   : > { %v2880_v43 = vsel %vm1937_vm5, %v6763_v12, 0.0 }
 0x679   : > { %2881 = vadd.xlane.f32.xlu1 %v2880_v43 }
 0x67b   : > { %v6767_v2 = vpop.eup %5285 }
 0x67c   : > { %v2886_v61 = vsel %vm1937_vm5, %v6767_v2, 0.0 }
 0x67d   : > { %2887 = vadd.xlane.f32.xlu1 %v2886_v61 }
 0x67f   : > { %v6771_v19 = vpop.eup %5287 }
 0x680   : > { %v2892_v6 = vsel %vm1937_vm5, %v6771_v19, 0.0  ;;  %v6790_v1 = vpop.eup %5289 }
 0x681   : > { %2893 = vadd.xlane.f32.xlu1 %v2892_v6  ;;  %v2877_v50 = vsel %vm1937_vm5, %v6790_v1, 0.0  ;;  %v6794_v60 = vpop.eup %5291 }
 0x682   : > { %v2883_v37 = vsel %vm1937_vm5, %v6794_v60, 0.0 }
 0x68d   : > { %3110 = vrot.lane.b32.xlu0 %v6353_v57, %s5422_s15 }
 0x692   : > { %3104 = vrot.lane.b32.xlu1 %v6387_v0, %s5422_s15 }
 0x696   : > { %3090 = vrot.lane.b32.xlu1 %v6371_v62, %s5424_s19 }
 0x69a   : > { %3094 = vrot.lane.b32.xlu1 %v6353_v57, %s5424_s19 }
 0x69e   : > { %3098 = vrot.lane.b32.xlu1 %v6345_v51, %s5424_s19  ;;  %v6798_v51 = vpop.eup %5293 }
 0x69f   : > { %v2889_v6 = vsel %vm1937_vm5, %v6798_v51, 0.0 }
 0x6a2   : > { %3102 = vrot.lane.b32.xlu1 %v6347_v56, %s5424_s19 }
 0x6a8   : > { %v1991_v43 = vpop.xlane.xlu1 %1990 }
 0x6a9   : > { %5295 = vrcp.f32 %v1991_v43 }
 0x6ac   : > { %v2425_v57 = vpop.xlane.xlu0 %2424  ;;  %2878 = vadd.xlane.f32.xlu0 %v2877_v50 }
 0x6ae   : > { %v2422_v56 = vpop.xlane.xlu1 %2421 }
 0x6b0   : > { %v1988_v61 = vpop.xlane.xlu0 %1987  ;;  %2884 = vadd.xlane.f32.xlu0 %v2883_v37 }
 0x6b1   : > { %5297 = vrcp.f32 %v1988_v61 }
 0x6b2   : > { %v1997_v11 = vpop.xlane.xlu1 %1996 }
 0x6b3   : > { %5299 = vrcp.f32 %v1997_v11 }
 0x6b4   : > { %2890 = vadd.xlane.f32.xlu0 %v2889_v6 }
 0x6b6   : > { %v5296_v4 = vpop.eup %5295 }
 0x6b7   : > { %v2019_v55 = vmul.f32 %v5296_v4, %v6670_v7 }
 0x6b9   : > { %v2431_v32 = vpop.xlane.xlu0 %2430 }
 0x6bb   : > { %v2428_v48 = vpop.xlane.xlu1 %2427 }
 0x6bd   : > { %v1994_v30 = vpop.xlane.xlu0 %1993 }
 0x6be   : > { %v5298_v24 = vpop.eup %5297  ;;  %5301 = vrcp.f32 %v1994_v30 }
 0x6bf   : > { %v2018_v15 = vmul.f32 %v5298_v24, %v6679_v25  ;;  %v2003_v50 = vpop.xlane.xlu1 %2002 }
 0x6c0   : > { %5303 = vrcp.f32 %v2003_v50  ;;  %v5300_v25 = vpop.eup %5299 }
 0x6c1   : > { %4957 = vmatprep.mubr.msk.f32.mxu0 %vm1937_vm5, %v2018_v15  ;;  %v2437_v22 = vpop.xlane.xlu0 %2436 }
 0x6c2   : > { %4958 = vmatmul.mubr.msk.f32.vlgmr.msra.gmra.mxu0 %vm1937_vm5, %v2019_v55 }
 0x6c3   : > { %4998 = vmatpush3.msra.mxu0 %v6527_v38 }
 0x6c4   : > { %4999 = vmatprep.subr.mxu0 %v6636_v39 }
 0x6c5   : > { %5000 = vmatpush3.msra.mxu0 %v6636_v39  ;;  %v2000_v43 = vpop.xlane.xlu0 %1999 }
 0x6c6   : > { %5305 = vrcp.f32 %v2000_v43  ;;  %5001 = vmatprep.subr.mxu0 %v6642_v33 }
 0x6c7   : > { %5002 = vmatpush3.msra.mxu0 %v6642_v33  ;;  %5307 = vrcp.f32 %v2422_v56 }
 0x6c8   : > { %5003 = vmatprep.subr.mxu0 %v6604_v29 }
 0x6c9   : > { %5004 = vmatpush3.msra.mxu0 %v6604_v29  ;;  %v2009_v7 = vpop.xlane.xlu0 %2008 }
 0x6ca   : > { %5005 = vmatprep.subr.mxu0 %v6646_v44  ;;  %3106 = vrot.lane.b32.xlu0 %v6371_v62, %s5422_s15  ;;  %5309 = vrcp.f32 %v2009_v7  ;;  %v2021_v62 = vmul.f32 %v5300_v25, %v6691_v42 }
 0x6cb   : > { %v5302_v38 = vpop.eup %5301  ;;  %5006 = vmatpush3.msra.mxu0 %v6646_v44 }
 0x6cc   : > { %5007 = vmatprep.subr.mxu0 %v6612_v35  ;;  %v2020_v39 = vmul.f32 %v5302_v38, %v6701_v41 }
 0x6cd   : > { %5008 = vmatpush3.msra.mxu0 %v6612_v35  ;;  %v2006_v33 = vpop.xlane.xlu0 %2005  ;;  %v5304_v29 = vpop.eup %5303 }
 0x6ce   : > { %5311 = vrcp.f32 %v2006_v33  ;;  %5009 = vmatprep.subr.mxu0 %v6620_v5  ;;  %3088 = vrot.lane.b32.xlu0 %v6387_v0, %s5424_s19  ;;  %v2434_v35 = vpop.xlane.xlu1 %2433 }
 0x6cf   : > { %4960 = vmatprep.mubr.msk.f32.mxu0 %vm1937_vm5, %v2020_v39  ;;  %5010 = vmatpush3.msra.mxu0 %v6620_v5  ;;  %5313 = vrcp.f32 %v2425_v57  ;;  %v2023_v5 = vmul.f32 %v5304_v29, %v6710_v14 }
 0x6d0   : > { %4961 = vmatmul.mubr.msk.f32.gmra.mxu0 %vm1937_vm5, %v2021_v62  ;;  %5011 = vmatprep.subr.mxu0 %v6632_v58  ;;  %5315 = vrcp.f32 %v2428_v48 }
 0x6d1   : > { %5012 = vmatpush3.msra.mxu0 %v6632_v58  ;;  %5317 = vrcp.f32 %v2431_v32 }
 0x6d2   : > { %5053 = vmatprep.subr.mxu0 %v6640_v16  ;;  %3092 = vrot.lane.b32.xlu0 %v6373_v40, %s5424_s19  ;;  %5319 = vrcp.f32 %v2434_v35 }
 0x6d3   : > { %v5306_v0 = vpop.eup %5305  ;;  %5321 = vrcp.f32 %v2437_v22 }
 0x6d4   : > { %v2022_v44 = vmul.f32 %v5306_v0, %v6718_v36  ;;  %v5308_v58 = vpop.eup %5307 }
 0x6d6   : > { %3096 = vrot.lane.b32.xlu0 %v6361_v63, %s5424_s19  ;;  %4963 = vmatprep.mubr.msk.f32.mxu0 %vm1937_vm5, %v2022_v44  ;;  %v2452_v63 = vmul.f32 %v5308_v58, %v6683_v31 }
 0x6d7   : > { %4964 = vmatmul.mubr.msk.f32.gmra.mxu0 %vm1937_vm5, %v2023_v5  ;;  %v5310_v42 = vpop.eup %5309 }
 0x6d8   : > { %v2025_v36 = vmul.f32 %v5310_v42, %v6728_v3 }
 0x6da   : > { %3100 = vrot.lane.b32.xlu0 %v6355_v20, %s5424_s19 }
 0x6db   : > { %v5312_v40 = vpop.eup %5311 }
 0x6dc   : > { %v2024_v41 = vmul.f32 %v5312_v40, %v6736_v46  ;;  %v5314_v14 = vpop.eup %5313 }
 0x6dd   : > { %v5316_v57 = vpop.eup %5315  ;;  %v2453_v37 = vmul.f32 %v5314_v14, %v6676_v27 }
 0x6de   : > { %4966 = vmatprep.mubr.msk.f32.mxu0 %vm1937_vm5, %v2024_v41  ;;  %v5318_v61 = vpop.eup %5317  ;;  %v2454_v20 = vmul.f32 %v5316_v57, %v6705_v34 }
 0x6df   : > { %4967 = vmatmul.mubr.msk.f32.gmra.mxu0 %vm1937_vm5, %v2025_v36  ;;  %v5320_v56 = vpop.eup %5319  ;;  %v2455_v31 = vmul.f32 %v5318_v61, %v6699_v10 }
 0x6e0   : > { %5013 = vmatprep.mubr.msk.f32.mxu0 %vm1937_vm5, %v2452_v63  ;;  %v5322_v3 = vpop.eup %5321  ;;  %v2456_v46 = vmul.f32 %v5320_v56, %v6722_v59 }
 0x6e3   : > { %5014 = vmatmul.mubr.msk.f32.vlgmr.msra.gmra.mxu0 %vm1937_vm5, %v2453_v37 }
 0x6e4   : > { %5054 = vmatpush3.msra.mxu0 %v6640_v16  ;;  %5016 = vmatprep.mubr.msk.f32.mxu0 %vm1937_vm5, %v2454_v20  ;;  %v2457_v16 = vmul.f32 %v5322_v3, %v6716_v18 }
 0x6e5   : > { %5055 = vmatprep.subr.mxu0 %v6656_v26 }
 0x6e6   : > { %5056 = vmatpush3.msra.mxu0 %v6656_v26 }
 0x6e7   : > { %5057 = vmatprep.subr.mxu0 %v6650_v13  ;;  %5017 = vmatmul.mubr.msk.f32.gmra.mxu0 %vm1937_vm5, %v2455_v31 }
 0x6e8   : > { %5058 = vmatpush3.msra.mxu0 %v6650_v13  ;;  %5019 = vmatprep.mubr.msk.f32.mxu0 %vm1937_vm5, %v2456_v46 }
 0x6e9   : > { %5059 = vmatprep.subr.mxu0 %v6644_v45 }
 0x6ea   : > { %5060 = vmatpush3.msra.mxu0 %v6644_v45  ;;  %v2443_v45 = vpop.xlane.xlu1 %2442 }
 0x6eb   : > { %5061 = vmatprep.subr.mxu0 %v6654_v53  ;;  %5020 = vmatmul.mubr.msk.f32.gmra.mxu0 %vm1937_vm5, %v2457_v16  ;;  %5323 = vrcp.f32 %v2443_v45 }
 0x6ec   : > { %5062 = vmatpush3.msra.mxu0 %v6654_v53 }
 0x6ed   : > { %5063 = vmatprep.subr.mxu0 %v6648_v52 }
 0x6ee   : > { %5064 = vmatpush3.msra.mxu0 %v6648_v52  ;;  %v2876_v26 = vpop.xlane.xlu1 %2875 }
 0x6ef   : > { %5065 = vmatprep.subr.mxu0 %v6658_v21 }
 0x6f0   : > { %5066 = vmatpush3.msra.mxu0 %v6658_v21 }
 0x6f1   : > { %5067 = vmatprep.subr.mxu0 %v6652_v47 }
 0x6f2   : > { %5068 = vmatpush3.msra.mxu0 %v6652_v47 }
 0x6f3   : > { %5081 = vmatprep.subr.msk.mxu0 %vm1799_vm4, %v6662_v8 }
 0x6f8   : > { %v5324_v52 = vpop.eup %5323 }
 0x6f9   : > { %v2459_v21 = vmul.f32 %v5324_v52, %v6730_v23  ;;  %v7259_v23 = vld [vmem:[#allocation11_spill] sm:$0xff] }
 0x6fc   : > { %v2440_v13 = vpop.xlane.xlu0 %2439 }
 0x6fd   : > { %5325 = vrcp.f32 %v2440_v13 }
 0x6fe   : > { %5327 = vrcp.f32 %v2876_v26 }
 0x700   : > { %v2873_v53 = vpop.xlane.xlu0 %2872 }
 0x701   : > { %5329 = vrcp.f32 %v2873_v53 }
 0x70a   : > { %v5326_v27 = vpop.eup %5325 }
 0x70b   : > { %v2458_v10 = vmul.f32 %v5326_v27, %v6755_v54  ;;  %v5328_v34 = vpop.eup %5327 }
 0x70c   : > { %v2904_v59 = vmul.f32 %v5328_v34, %v6738_v49  ;;  %v3111_v49 = vpop.permute.xlu0 %3110 }
 0x70d   : > { %5022 = vmatprep.mubr.msk.f32.mxu0 %vm1937_vm5, %v2458_v10 }
 0x70e   : > { %v5330_v47 = vpop.eup %5329  ;;  %5023 = vmatmul.mubr.msk.f32.gmra.mxu0 %vm1937_vm5, %v2459_v21 }
 0x70f   : > { %v2903_v18 = vmul.f32 %v5330_v47, %v6759_v17 }
 0x711   : > { %5069 = vmatprep.mubr.msk.f32.mxu0 %vm1937_vm5, %v2903_v18 }
 0x712   : > { %5070 = vmatmul.mubr.msk.f32.vlgmr.msra.gmra.mxu0 %vm1937_vm5, %v2904_v59 }
 0x713   : > { %5082 = vmatpush3.xpose.msk.msra.mxu0 %vm1799_vm4, %v6662_v8  ;;  %v3109_v8 = vpop.permute.xlu1 %3108 }
 0x714   : > { %5083 = vmatprep.subr.msk.mxu0 %vm1799_vm4, %v6660_v9 }
 0x717   : > { %5084 = vmatpush3.xpose.msk.msra.mxu0 %vm1799_vm4, %v6660_v9  ;;  %v2882_v9 = vpop.xlane.xlu1 %2881 }
 0x718   : > { %5085 = vmatprep.subr.msk.mxu0 %vm1799_vm4, %v7259_v23  ;;  %5331 = vrcp.f32 %v2882_v9 }
 0x71b   : > { %5086 = vmatpush3.xpose.msk.msra.mxu0 %vm1799_vm4, %v7259_v23  ;;  %v2888_v54 = vpop.xlane.xlu1 %2887 }
 0x71c   : > { %5087 = vmatprep.subr.msk.mxu0 %vm1799_vm4, %v6749_v28 }
 0x71f   : > { %5088 = vmatpush3.xpose.msk.msra.mxu0 %vm1799_vm4, %v6749_v28  ;;  %v2894_v11 = vpop.xlane.xlu1 %2893 }
 0x720   : > { %5089 = vmatprep.subr.msk.mxu0 %vm1799_vm4, %v3111_v49 }
 0x723   : > { %5090 = vmatpush3.xpose.msk.msra.mxu0 %vm1799_vm4, %v3111_v49  ;;  %v3105_v30 = vpop.permute.xlu1 %3104 }
 0x724   : > { %5091 = vmatprep.subr.msk.mxu0 %vm1799_vm4, %v3109_v8 }
 0x725   : > { %v5332_v48 = vpop.eup %5331 }
 0x726   : > { %v2906_v15 = vmul.f32 %v5332_v48, %v6763_v12  ;;  %v5378_v48 = vld [vmem:[#allocation4 + $0x78] sm:$0xff] }
 0x727   : > { %5092 = vmatpush3.xpose.msk.msra.mxu0 %vm1799_vm4, %v3109_v8  ;;  %v3091_v12 = vpop.permute.xlu1 %3090 }
 0x735   : > { %v2879_v17 = vpop.xlane.xlu0 %2878 }
 0x736   : > { %5333 = vrcp.f32 %v2879_v17 }
 0x737   : > { %5335 = vrcp.f32 %v2888_v54 }
 0x739   : > { %v2885_v6 = vpop.xlane.xlu0 %2884 }
 0x73a   : > { %5337 = vrcp.f32 %v2885_v6 }
 0x73b   : > { %5339 = vrcp.f32 %v2894_v11  ;;  %v5375_v11 = vld [vmem:[#allocation4 + $0x70] sm:$0xff] }
 0x73d   : > { %v2891_v28 = vpop.xlane.xlu0 %2890 }
 0x73e   : > { %5341 = vrcp.f32 %v2891_v28  ;;  %v5376_v28 = vld [vmem:[#allocation4 + $0x68] sm:$0xff] }
 0x741   : > { %v3107_v32 = vpop.permute.xlu0 %3106 }
 0x742   : > { %5093 = vmatprep.subr.msk.mxu0 %vm1799_vm4, %v3107_v32 }
 0x743   : > { %v5334_v4 = vpop.eup %5333  ;;  %5094 = vmatpush3.xpose.msk.msra.mxu0 %vm1799_vm4, %v3107_v32  ;;  %v5377_v32 = vld [vmem:[#allocation4 + $0x60] sm:$0xff] }
 0x744   : > { %5095 = vmatprep.subr.msk.mxu0 %vm1799_vm4, %v3105_v30  ;;  %v2905_v24 = vmul.f32 %v5334_v4, %v6790_v1  ;;  %v5336_v55 = vpop.eup %5335  ;;  %v5379_v4 = vld [vmem:[#allocation4 + $0x50] sm:$0xff] }
 0x745   : > { %v3089_v43 = vpop.permute.xlu0 %3088  ;;  %v2908_v7 = vmul.f32 %v5336_v55, %v6767_v2 }
 0x746   : > { %5072 = vmatprep.mubr.msk.f32.mxu0 %vm1937_vm5, %v2905_v24 }
 0x747   : > { %v5338_v22 = vpop.eup %5337  ;;  %5073 = vmatmul.mubr.msk.f32.gmra.mxu0 %vm1937_vm5, %v2906_v15 }
 0x748   : > { %5096 = vmatpush3.xpose.msk.msra.mxu0 %vm1799_vm4, %v3105_v30  ;;  %v2907_v50 = vmul.f32 %v5338_v22, %v6794_v60  ;;  %v5340_v25 = vpop.eup %5339  ;;  %v3095_v60 = vpop.permute.xlu1 %3094  ;;  %v5380_v30 = vld [vmem:[#allocation4 + $0x58] sm:$0xff] }
 0x749   : > { %v2910_v39 = vmul.f32 %v5340_v25, %v6771_v19  ;;  %v3093_v33 = vpop.permute.xlu0 %3092 }
 0x74a   : > { %5075 = vmatprep.mubr.msk.f32.mxu0 %vm1937_vm5, %v2907_v50 }
 0x74b   : > { %v5342_v38 = vpop.eup %5341  ;;  %5076 = vmatmul.mubr.msk.f32.gmra.mxu0 %vm1937_vm5, %v2908_v7 }
 0x74c   : > { %v2909_v1 = vmul.f32 %v5342_v38, %v6798_v51  ;;  %v3099_v62 = vpop.permute.xlu1 %3098 }
 0x74d   : > { %v3097_v2 = vpop.permute.xlu0 %3096 }
 0x74e   : > { %5078 = vmatprep.mubr.msk.f32.mxu0 %vm1937_vm5, %v2909_v1 }
 0x74f   : > { %5079 = vmatmul.mubr.msk.f32.gmra.mxu0 %vm1937_vm5, %v2910_v39 }
 0x750   : > { %5097 = vmatprep.mubr.msk.f32.mxu0 %vm1799_vm4, %v3089_v43  ;;  %v3103_v19 = vpop.permute.xlu1 %3102 }
 0x751   : > { %v3101_v51 = vpop.permute.xlu0 %3100 }
 0x753   : > { %5098 = vmatmul.mubr.msk.f32.vlgmr.msra.gmra.mxu0 %vm1799_vm4, %v3091_v12 }
 0x754   : > { %5100 = vmatprep.mubr.msk.f32.mxu0 %vm1799_vm4, %v3093_v33 }
 0x757   : > { %5101 = vmatmul.mubr.msk.f32.gmra.mxu0 %vm1799_vm4, %v3095_v60 }
 0x758   : > { %5103 = vmatprep.mubr.msk.f32.mxu0 %vm1799_vm4, %v3097_v2 }
 0x75b   : > { %5104 = vmatmul.mubr.msk.f32.gmra.mxu0 %vm1799_vm4, %v3099_v62 }
 0x75c   : > { %5106 = vmatprep.mubr.msk.f32.mxu0 %vm1799_vm4, %v3101_v51 }
 0x75f   : > { %5107 = vmatmul.mubr.msk.f32.gmra.mxu0 %vm1799_vm4, %v3103_v19 }
 0x782   : > { %v4959_v29 = vpop.f32.mrf.mxu0 }
 0x783   : > { %2180 = vst.msk [vmem:[#allocation5 + $0x8] sm:$0xff] %vm1799_vm4, %v4959_v29 }
 0x784   : > { %v2140_v0 = vpop.f32.mrf.mxu0 }
 0x785   : > { %2179 = vst.msk [vmem:[#allocation5] sm:$0xff] %vm1799_vm4, %v2140_v0 }
 0x790   : > { %v4962_v35 = vpop.f32.mrf.mxu0 }
 0x791   : > { %2182 = vst.msk [vmem:[#allocation5 + $0x18] sm:$0xff] %vm1799_vm4, %v4962_v35 }
 0x792   : > { %v2150_v44 = vpop.f32.mrf.mxu0 }
 0x793   : > { %2181 = vst.msk [vmem:[#allocation5 + $0x10] sm:$0xff] %vm1799_vm4, %v2150_v44 }
 0x797   : > { %v4965_v5 = vpop.f32.mrf.mxu0 }
 0x798   : > { %2184 = vst.msk [vmem:[#allocation5 + $0x28] sm:$0xff] %vm1799_vm4, %v4965_v5 }
 0x799   : > { %v2160_v58 = vpop.f32.mrf.mxu0 }
 0x79a   : > { %2183 = vst.msk [vmem:[#allocation5 + $0x20] sm:$0xff] %vm1799_vm4, %v2160_v58 }
 0x79f   : > { %v4968_v42 = vpop.f32.mrf.mxu0 }
 0x7a0   : > { %2186 = vst.msk [vmem:[#allocation5 + $0x38] sm:$0xff] %vm1799_vm4, %v4968_v42 }
 0x7a1   : > { %v2170_v40 = vpop.f32.mrf.mxu0 }
 0x7a2   : > { %2185 = vst.msk [vmem:[#allocation5 + $0x30] sm:$0xff] %vm1799_vm4, %v2170_v40 }
 0x7a3   : > { %v6931_v41 = vpop.f32.mrf.mxu0 }
 0x7a5   : > { %v6933_v36 = vpop.f32.mrf.mxu0 }
 0x7a7   : > { %v6935_v14 = vpop.f32.mrf.mxu0 }
 0x7a9   : > { %v6937_v63 = vpop.f32.mrf.mxu0 }
 0x7ab   : > { %v6939_v57 = vpop.f32.mrf.mxu0 }
 0x7ad   : > { %v6941_v37 = vpop.f32.mrf.mxu0 }
 0x7ce   : > { %v6943_v61 = vpop.f32.mrf.mxu0 }
 0x7d0   : > { %v6945_v20 = vpop.f32.mrf.mxu0 }
 0x7d2   : > { %v5071_v56 = vpop.f32.mrf.mxu0 }
 0x7d3   : > { %3065 = vst.msk [vmem:[#allocation5 + $0x48] sm:$0xff] %vm1799_vm4, %v5071_v56 }
 0x7d4   : > { %v3025_v31 = vpop.f32.mrf.mxu0 }
 0x7d5   : > { %3064 = vst.msk [vmem:[#allocation5 + $0x40] sm:$0xff] %vm1799_vm4, %v3025_v31 }
 0x807   : > { %v5074_v3 = vpop.f32.mrf.mxu0 }
 0x808   : > { %3067 = vst.msk [vmem:[#allocation5 + $0x58] sm:$0xff] %vm1799_vm4, %v5074_v3 }
 0x809   : > { %v3035_v46 = vpop.f32.mrf.mxu0 }
 0x80a   : > { %3066 = vst.msk [vmem:[#allocation5 + $0x50] sm:$0xff] %vm1799_vm4, %v3035_v46 }
 0x80b   : > { %v5077_v16 = vpop.f32.mrf.mxu0 }
 0x80c   : > { %3069 = vst.msk [vmem:[#allocation5 + $0x68] sm:$0xff] %vm1799_vm4, %v5077_v16 }
 0x80d   : > { %v3045_v45 = vpop.f32.mrf.mxu0 }
 0x80e   : > { %3068 = vst.msk [vmem:[#allocation5 + $0x60] sm:$0xff] %vm1799_vm4, %v3045_v45 }
 0x80f   : > { %v5080_v13 = vpop.f32.mrf.mxu0 }
 0x810   : > { %3071 = vst.msk [vmem:[#allocation5 + $0x78] sm:$0xff] %vm1799_vm4, %v5080_v13 }
 0x811   : > { %v3055_v26 = vpop.f32.mrf.mxu0 }
 0x812   : > { %3070 = vst.msk [vmem:[#allocation5 + $0x70] sm:$0xff] %vm1799_vm4, %v3055_v26 }
 0x813   : > { %v5099_v53 = vpop.f32.mrf.mxu0 }
 0x814   : > { %v3260_v52 = vsel %vm1937_vm5, %v5099_v53, -inf }
 0x815   : > { %3261 = vmax.xlane.f32.xlu1 %v3260_v52  ;;  %v3218_v27 = vpop.f32.mrf.mxu0 }
 0x816   : > { %v3257_v10 = vsel %vm1937_vm5, %v3218_v27, -inf }
 0x817   : > { %3258 = vmax.xlane.f32.xlu0 %v3257_v10  ;;  %v5102_v21 = vpop.f32.mrf.mxu0 }
 0x818   : > { %v3266_v47 = vsel %vm1937_vm5, %v5102_v21, -inf }
 0x819   : > { %v3228_v34 = vpop.f32.mrf.mxu0 }
 0x81a   : > { %v3263_v49 = vsel %vm1937_vm5, %v3228_v34, -inf }
 0x81b   : > { %3267 = vmax.xlane.f32.xlu0 %v3266_v47  ;;  %v5105_v18 = vpop.f32.mrf.mxu0 }
 0x81c   : > { %v3272_v59 = vsel %vm1937_vm5, %v5105_v18, -inf }
 0x81d   : > { %3273 = vmax.xlane.f32.xlu1 %v3272_v59  ;;  %v3238_v23 = vpop.f32.mrf.mxu0 }
 0x81e   : > { %v3269_v54 = vsel %vm1937_vm5, %v3238_v23, -inf }
 0x81f   : > { %3264 = vmax.xlane.f32.xlu0 %v3263_v49  ;;  %v5108_v8 = vpop.f32.mrf.mxu0 }
 0x820   : > { %v3278_v9 = vsel %vm1937_vm5, %v5108_v8, -inf }
 0x821   : > { %3279 = vmax.xlane.f32.xlu1 %v3278_v9  ;;  %v3248_v17 = vpop.f32.mrf.mxu0  ;;  %v5381_v9 = vld [vmem:[#allocation4 + $0x40] sm:$0xff] }
 0x822   : > { %v3275_v6 = vsel %vm1937_vm5, %v3248_v17, -inf }
 0x823   : > { %3270 = vmax.xlane.f32.xlu0 %v3269_v54  ;;  %v5382_v54 = vld [vmem:[#allocation4 + $0x48] sm:$0xff] }
 0x827   : > { %3276 = vmax.xlane.f32.xlu0 %v3275_v6  ;;  %v3554_v6 = vld [vmem:[%s7253_s9] sm:$0xff] }
 0x832   : > { %3357 = vrot.lane.b32.xlu1 %v5375_v11, %s5426_s22 }
 0x836   : > { %3355 = vrot.lane.b32.xlu1 %v5376_v28, %s5426_s22 }
 0x83a   : > { %3353 = vrot.lane.b32.xlu1 %v5377_v32, %s5426_s22 }
 0x83d   : > { %3359 = vrot.lane.b32.xlu0 %v5378_v48, %s5426_s22 }
 0x83e   : > { %3349 = vrot.lane.b32.xlu1 %v5379_v4, %s5426_s22 }
 0x841   : > { %3351 = vrot.lane.b32.xlu0 %v5380_v30, %s5426_s22 }
 0x89e   : > { %v3262_v24 = vpop.xlane.xlu1 %3261 }
 0x89f   : > { %v3282_v15 = vsub.f32 %v5099_v53, %v3262_v24 }
 0x8a0   : > { %v3259_v55 = vpop.xlane.xlu0 %3258 }
 0x8a1   : > { %v3291_v22 = vmul.f32 1.442695, %v3282_v15  ;;  %v3281_v50 = vsub.f32 %v3218_v27, %v3259_v55 }
 0x8a3   : > { %5343 = vpow2.f32 %v3291_v22  ;;  %v3289_v43 = vmul.f32 1.442695, %v3281_v50 }
 0x8a4   : > { %v3268_v7 = vpop.xlane.xlu0 %3267 }
 0x8a5   : > { %5345 = vpow2.f32 %v3289_v43  ;;  %v3284_v25 = vsub.f32 %v5102_v21, %v3268_v7 }
 0x8a6   : > { %v3274_v38 = vpop.xlane.xlu1 %3273 }
 0x8a7   : > { %v3295_v12 = vmul.f32 1.442695, %v3284_v25  ;;  %v3286_v1 = vsub.f32 %v5105_v18, %v3274_v38 }
 0x8a8   : > { %v3265_v39 = vpop.xlane.xlu0 %3264 }
 0x8a9   : > { %5347 = vpow2.f32 %v3295_v12  ;;  %v3299_v33 = vmul.f32 1.442695, %v3286_v1  ;;  %v3283_v60 = vsub.f32 %v3228_v34, %v3265_v39 }
 0x8aa   : > { %v3280_v2 = vpop.xlane.xlu1 %3279 }
 0x8ab   : > { %5349 = vpow2.f32 %v3299_v33  ;;  %v3293_v62 = vmul.f32 1.442695, %v3283_v60  ;;  %v3288_v51 = vsub.f32 %v5108_v8, %v3280_v2 }
 0x8ac   : > { %v3271_v19 = vpop.xlane.xlu0 %3270 }
 0x8ad   : > { %5351 = vpow2.f32 %v3293_v62  ;;  %v3303_v29 = vmul.f32 1.442695, %v3288_v51  ;;  %v3285_v0 = vsub.f32 %v3238_v23, %v3271_v19 }
 0x8ae   : > { %v3358_v35 = vpop.permute.xlu1 %3357 }
 0x8af   : > { %v3297_v44 = vmul.f32 1.442695, %v3285_v0  ;;  %5353 = vpow2.f32 %v3303_v29 }
 0x8b0   : > { %v6969_v5 = vpop.eup %5343  ;;  %v3277_v58 = vpop.xlane.xlu0 %3276 }
 0x8b1   : > { %5355 = vpow2.f32 %v3297_v44  ;;  %v3287_v42 = vsub.f32 %v3248_v17, %v3277_v58  ;;  %v3308_v40 = vsel %vm1937_vm5, %v6969_v5, 0.0  ;;  %v3555_v17 = vld [vmem:[%s7253_s9 + $0x8] sm:$0xff] }
 0x8b2   : > { %v6973_v56 = vpop.eup %5345  ;;  %3309 = vadd.xlane.f32.xlu1 %v3308_v40  ;;  %v3356_v3 = vpop.permute.xlu1 %3355  ;;  %5137 = vmatprep.subr.mxu1 %v3555_v17 }
 0x8b3   : > { %v3301_v31 = vmul.f32 1.442695, %v3287_v42  ;;  %v3305_v46 = vsel %vm1937_vm5, %v6973_v56, 0.0  ;;  %5138 = vmatpush3.msra.mxu1 %v3555_v17 }
 0x8b4   : > { %3306 = vadd.xlane.f32.xlu0 %v3305_v46  ;;  %v3360_v16 = vpop.permute.xlu0 %3359  ;;  %5139 = vmatprep.subr.mxu1 %v3554_v6 }
 0x8b5   : > { %5357 = vpow2.f32 %v3301_v31  ;;  %5109 = vmatprep.subr.mxu0 %v3360_v16  ;;  %5140 = vmatpush3.msra.mxu1 %v3554_v6 }
 0x8b6   : > { %v6977_v45 = vpop.eup %5347  ;;  %5110 = vmatpush3.msra.mxu0 %v3360_v16  ;;  %v3354_v53 = vpop.permute.xlu1 %3353 }
 0x8b7   : > { %5111 = vmatprep.subr.mxu0 %v3358_v35  ;;  %v3314_v13 = vsel %vm1937_vm5, %v6977_v45, 0.0 }
 0x8b8   : > { %v6981_v26 = vpop.eup %5349  ;;  %3315 = vadd.xlane.f32.xlu1 %v3314_v13  ;;  %5112 = vmatpush3.msra.mxu0 %v3358_v35  ;;  %v3352_v34 = vpop.permute.xlu0 %3351  ;;  %v7064_v13 = vld [vmem:[%s7254_s10] ss:$0 sm:$0xff] }
 0x8b9   : > { %5113 = vmatprep.subr.mxu0 %v3356_v3  ;;  %v3320_v10 = vsel %vm1937_vm5, %v6981_v26, 0.0 }
 0x8ba   : > { %v6983_v52 = vpop.eup %5351  ;;  %5114 = vmatpush3.msra.mxu0 %v3356_v3  ;;  %v3350_v18 = vpop.permute.xlu1 %3349 }
 0x8bb   : > { %5115 = vmatprep.subr.mxu0 %v3354_v53  ;;  %v3311_v27 = vsel %vm1937_vm5, %v6983_v52, 0.0 }
 0x8bc   : > { %3312 = vadd.xlane.f32.xlu0 %v3311_v27  ;;  %3321 = vadd.xlane.f32.xlu1 %v3320_v10  ;;  %v6989_v21 = vpop.eup %5353 }
 0x8bd   : > { %5116 = vmatpush3.msra.mxu0 %v3354_v53  ;;  %v3326_v23 = vsel %vm1937_vm5, %v6989_v21, 0.0 }
 0x8be   : > { %v6991_v47 = vpop.eup %5355  ;;  %5117 = vmatprep.subr.mxu0 %v3352_v34 }
 0x8bf   : > { %5118 = vmatpush3.msra.mxu0 %v3352_v34  ;;  %v3317_v59 = vsel %vm1937_vm5, %v6991_v47, 0.0 }
 0x8c0   : > { %5119 = vmatprep.subr.mxu0 %v3350_v18  ;;  %3318 = vadd.xlane.f32.xlu0 %v3317_v59 }
 0x8c1   : > { %3327 = vadd.xlane.f32.xlu1 %v3326_v23  ;;  %5120 = vmatpush3.msra.mxu0 %v3350_v18 }
 0x8c2   : > { %v6997_v49 = vpop.eup %5357 }
 0x8c3   : > { %v3323_v8 = vsel %vm1937_vm5, %v6997_v49, 0.0 }
 0x8c4   : > { %3324 = vadd.xlane.f32.xlu0 %v3323_v8 }
 0x8d2   : > { %3345 = vrot.lane.b32.xlu1 %v5381_v9, %s5426_s22 }
 0x8d6   : > { %2623 = vrot.lane.b32.xlu1 %v6931_v41, %s5427_s23 }
 0x8da   : > { %2627 = vrot.lane.b32.xlu1 %v6935_v14, %s5427_s23  ;;  %3347 = vrot.lane.b32.xlu0 %v5382_v54, %s5426_s22 }
 0x8de   : > { %2631 = vrot.lane.b32.xlu1 %v6939_v57, %s5427_s23  ;;  %2621 = vrot.lane.b32.xlu0 %v6933_v36, %s5427_s23 }
 0x8e2   : > { %2635 = vrot.lane.b32.xlu1 %v6943_v61, %s5427_s23  ;;  %2625 = vrot.lane.b32.xlu0 %v6937_v63, %s5427_s23 }
 0x8e6   : > { %2629 = vrot.lane.b32.xlu0 %v6941_v37, %s5427_s23 }
 0x8ea   : > { %2633 = vrot.lane.b32.xlu0 %v6945_v20, %s5427_s23 }
 0x93b   : > { %v3310_v41 = vpop.xlane.xlu1 %3309 }
 0x93d   : > { %v3307_v14 = vpop.xlane.xlu0 %3306 }
 0x93e   : > { %5359 = vrcp.f32 %v3307_v14 }
 0x93f   : > { %5361 = vrcp.f32 %v3310_v41 }
 0x941   : > { %v3316_v57 = vpop.xlane.xlu1 %3315 }
 0x945   : > { %v3313_v36 = vpop.xlane.xlu0 %3312  ;;  %v3322_v11 = vpop.xlane.xlu1 %3321 }
 0x946   : > { %5363 = vrcp.f32 %v3313_v36 }
 0x947   : > { %5365 = vrcp.f32 %v3316_v57 }
 0x949   : > { %v3319_v28 = vpop.xlane.xlu0 %3318 }
 0x94a   : > { %5367 = vrcp.f32 %v3319_v28  ;;  %v3328_v61 = vpop.xlane.xlu1 %3327 }
 0x94b   : > { %v5360_v32 = vpop.eup %5359  ;;  %5369 = vrcp.f32 %v3322_v11 }
 0x94c   : > { %v3337_v63 = vmul.f32 %v5360_v32, %v6973_v56  ;;  %v5362_v20 = vpop.eup %5361 }
 0x94d   : > { %v3325_v37 = vpop.xlane.xlu0 %3324  ;;  %v3338_v15 = vmul.f32 %v5362_v20, %v6969_v5 }
 0x94e   : > { %5371 = vrcp.f32 %v3325_v37  ;;  %v3346_v48 = vpop.permute.xlu1 %3345  ;;  %5125 = vmatprep.mubr.msk.f32.mxu0 %vm1937_vm5, %v3337_v63 }
 0x94f   : > { %5373 = vrcp.f32 %v3328_v61 }
 0x951   : > { %v3348_v4 = vpop.permute.xlu0 %3347 }
 0x952   : > { %v2624_v30 = vpop.permute.xlu1 %2623  ;;  %5121 = vmatprep.subr.mxu0 %v3348_v4 }
 0x953   : > { %v5364_v24 = vpop.eup %5363  ;;  %2647 = vst.msk [vmem:[#allocation5 + $0x8] sm:$0xff] %vm2645_vm6, %v2624_v30  ;;  %5122 = vmatpush3.msra.mxu0 %v3348_v4 }
 0x954   : > { %5123 = vmatprep.subr.mxu0 %v3346_v48  ;;  %v3339_v55 = vmul.f32 %v5364_v24, %v6983_v52  ;;  %v5366_v22 = vpop.eup %5365 }
 0x955   : > { %v2622_v50 = vpop.permute.xlu0 %2621  ;;  %5124 = vmatpush3.msra.mxu0 %v3346_v48  ;;  %v3340_v25 = vmul.f32 %v5366_v22, %v6977_v45 }
 0x956   : > { %2646 = vst.msk [vmem:[#allocation5] sm:$0xff] %vm2645_vm6, %v2622_v50  ;;  %v2628_v43 = vpop.permute.xlu1 %2627  ;;  %5126 = vmatmul.mubr.msk.f32.vlgmr.msra.gmra.mxu0 %vm1937_vm5, %v3338_v15 }
 0x957   : > { %v5368_v7 = vpop.eup %5367  ;;  %2649 = vst.msk [vmem:[#allocation5 + $0x18] sm:$0xff] %vm2645_vm6, %v2628_v43  ;;  %5128 = vmatprep.mubr.msk.f32.mxu0 %vm1937_vm5, %v3339_v55 }
 0x958   : > { %v3341_v38 = vmul.f32 %v5368_v7, %v6991_v47  ;;  %v5370_v12 = vpop.eup %5369 }
 0x959   : > { %v2626_v1 = vpop.permute.xlu0 %2625  ;;  %v3342_v60 = vmul.f32 %v5370_v12, %v6981_v26 }
 0x95a   : > { %2648 = vst.msk [vmem:[#allocation5 + $0x10] sm:$0xff] %vm2645_vm6, %v2626_v1  ;;  %v2632_v39 = vpop.permute.xlu1 %2631  ;;  %5129 = vmatmul.mubr.msk.f32.gmra.mxu0 %vm1937_vm5, %v3340_v25  ;;  %v3539_v0 = vld [vmem:[#allocation5 + $0x8] sm:$0xff] }
 0x95b   : > { %v5372_v33 = vpop.eup %5371  ;;  %2651 = vst.msk [vmem:[#allocation5 + $0x28] sm:$0xff] %vm2645_vm6, %v2632_v39  ;;  %5131 = vmatprep.mubr.msk.f32.mxu0 %vm1937_vm5, %v3341_v38 }
 0x95c   : > { %v3343_v2 = vmul.f32 %v5372_v33, %v6997_v49  ;;  %v5374_v62 = vpop.eup %5373 }
 0x95d   : > { %v2630_v51 = vpop.permute.xlu0 %2629  ;;  %v3538_v19 = vld [vmem:[#allocation5] sm:$0xff]  ;;  %v3344_v35 = vmul.f32 %v5374_v62, %v6989_v21 }
 0x95e   : > { %2650 = vst.msk [vmem:[#allocation5 + $0x20] sm:$0xff] %vm2645_vm6, %v2630_v51  ;;  %v2636_v29 = vpop.permute.xlu1 %2635  ;;  %5132 = vmatmul.mubr.msk.f32.gmra.mxu0 %vm1937_vm5, %v3342_v60  ;;  %5141 = vmatprep.mubr.msk.f32.mxu1 %vm756_vm2, %v3538_v19  ;;  %v3541_v58 = vld [vmem:[#allocation5 + $0x18] sm:$0xff] }
 0x95f   : > { %2653 = vst.msk [vmem:[#allocation5 + $0x38] sm:$0xff] %vm2645_vm6, %v2636_v29  ;;  %5134 = vmatprep.mubr.msk.f32.mxu0 %vm1937_vm5, %v3343_v2  ;;  %5142 = vmatmul.mubr.msk.f32.vlgmr.msra.gmra.mxu1 %vm756_vm2, %v3539_v0 }
 0x961   : > { %v2634_v44 = vpop.permute.xlu0 %2633  ;;  %v3540_v5 = vld [vmem:[#allocation5 + $0x10] sm:$0xff] }
 0x962   : > { %2652 = vst.msk [vmem:[#allocation5 + $0x30] sm:$0xff] %vm2645_vm6, %v2634_v44  ;;  %5135 = vmatmul.mubr.msk.f32.gmra.mxu0 %vm1937_vm5, %v3344_v35  ;;  %5144 = vmatprep.mubr.msk.f32.mxu1 %vm756_vm2, %v3540_v5  ;;  %v3543_v40 = vld [vmem:[#allocation5 + $0x28] sm:$0xff] }
 0x963   : > { %5145 = vmatmul.mubr.msk.f32.gmra.mxu1 %vm756_vm2, %v3541_v58 }
 0x965   : > { %v3542_v42 = vld [vmem:[#allocation5 + $0x20] sm:$0xff] }
 0x966   : > { %5147 = vmatprep.mubr.msk.f32.mxu1 %vm756_vm2, %v3542_v42  ;;  %v3545_v31 = vld [vmem:[#allocation5 + $0x38] sm:$0xff] }
 0x967   : > { %5148 = vmatmul.mubr.msk.f32.gmra.mxu1 %vm756_vm2, %v3543_v40 }
 0x969   : > { %v3544_v56 = vld [vmem:[#allocation5 + $0x30] sm:$0xff] }
 0x96a   : > { %5150 = vmatprep.mubr.msk.f32.mxu1 %vm756_vm2, %v3544_v56 }
 0x96b   : > { %5151 = vmatmul.mubr.msk.f32.gmra.mxu1 %vm756_vm2, %v3545_v31 }
 0xa16   : > { %v5127_v3 = vpop.f32.mrf.mxu0 }
 0xa17   : > { %3508 = vrot.lane.b32.xlu1 %v5127_v3, %s5427_s23 }
 0xa18   : > { %v3459_v46 = vpop.f32.mrf.mxu0 }
 0xa19   : > { %3506 = vrot.lane.b32.xlu0 %v3459_v46, %s5427_s23 }
 0xa1a   : > { %v5130_v16 = vpop.f32.mrf.mxu0 }
 0xa1b   : > { %3512 = vrot.lane.b32.xlu1 %v5130_v16, %s5427_s23 }
 0xa1c   : > { %v3469_v45 = vpop.f32.mrf.mxu0 }
 0xa1d   : > { %3510 = vrot.lane.b32.xlu0 %v3469_v45, %s5427_s23 }
 0xa1e   : > { %v5133_v26 = vpop.f32.mrf.mxu0 }
 0xa1f   : > { %3516 = vrot.lane.b32.xlu1 %v5133_v26, %s5427_s23  ;;  %v5143_v53 = vpop.f32.mrf.mxu1 }
 0xa20   : > { %v7068_v52 = vadd.f32 %v5143_v53, %v7064_v13  ;;  %v3479_v27 = vpop.f32.mrf.mxu0 }
 0xa21   : > { %3514 = vrot.lane.b32.xlu0 %v3479_v27, %s5427_s23  ;;  %v3677_v10 = vpop.f32.mrf.mxu1 }
 0xa22   : > { %v7072_v21 = vadd.f32 %v7064_v13, %v3677_v10  ;;  %v5136_v34 = vpop.f32.mrf.mxu0 }
 0xa23   : > { %3520 = vrot.lane.b32.xlu1 %v5136_v34, %s5427_s23  ;;  %v5146_v47 = vpop.f32.mrf.mxu1 }
 0xa24   : > { %v7076_v18 = vadd.f32 %v5146_v47, %v7064_v13  ;;  %v3489_v59 = vpop.f32.mrf.mxu0 }
 0xa25   : > { %3518 = vrot.lane.b32.xlu0 %v3489_v59, %s5427_s23  ;;  %v3687_v23 = vpop.f32.mrf.mxu1 }
 0xa26   : > { %v7080_v49 = vadd.f32 %v7064_v13, %v3687_v23 }
 0xa27   : > { %v5149_v8 = vpop.f32.mrf.mxu1 }
 0xa28   : > { %v7083_v9 = vadd.f32 %v5149_v8, %v7064_v13 }
 0xa29   : > { %v3697_v54 = vpop.f32.mrf.mxu1 }
 0xa2a   : > { %v7086_v17 = vadd.f32 %v7064_v13, %v3697_v54 }
 0xa2b   : > { %v5152_v6 = vpop.f32.mrf.mxu1 }
 0xa2c   : > { %v7089_v41 = vadd.f32 %v5152_v6, %v7064_v13 }
 0xa2d   : > { %v3707_v14 = vpop.f32.mrf.mxu1 }
 0xa2e   : > { %v7092_v57 = vadd.f32 %v7064_v13, %v3707_v14 }
 0xa89   : > { %v3509_v36 = vpop.permute.xlu1 %3508 }
 0xa8a   : > { %3531 = vst.msk [vmem:[#allocation5 + $0x48] sm:$0xff] %vm2645_vm6, %v3509_v36 }
 0xa8b   : > { %v3507_v11 = vpop.permute.xlu0 %3506 }
 0xa8c   : > { %3530 = vst.msk [vmem:[#allocation5 + $0x40] sm:$0xff] %vm2645_vm6, %v3507_v11 }
 0xa8d   : > { %v3513_v28 = vpop.permute.xlu1 %3512 }
 0xa8e   : > { %3533 = vst.msk [vmem:[#allocation5 + $0x58] sm:$0xff] %vm2645_vm6, %v3513_v28 }
 0xa8f   : > { %v3511_v61 = vpop.permute.xlu0 %3510 }
 0xa90   : > { %3532 = vst.msk [vmem:[#allocation5 + $0x50] sm:$0xff] %vm2645_vm6, %v3511_v61 }
 0xa91   : > { %v3517_v32 = vpop.permute.xlu1 %3516  ;;  %v3547_v48 = vld [vmem:[#allocation5 + $0x48] sm:$0xff] }
 0xa92   : > { %3535 = vst.msk [vmem:[#allocation5 + $0x68] sm:$0xff] %vm2645_vm6, %v3517_v32 }
 0xa93   : > { %v3515_v63 = vpop.permute.xlu0 %3514  ;;  %v3546_v37 = vld [vmem:[#allocation5 + $0x40] sm:$0xff] }
 0xa94   : > { %3534 = vst.msk [vmem:[#allocation5 + $0x60] sm:$0xff] %vm2645_vm6, %v3515_v63  ;;  %5153 = vmatprep.mubr.msk.f32.mxu1 %vm756_vm2, %v3546_v37 }
 0xa95   : > { %5154 = vmatmul.mubr.msk.f32.gmra.mxu1 %vm756_vm2, %v3547_v48  ;;  %v3521_v20 = vpop.permute.xlu1 %3520  ;;  %v3549_v24 = vld [vmem:[#allocation5 + $0x58] sm:$0xff] }
 0xa96   : > { %3537 = vst.msk [vmem:[#allocation5 + $0x78] sm:$0xff] %vm2645_vm6, %v3521_v20 }
 0xa97   : > { %v3519_v4 = vpop.permute.xlu0 %3518  ;;  %v3548_v30 = vld [vmem:[#allocation5 + $0x50] sm:$0xff] }
 0xa98   : > { %3536 = vst.msk [vmem:[#allocation5 + $0x70] sm:$0xff] %vm2645_vm6, %v3519_v4  ;;  %5156 = vmatprep.mubr.msk.f32.mxu1 %vm756_vm2, %v3548_v30 }
 0xa99   : > { %5157 = vmatmul.mubr.msk.f32.gmra.mxu1 %vm756_vm2, %v3549_v24  ;;  %v3551_v55 = vld [vmem:[#allocation5 + $0x68] sm:$0xff] }
 0xa9b   : > { %v3550_v15 = vld [vmem:[#allocation5 + $0x60] sm:$0xff] }
 0xa9c   : > { %5159 = vmatprep.mubr.msk.f32.mxu1 %vm756_vm2, %v3550_v15 }
 0xa9d   : > { %5160 = vmatmul.mubr.msk.f32.gmra.mxu1 %vm756_vm2, %v3551_v55  ;;  %v3553_v50 = vld [vmem:[#allocation5 + $0x78] sm:$0xff] }
 0xa9f   : > { %v3552_v22 = vld [vmem:[#allocation5 + $0x70] sm:$0xff] }
 0xaa0   : > { %5162 = vmatprep.mubr.msk.f32.mxu1 %vm756_vm2, %v3552_v22 }
 0xaa1   : > { %5163 = vmatmul.mubr.msk.f32.gmra.mxu1 %vm756_vm2, %v3553_v50 }
 0xb55   : > { %v5155_v43 = vpop.f32.mrf.mxu1 }
 0xb56   : > { %v3723_v7 = vadd.f32 %v5155_v43, %v7064_v13 }
 0xb57   : > { %v3717_v25 = vpop.f32.mrf.mxu1 }
 0xb58   : > { %v3718_v38 = vadd.f32 %v7064_v13, %v3717_v25 }
 0xb59   : > { %v5158_v12 = vpop.f32.mrf.mxu1 }
 0xb5a   : > { %v3733_v1 = vadd.f32 %v5158_v12, %v7064_v13 }
 0xb5b   : > { %v3727_v39 = vpop.f32.mrf.mxu1 }
 0xb5c   : > { %v3728_v33 = vadd.f32 %v7064_v13, %v3727_v39 }
 0xb5d   : > { %v5161_v60 = vpop.f32.mrf.mxu1 }
 0xb5e   : > { %v3743_v2 = vadd.f32 %v5161_v60, %v7064_v13 }
 0xb5f   : > { %v3737_v62 = vpop.f32.mrf.mxu1 }
 0xb60   : > { %v3738_v51 = vadd.f32 %v7064_v13, %v3737_v62  ;;  %3761 = sbr.rel (%p4515_p0) target bundleno = 2924 (0xb6c), region = 60 }
 0xb61   : > { %v5164_v19 = vpop.f32.mrf.mxu1 }
 0xb62   : > { %v3753_v29 = vadd.f32 %v5164_v19, %v7064_v13 }
 0xb63   : > { %v3747_v0 = vpop.f32.mrf.mxu1 }
 0xb64   : > { %v3748_v35 = vadd.f32 %v7064_v13, %v3747_v0 }
 0xb65   : > { %v3763_v44 = vld [vmem:[%s3762_s12] sm:$0xff]  ;;  %v4516_v5 = vld [vmem:[%s3762_s12 + $0x10] sm:$0xff] }
 0xb66   : > { %v4518_v58 = vld [vmem:[%s3762_s12 + $0x20] sm:$0xff]  ;;  %v3764_v42 = vadd.f32 %v3763_v44, %v7072_v21  ;;  %v3769_v40 = vadd.f32 %v4516_v5, %v7068_v52  ;;  %v4520_v31 = vld [vmem:[%s3762_s12 + $0x30] sm:$0xff] }
 0xb67   : > { %v3774_v56 = vadd.f32 %v4518_v58, %v7080_v49  ;;  %v4522_v3 = vld [vmem:[%s3762_s12 + $0x40] sm:$0xff]  ;;  %v4524_v46 = vld [vmem:[%s3762_s12 + $0x50] sm:$0xff]  ;;  %v3779_v16 = vadd.f32 %v4520_v31, %v7076_v18 }
 0xb68   : > { %v3784_v45 = vadd.f32 %v4522_v3, %v7086_v17  ;;  %v3789_v13 = vadd.f32 %v4524_v46, %v7083_v9  ;;  %v4526_v26 = vld [vmem:[%s3762_s12 + $0x60] sm:$0xff]  ;;  %v4528_v53 = vld [vmem:[%s3762_s12 + $0x70] sm:$0xff]  ;;  %3765 = vst.msk [vmem:[%s3762_s12] sm:$0xff] %vm756_vm2, %v3764_v42  ;;  %4517 = vst.msk [vmem:[%s3762_s12 + $0x10] sm:$0xff] %vm756_vm2, %v3769_v40 }
 0xb69   : > { %4519 = vst.msk [vmem:[%s3762_s12 + $0x20] sm:$0xff] %vm756_vm2, %v3774_v56  ;;  %v3794_v52 = vadd.f32 %v4526_v26, %v7092_v57  ;;  %v3799_v27 = vadd.f32 %v4528_v53, %v7089_v41  ;;  %4521 = vst.msk [vmem:[%s3762_s12 + $0x30] sm:$0xff] %vm756_vm2, %v3779_v16 }
 0xb6a   : > { %4523 = vst.msk [vmem:[%s3762_s12 + $0x40] sm:$0xff] %vm756_vm2, %v3784_v45  ;;  %4525 = vst.msk [vmem:[%s3762_s12 + $0x50] sm:$0xff] %vm756_vm2, %v3789_v13 }
 0xb6b   : > { %4527 = vst.msk [vmem:[%s3762_s12 + $0x60] sm:$0xff] %vm756_vm2, %v3794_v52  ;;  %4529 = vst.msk [vmem:[%s3762_s12 + $0x70] sm:$0xff] %vm756_vm2, %v3799_v27 }
 0xb6c PF: > { %s3801_s16 = sld [smem:[#allocation8 + %s6178_s25]] }
 0xb6d   : > { %s3802_s18 = sld [smem:[#allocation9 + %s6178_s25]] }
 0xb73   : > { %p4530_p1 = scmp.le.s32.totalorder %s3802_s18, 0 }
 0xb74   : > { %s3807_s13 = scalar_lea.vmem (!%p4530_p1), [#allocation6], %s3801_s16 }
 0xb75   : > { %3806 = sbr.rel (%p4530_p1) target bundleno = 2945 (0xb81), region = 64 }
 0xb7a   : > { %v3808_v10 = vld [vmem:[%s3807_s13] sm:$0xff]  ;;  %v4531_v21 = vld [vmem:[%s3807_s13 + $0x10] sm:$0xff] }
 0xb7b   : > { %v4533_v34 = vld [vmem:[%s3807_s13 + $0x20] sm:$0xff]  ;;  %v3809_v47 = vadd.f32 %v3808_v10, %v3718_v38  ;;  %v3814_v18 = vadd.f32 %v4531_v21, %v3723_v7  ;;  %v4535_v23 = vld [vmem:[%s3807_s13 + $0x30] sm:$0xff] }
 0xb7c   : > { %v3819_v59 = vadd.f32 %v4533_v34, %v3728_v33  ;;  %v4537_v49 = vld [vmem:[%s3807_s13 + $0x40] sm:$0xff]  ;;  %v4539_v8 = vld [vmem:[%s3807_s13 + $0x50] sm:$0xff]  ;;  %v3824_v9 = vadd.f32 %v4535_v23, %v3733_v1 }
 0xb7d   : > { %v3829_v54 = vadd.f32 %v4537_v49, %v3738_v51  ;;  %v3834_v17 = vadd.f32 %v4539_v8, %v3743_v2  ;;  %v4541_v6 = vld [vmem:[%s3807_s13 + $0x60] sm:$0xff]  ;;  %v4543_v41 = vld [vmem:[%s3807_s13 + $0x70] sm:$0xff]  ;;  %3810 = vst.msk [vmem:[%s3807_s13] sm:$0xff] %vm756_vm2, %v3809_v47  ;;  %4532 = vst.msk [vmem:[%s3807_s13 + $0x10] sm:$0xff] %vm756_vm2, %v3814_v18 }
 0xb7e   : > { %4534 = vst.msk [vmem:[%s3807_s13 + $0x20] sm:$0xff] %vm756_vm2, %v3819_v59  ;;  %v3839_v14 = vadd.f32 %v4541_v6, %v3748_v35  ;;  %v3844_v57 = vadd.f32 %v4543_v41, %v3753_v29  ;;  %4536 = vst.msk [vmem:[%s3807_s13 + $0x30] sm:$0xff] %vm756_vm2, %v3824_v9 }
 0xb7f   : > { %4538 = vst.msk [vmem:[%s3807_s13 + $0x40] sm:$0xff] %vm756_vm2, %v3829_v54  ;;  %4540 = vst.msk [vmem:[%s3807_s13 + $0x50] sm:$0xff] %vm756_vm2, %v3834_v17 }
 0xb80   : > { %4542 = vst.msk [vmem:[%s3807_s13 + $0x60] sm:$0xff] %vm756_vm2, %v3839_v14  ;;  %4544 = vst.msk [vmem:[%s3807_s13 + $0x70] sm:$0xff] %vm756_vm2, %v3844_v57 }
 0xb81 PF: > { %v3912_v36 = vld [vmem:[%s5518_s17 + $0x10] sm:$0xff]  ;;  %v3910_v11 = vld [vmem:[%s5518_s17] sm:$0xff]  ;;  %v5428_v28 = vmov 0   ;;  %v3913_v61 = vld [vmem:[%s5518_s17 + $0x18] sm:$0xff] }
 0xb82   : > { %5384 = vset.pattern.permute.xlu1 %v5428_v28  ;;  %5383 = vset.pattern.permute.xlu0 %v5428_v28  ;;  %v3911_v32 = vld [vmem:[%s5518_s17 + $0x8] sm:$0xff]  ;;  %v3914_v37 = vld [vmem:[%s5518_s17 + $0x20] sm:$0xff]  ;;  %v3917_v48 = vld [vmem:[%s5518_s17 + $0x38] sm:$0xff] }
 0xb83   : > { %3954 = vperm.xlu1 %5384, %v3912_v36   ;;  %3944 = vperm.xlu0 %5383, %v3910_v11   ;;  %v3915_v63 = vld [vmem:[%s5518_s17 + $0x28] sm:$0xff]  ;;  %v3916_v20 = vld [vmem:[%s5518_s17 + $0x30] sm:$0xff]  ;;  %v3918_v30 = vld [vmem:[%s5518_s17 + $0x40] sm:$0xff] }
 0xb84   : > { %v3919_v4 = vld [vmem:[%s5518_s17 + $0x48] sm:$0xff]  ;;  %v3921_v24 = vld [vmem:[%s5518_s17 + $0x58] sm:$0xff]  ;;  %v3920_v15 = vld [vmem:[%s5518_s17 + $0x50] sm:$0xff] }
 0xb85   : > { %v3923_v55 = vld [vmem:[%s5518_s17 + $0x68] sm:$0xff]  ;;  %v3922_v22 = vld [vmem:[%s5518_s17 + $0x60] sm:$0xff]  ;;  %v3925_v50 = vld [vmem:[%s5518_s17 + $0x78] sm:$0xff] }
 0xb86   : > { %v3924_v43 = vld [vmem:[%s5518_s17 + $0x70] sm:$0xff]  ;;  %v3927_v7 = vld [vmem:[%s5518_s17 + $0x88] sm:$0xff]  ;;  %v3926_v25 = vld [vmem:[%s5518_s17 + $0x80] sm:$0xff] }
 0xb87   : > { %3959 = vperm.xlu1 %5384, %v3913_v61   ;;  %3949 = vperm.xlu0 %5383, %v3911_v32   ;;  %v3929_v38 = vld [vmem:[%s5518_s17 + $0x98] sm:$0xff]  ;;  %v3928_v12 = vld [vmem:[%s5518_s17 + $0x90] sm:$0xff]  ;;  %v3931_v1 = vld [vmem:[%s5518_s17 + $0xa8] sm:$0xff] }
 0xb88   : > { %v3930_v39 = vld [vmem:[%s5518_s17 + $0xa0] sm:$0xff]  ;;  %v3933_v33 = vld [vmem:[%s5518_s17 + $0xb8] sm:$0xff]  ;;  %v3932_v60 = vld [vmem:[%s5518_s17 + $0xb0] sm:$0xff] }
 0xb89   : > { %v3935_v2 = vld [vmem:[%s5518_s17 + $0xc8] sm:$0xff]  ;;  %v3934_v62 = vld [vmem:[%s5518_s17 + $0xc0] sm:$0xff]  ;;  %v3937_v51 = vld [vmem:[%s5518_s17 + $0xd8] sm:$0xff] }
 0xb8a   : > { %v3936_v19 = vld [vmem:[%s5518_s17 + $0xd0] sm:$0xff]  ;;  %v3939_v29 = vld [vmem:[%s5518_s17 + $0xe8] sm:$0xff]  ;;  %v3938_v0 = vld [vmem:[%s5518_s17 + $0xe0] sm:$0xff] }
 0xb8b   : > { %3969 = vperm.xlu1 %5384, %v3915_v63   ;;  %3964 = vperm.xlu0 %5383, %v3914_v37   ;;  %v3941_v35 = vld [vmem:[%s5518_s17 + $0xf8] sm:$0xff]  ;;  %v3940_v44 = vld [vmem:[%s5518_s17 + $0xf0] sm:$0xff]  ;;  %v3878_v58 = vld [vmem:[#allocation6] sm:$0xff] }
 0xb8c   : > { %v3880_v5 = vld [vmem:[#allocation6 + $0x10] sm:$0xff]  ;;  %v3846_v31 = vld [vmem:[#allocation2] sm:$0xff]  ;;  %v3881_v16 = vld [vmem:[#allocation6 + $0x18] sm:$0xff] }
 0xb8d   : > { %v3848_v40 = vld [vmem:[#allocation2 + $0x10] sm:$0xff]  ;;  %v3879_v45 = vld [vmem:[#allocation6 + $0x8] sm:$0xff]  ;;  %v3849_v52 = vld [vmem:[#allocation2 + $0x18] sm:$0xff] }
 0xb8e   : > { %v3847_v10 = vld [vmem:[#allocation2 + $0x8] sm:$0xff]  ;;  %v3882_v18 = vld [vmem:[#allocation6 + $0x20] sm:$0xff]  ;;  %v3885_v41 = vld [vmem:[#allocation6 + $0x38] sm:$0xff] }
 0xb8f   : > { %3979 = vperm.xlu1 %5384, %v3917_v48   ;;  %3974 = vperm.xlu0 %5383, %v3916_v20   ;;  %v3883_v47 = vld [vmem:[#allocation6 + $0x28] sm:$0xff]  ;;  %v3850_v54 = vld [vmem:[#allocation2 + $0x20] sm:$0xff]  ;;  %v3884_v14 = vld [vmem:[#allocation6 + $0x30] sm:$0xff] }
 0xb90   : > { %v3851_v8 = vld [vmem:[#allocation2 + $0x28] sm:$0xff]  ;;  %v3853_v28 = vld [vmem:[#allocation2 + $0x38] sm:$0xff]  ;;  %v3852_v32 = vld [vmem:[#allocation2 + $0x30] sm:$0xff] }
 0xb91   : > { %v3887_v48 = vld [vmem:[#allocation6 + $0x48] sm:$0xff]  ;;  %v3886_v20 = vld [vmem:[#allocation6 + $0x40] sm:$0xff] }
 0xb93   : > { %3989 = vperm.xlu1 %5384, %v3919_v4   ;;  %3984 = vperm.xlu0 %5383, %v3918_v30  }
 0xb97   : > { %3999 = vperm.xlu1 %5384, %v3921_v24   ;;  %3994 = vperm.xlu0 %5383, %v3920_v15   ;;  %v3855_v15 = vld [vmem:[#allocation2 + $0x48] sm:$0xff] }
 0xb9b   : > { %4009 = vperm.xlu1 %5384, %v3923_v55   ;;  %4004 = vperm.xlu0 %5383, %v3922_v22   ;;  %v3854_v22 = vld [vmem:[#allocation2 + $0x40] sm:$0xff] }
 0xb9f   : > { %4019 = vperm.xlu1 %5384, %v3925_v50   ;;  %4014 = vperm.xlu0 %5383, %v3924_v43  }
 0xba3   : > { %4029 = vperm.xlu1 %5384, %v3927_v7   ;;  %4024 = vperm.xlu0 %5383, %v3926_v25   ;;  %v3889_v7 = vld [vmem:[#allocation6 + $0x58] sm:$0xff]  ;;  %v3888_v25 = vld [vmem:[#allocation6 + $0x50] sm:$0xff] }
 0xba7   : > { %4039 = vperm.xlu1 %5384, %v3929_v38   ;;  %4034 = vperm.xlu0 %5383, %v3928_v12  }
 0xbab   : > { %4049 = vperm.xlu1 %5384, %v3931_v1   ;;  %4044 = vperm.xlu0 %5383, %v3930_v39   ;;  %v3857_v39 = vld [vmem:[#allocation2 + $0x58] sm:$0xff] }
 0xbaf   : > { %4059 = vperm.xlu1 %5384, %v3933_v33   ;;  %4054 = vperm.xlu0 %5383, %v3932_v60   ;;  %v3856_v60 = vld [vmem:[#allocation2 + $0x50] sm:$0xff] }
 0xbb3   : > { %4069 = vperm.xlu1 %5384, %v3935_v2   ;;  %4064 = vperm.xlu0 %5383, %v3934_v62  }
 0xbb7   : > { %4079 = vperm.xlu1 %5384, %v3937_v51   ;;  %4074 = vperm.xlu0 %5383, %v3936_v19   ;;  %v3891_v51 = vld [vmem:[#allocation6 + $0x68] sm:$0xff]  ;;  %v3890_v19 = vld [vmem:[#allocation6 + $0x60] sm:$0xff] }
 0xbbb   : > { %4089 = vperm.xlu1 %5384, %v3939_v29   ;;  %4084 = vperm.xlu0 %5383, %v3938_v0  }
 0xbbf   : > { %4099 = vperm.xlu1 %5384, %v3941_v35   ;;  %4094 = vperm.xlu0 %5383, %v3940_v44   ;;  %v3859_v44 = vld [vmem:[#allocation2 + $0x68] sm:$0xff] }
 0xbfe   : > { %v3955_v42 = vpop.permute.xlu1 %3954  ;;  %v3945_v56 = vpop.permute.xlu0 %3944 }
 0xbff   : > { %v4104_v3 = vmul.f32 %v3955_v42, %v3880_v5  ;;  %v4102_v46 = vmul.f32 %v3945_v56, %v3878_v58  ;;  %v3858_v58 = vld [vmem:[#allocation2 + $0x60] sm:$0xff]  ;;  %v3893_v56 = vld [vmem:[#allocation6 + $0x78] sm:$0xff] }
 0xc01   : > { %v4136_v13 = vadd.f32 %v4104_v3, %v3848_v40  ;;  %v4134_v26 = vadd.f32 %v4102_v46, %v3846_v31  ;;  %v3892_v31 = vld [vmem:[#allocation6 + $0x70] sm:$0xff] }
 0xc02   : > { %v3960_v53 = vpop.permute.xlu1 %3959  ;;  %v3950_v27 = vpop.permute.xlu0 %3949 }
 0xc03   : > { %4168 = vst.msk [vmem:[%s5523_s20 + $0x10] sm:$0xff] %vm756_vm2, %v4136_v13  ;;  %4166 = vst.msk [vmem:[%s5523_s20] sm:$0xff] %vm756_vm2, %v4134_v26  ;;  %v4105_v21 = vmul.f32 %v3960_v53, %v3881_v16  ;;  %v4103_v34 = vmul.f32 %v3950_v27, %v3879_v45  ;;  %v3861_v45 = vld [vmem:[#allocation2 + $0x78] sm:$0xff]  ;;  %v3860_v26 = vld [vmem:[#allocation2 + $0x70] sm:$0xff] }
 0xc04   : > { %v3895_v27 = vld [vmem:[#allocation6 + $0x88] sm:$0xff] }
 0xc05   : > { %v4137_v59 = vadd.f32 %v4105_v21, %v3849_v52  ;;  %v4135_v23 = vadd.f32 %v4103_v34, %v3847_v10  ;;  %v3894_v10 = vld [vmem:[#allocation6 + $0x80] sm:$0xff] }
 0xc06   : > { %v3970_v49 = vpop.permute.xlu1 %3969  ;;  %v3965_v9 = vpop.permute.xlu0 %3964 }
 0xc07   : > { %4169 = vst.msk [vmem:[%s5523_s20 + $0x18] sm:$0xff] %vm756_vm2, %v4137_v59  ;;  %4167 = vst.msk [vmem:[%s5523_s20 + $0x8] sm:$0xff] %vm756_vm2, %v4135_v23  ;;  %v4107_v17 = vmul.f32 %v3970_v49, %v3883_v47  ;;  %v4106_v6 = vmul.f32 %v3965_v9, %v3882_v18  ;;  %v3863_v18 = vld [vmem:[#allocation2 + $0x88] sm:$0xff]  ;;  %v3862_v23 = vld [vmem:[#allocation2 + $0x80] sm:$0xff] }
 0xc08   : > { %v3897_v9 = vld [vmem:[#allocation6 + $0x98] sm:$0xff] }
 0xc09   : > { %v4139_v57 = vadd.f32 %v4107_v17, %v3851_v8  ;;  %v4138_v36 = vadd.f32 %v4106_v6, %v3850_v54  ;;  %v3896_v54 = vld [vmem:[#allocation6 + $0x90] sm:$0xff] }
 0xc0a   : > { %v3980_v11 = vpop.permute.xlu1 %3979  ;;  %v3975_v61 = vpop.permute.xlu0 %3974 }
 0xc0b   : > { %4171 = vst.msk [vmem:[%s5523_s20 + $0x28] sm:$0xff] %vm756_vm2, %v4139_v57  ;;  %4170 = vst.msk [vmem:[%s5523_s20 + $0x20] sm:$0xff] %vm756_vm2, %v4138_v36  ;;  %v4109_v63 = vmul.f32 %v3980_v11, %v3885_v41  ;;  %v4108_v37 = vmul.f32 %v3975_v61, %v3884_v14  ;;  %v3865_v14 = vld [vmem:[#allocation2 + $0x98] sm:$0xff]  ;;  %v3864_v36 = vld [vmem:[#allocation2 + $0x90] sm:$0xff] }
 0xc0c   : > { %v3899_v61 = vld [vmem:[#allocation6 + $0xa8] sm:$0xff] }
 0xc0d   : > { %v4141_v4 = vadd.f32 %v4109_v63, %v3853_v28  ;;  %v4140_v30 = vadd.f32 %v4108_v37, %v3852_v32  ;;  %v3898_v32 = vld [vmem:[#allocation6 + $0xa0] sm:$0xff] }
 0xc0e   : > { %v3990_v24 = vpop.permute.xlu1 %3989  ;;  %v3985_v55 = vpop.permute.xlu0 %3984 }
 0xc0f   : > { %4173 = vst.msk [vmem:[%s5523_s20 + $0x38] sm:$0xff] %vm756_vm2, %v4141_v4  ;;  %4172 = vst.msk [vmem:[%s5523_s20 + $0x30] sm:$0xff] %vm756_vm2, %v4140_v30  ;;  %v4111_v50 = vmul.f32 %v3990_v24, %v3887_v48  ;;  %v4110_v43 = vmul.f32 %v3985_v55, %v3886_v20  ;;  %v3867_v20 = vld [vmem:[#allocation2 + $0xa8] sm:$0xff]  ;;  %v3866_v30 = vld [vmem:[#allocation2 + $0xa0] sm:$0xff] }
 0xc10   : > { %v3901_v55 = vld [vmem:[#allocation6 + $0xb8] sm:$0xff] }
 0xc11   : > { %v4143_v38 = vadd.f32 %v4111_v50, %v3855_v15  ;;  %v4142_v12 = vadd.f32 %v4110_v43, %v3854_v22  ;;  %v3900_v22 = vld [vmem:[#allocation6 + $0xb0] sm:$0xff] }
 0xc12   : > { %v4000_v1 = vpop.permute.xlu1 %3999  ;;  %v3995_v33 = vpop.permute.xlu0 %3994 }
 0xc13   : > { %4175 = vst.msk [vmem:[%s5523_s20 + $0x48] sm:$0xff] %vm756_vm2, %v4143_v38  ;;  %4174 = vst.msk [vmem:[%s5523_s20 + $0x40] sm:$0xff] %vm756_vm2, %v4142_v12  ;;  %v4113_v2 = vmul.f32 %v4000_v1, %v3889_v7  ;;  %v4112_v62 = vmul.f32 %v3995_v33, %v3888_v25  ;;  %v3869_v25 = vld [vmem:[#allocation2 + $0xb8] sm:$0xff]  ;;  %v3868_v12 = vld [vmem:[#allocation2 + $0xb0] sm:$0xff] }
 0xc14   : > { %v3903_v33 = vld [vmem:[#allocation6 + $0xc8] sm:$0xff] }
 0xc15   : > { %v4145_v29 = vadd.f32 %v4113_v2, %v3857_v39  ;;  %v4144_v0 = vadd.f32 %v4112_v62, %v3856_v60  ;;  %v3902_v60 = vld [vmem:[#allocation6 + $0xc0] sm:$0xff] }
 0xc16   : > { %v4010_v35 = vpop.permute.xlu1 %4009  ;;  %v4005_v5 = vpop.permute.xlu0 %4004 }
 0xc17   : > { %4177 = vst.msk [vmem:[%s5523_s20 + $0x58] sm:$0xff] %vm756_vm2, %v4145_v29  ;;  %4176 = vst.msk [vmem:[%s5523_s20 + $0x50] sm:$0xff] %vm756_vm2, %v4144_v0  ;;  %v4115_v42 = vmul.f32 %v4010_v35, %v3891_v51  ;;  %v4114_v40 = vmul.f32 %v4005_v5, %v3890_v19  ;;  %v3871_v19 = vld [vmem:[#allocation2 + $0xc8] sm:$0xff]  ;;  %v3870_v0 = vld [vmem:[#allocation2 + $0xc0] sm:$0xff] }
 0xc18   : > { %v3905_v5 = vld [vmem:[#allocation6 + $0xd8] sm:$0xff] }
 0xc19   : > { %v4147_v3 = vadd.f32 %v4115_v42, %v3859_v44  ;;  %v4146_v46 = vadd.f32 %v4114_v40, %v3858_v58  ;;  %v3904_v58 = vld [vmem:[#allocation6 + $0xd0] sm:$0xff] }
 0xc1a   : > { %v4020_v16 = vpop.permute.xlu1 %4019  ;;  %v4015_v13 = vpop.permute.xlu0 %4014 }
 0xc1b   : > { %4179 = vst.msk [vmem:[%s5523_s20 + $0x68] sm:$0xff] %vm756_vm2, %v4147_v3  ;;  %4178 = vst.msk [vmem:[%s5523_s20 + $0x60] sm:$0xff] %vm756_vm2, %v4146_v46  ;;  %v4117_v53 = vmul.f32 %v4020_v16, %v3893_v56  ;;  %v4116_v52 = vmul.f32 %v4015_v13, %v3892_v31  ;;  %v3873_v31 = vld [vmem:[#allocation2 + $0xd8] sm:$0xff]  ;;  %v3872_v46 = vld [vmem:[#allocation2 + $0xd0] sm:$0xff] }
 0xc1c   : > { %v3907_v13 = vld [vmem:[#allocation6 + $0xe8] sm:$0xff] }
 0xc1d   : > { %v4149_v21 = vadd.f32 %v4117_v53, %v3861_v45  ;;  %v4148_v34 = vadd.f32 %v4116_v52, %v3860_v26  ;;  %v3906_v26 = vld [vmem:[#allocation6 + $0xe0] sm:$0xff] }
 0xc1e   : > { %v4030_v47 = vpop.permute.xlu1 %4029  ;;  %v4025_v59 = vpop.permute.xlu0 %4024 }
 0xc1f   : > { %4181 = vst.msk [vmem:[%s5523_s20 + $0x78] sm:$0xff] %vm756_vm2, %v4149_v21  ;;  %4180 = vst.msk [vmem:[%s5523_s20 + $0x70] sm:$0xff] %vm756_vm2, %v4148_v34  ;;  %v4119_v49 = vmul.f32 %v4030_v47, %v3895_v27  ;;  %v4118_v8 = vmul.f32 %v4025_v59, %v3894_v10  ;;  %v3875_v10 = vld [vmem:[#allocation2 + $0xe8] sm:$0xff]  ;;  %v3874_v34 = vld [vmem:[#allocation2 + $0xe0] sm:$0xff] }
 0xc20   : > { %v3909_v59 = vld [vmem:[#allocation6 + $0xf8] sm:$0xff] }
 0xc21   : > { %v4151_v17 = vadd.f32 %v4119_v49, %v3863_v18  ;;  %v4150_v6 = vadd.f32 %v4118_v8, %v3862_v23  ;;  %v3908_v23 = vld [vmem:[#allocation6 + $0xf0] sm:$0xff] }
 0xc22   : > { %v4040_v41 = vpop.permute.xlu1 %4039  ;;  %v4035_v57 = vpop.permute.xlu0 %4034 }
 0xc23   : > { %4183 = vst.msk [vmem:[%s5523_s20 + $0x88] sm:$0xff] %vm756_vm2, %v4151_v17  ;;  %4182 = vst.msk [vmem:[%s5523_s20 + $0x80] sm:$0xff] %vm756_vm2, %v4150_v6  ;;  %v4121_v11 = vmul.f32 %v4040_v41, %v3897_v9  ;;  %v4120_v28 = vmul.f32 %v4035_v57, %v3896_v54  ;;  %v3877_v54 = vld [vmem:[#allocation2 + $0xf8] sm:$0xff]  ;;  %v3876_v6 = vld [vmem:[#allocation2 + $0xf0] sm:$0xff] }
 0xc25   : > { %v4153_v63 = vadd.f32 %v4121_v11, %v3865_v14  ;;  %v4152_v37 = vadd.f32 %v4120_v28, %v3864_v36 }
 0xc26   : > { %v4050_v48 = vpop.permute.xlu1 %4049  ;;  %v4045_v4 = vpop.permute.xlu0 %4044 }
 0xc27   : > { %4185 = vst.msk [vmem:[%s5523_s20 + $0x98] sm:$0xff] %vm756_vm2, %v4153_v63  ;;  %4184 = vst.msk [vmem:[%s5523_s20 + $0x90] sm:$0xff] %vm756_vm2, %v4152_v37  ;;  %v4123_v24 = vmul.f32 %v4050_v48, %v3899_v61  ;;  %v4122_v15 = vmul.f32 %v4045_v4, %v3898_v32 }
 0xc29   : > { %v4155_v50 = vadd.f32 %v4123_v24, %v3867_v20  ;;  %v4154_v43 = vadd.f32 %v4122_v15, %v3866_v30 }
 0xc2a   : > { %v4060_v7 = vpop.permute.xlu1 %4059  ;;  %v4055_v38 = vpop.permute.xlu0 %4054 }
 0xc2b   : > { %4187 = vst.msk [vmem:[%s5523_s20 + $0xa8] sm:$0xff] %vm756_vm2, %v4155_v50  ;;  %4186 = vst.msk [vmem:[%s5523_s20 + $0xa0] sm:$0xff] %vm756_vm2, %v4154_v43  ;;  %v4125_v1 = vmul.f32 %v4060_v7, %v3901_v55  ;;  %v4124_v39 = vmul.f32 %v4055_v38, %v3900_v22 }
 0xc2d   : > { %v4157_v2 = vadd.f32 %v4125_v1, %v3869_v25  ;;  %v4156_v62 = vadd.f32 %v4124_v39, %v3868_v12 }
 0xc2e   : > { %v4070_v51 = vpop.permute.xlu1 %4069  ;;  %v4065_v29 = vpop.permute.xlu0 %4064 }
 0xc2f   : > { %4189 = vst.msk [vmem:[%s5523_s20 + $0xb8] sm:$0xff] %vm756_vm2, %v4157_v2  ;;  %4188 = vst.msk [vmem:[%s5523_s20 + $0xb0] sm:$0xff] %vm756_vm2, %v4156_v62  ;;  %v4127_v35 = vmul.f32 %v4070_v51, %v3903_v33  ;;  %v4126_v44 = vmul.f32 %v4065_v29, %v3902_v60 }
 0xc31   : > { %v4159_v42 = vadd.f32 %v4127_v35, %v3871_v19  ;;  %v4158_v40 = vadd.f32 %v4126_v44, %v3870_v0 }
 0xc32   : > { %v4080_v56 = vpop.permute.xlu1 %4079  ;;  %v4075_v3 = vpop.permute.xlu0 %4074 }
 0xc33   : > { %4191 = vst.msk [vmem:[%s5523_s20 + $0xc8] sm:$0xff] %vm756_vm2, %v4159_v42  ;;  %4190 = vst.msk [vmem:[%s5523_s20 + $0xc0] sm:$0xff] %vm756_vm2, %v4158_v40  ;;  %v4129_v16 = vmul.f32 %v4080_v56, %v3905_v5  ;;  %v4128_v45 = vmul.f32 %v4075_v3, %v3904_v58 }
 0xc35   : > { %v4161_v53 = vadd.f32 %v4129_v16, %v3873_v31  ;;  %v4160_v52 = vadd.f32 %v4128_v45, %v3872_v46 }
 0xc36   : > { %v4090_v27 = vpop.permute.xlu1 %4089  ;;  %v4085_v21 = vpop.permute.xlu0 %4084 }
 0xc37   : > { %4193 = vst.msk [vmem:[%s5523_s20 + $0xd8] sm:$0xff] %vm756_vm2, %v4161_v53  ;;  %4192 = vst.msk [vmem:[%s5523_s20 + $0xd0] sm:$0xff] %vm756_vm2, %v4160_v52  ;;  %v4131_v47 = vmul.f32 %v4090_v27, %v3907_v13  ;;  %v4130_v18 = vmul.f32 %v4085_v21, %v3906_v26 }
 0xc39   : > { %v4163_v49 = vadd.f32 %v4131_v47, %v3875_v10  ;;  %v4162_v8 = vadd.f32 %v4130_v18, %v3874_v34 }
 0xc3a   : > { %v4100_v9 = vpop.permute.xlu1 %4099  ;;  %v4095_v17 = vpop.permute.xlu0 %4094 }
 0xc3b   : > { %4195 = vst.msk [vmem:[%s5523_s20 + $0xe8] sm:$0xff] %vm756_vm2, %v4163_v49  ;;  %4194 = vst.msk [vmem:[%s5523_s20 + $0xe0] sm:$0xff] %vm756_vm2, %v4162_v8  ;;  %v4133_v41 = vmul.f32 %v4100_v9, %v3909_v59  ;;  %v4132_v14 = vmul.f32 %v4095_v17, %v3908_v23 }
 0xc3d   : > { %v4165_v57 = vadd.f32 %v4133_v41, %v3877_v54  ;;  %v4164_v36 = vadd.f32 %v4132_v14, %v3876_v6 }
 0xc3f   : > { %4197 = vst.msk [vmem:[%s5523_s20 + $0xf8] sm:$0xff] %vm756_vm2, %v4165_v57  ;;  %4196 = vst.msk [vmem:[%s5523_s20 + $0xf0] sm:$0xff] %vm756_vm2, %v4164_v36 }
 0xc40 PF: > { %s31_s1 = sadd.s32 1, %s5417_s1  }
 0xc41   : > { %p28_p2 = scmp.ge.s32.totalorder %s31_s1, 4  }
 0xc43   :  { %30 = sbr.rel (!%p28_p2) target bundleno = 26 (0x1a), region = 129 }

</bundles_post_ra>
